<compile_context>
chip_gen: v5e
topology: v5e:2x2
jax: 0.10.0
libtpu: 0.0.40
codegen_flags: <defaults>
</compile_context>

<pallas_src>
import math

import jax
import jax.numpy as jnp
from jax import lax
from jax.experimental import pallas as pl
from jax.experimental.pallas import tpu as pltpu

# ----------------------------- model config ---------------------------------
D_MODEL = 32
N_HEADS = 4
D_K = D_MODEL // N_HEADS
D_FF = 64
N_LAYERS = 2
VOCAB = 16
EPS = 1e-6          # Annotated-Transformer LayerNorm eps (added to std)
NEG_INF = -1e9


# ----------------------------- fused Pallas kernel ---------------------------
def _fused_encdec_kernel(
    # batched inputs (one batch element per grid step)
    x_src_ref, x_tgt_ref, src_bias_ref, cross_bias_ref, tgt_bias_ref,
    # encoder weights, stacked over layers
    e_wqkv, e_bqkv, e_wo, e_bo, e_w1, e_b1, e_w2, e_b2,
    e_ln1g, e_ln1b, e_ln2g, e_ln2b,
    # decoder weights, stacked over layers
    d_wqkv, d_bqkv, d_wos, d_bos, d_wqc, d_bqc, d_wkvc, d_bkvc,
    d_woc, d_boc, d_w1, d_b1, d_w2, d_b2,
    d_ln1g, d_ln1b, d_ln2g, d_ln2b, d_ln3g, d_ln3b,
    # final norms
    enc_ng, enc_nb, dec_ng, dec_nb,
    # output
    o_ref,
):
    f32 = jnp.float32

    def matmul(a, w, b):
        return jnp.dot(a, w, preferred_element_type=f32) + b

    def layer_norm(x, g, b):
        # Annotated-Transformer LayerNorm: unbiased std (ddof=1), eps on std.
        mean = jnp.mean(x, axis=-1, keepdims=True)
        c = x - mean
        var = jnp.sum(c * c, axis=-1, keepdims=True) * (1.0 / (D_MODEL - 1))
        inv = pl.reciprocal(jnp.sqrt(var) + EPS, approx=True)   # EUP slot
        return g * (c * inv) + b

    def attend(q, k, v, bias):
        # q: (Lq, D), k/v: (Lk, D), bias: (Lq, Lk) additive (0 / -1e9)
        scale = 1.0 / math.sqrt(D_K)
        heads = []
        for h in range(N_HEADS):
            lo, hi = h * D_K, (h + 1) * D_K
            s = lax.dot_general(
                q[:, lo:hi], k[:, lo:hi],
                dimension_numbers=(((1,), (1,)), ((), ())),
                preferred_element_type=f32) * scale + bias
            m = jnp.max(s, axis=-1, keepdims=True)
            e = jnp.exp(s - m)
            p = e * pl.reciprocal(jnp.sum(e, axis=-1, keepdims=True), approx=True)
            heads.append(jnp.dot(p, v[:, lo:hi], preferred_element_type=f32))
        return jnp.concatenate(heads, axis=-1)                  # (Lq, D)

    def ffn(x, w1, b1, w2, b2):
        h = jnp.maximum(matmul(x, w1, b1), 0.0)
        return matmul(h, w2, b2)

    src_bias = src_bias_ref[0]        # (Ls, Ls)
    cross_bias = cross_bias_ref[0]    # (Lt, Ls)
    tgt_bias = tgt_bias_ref[0]        # (Lt, Lt)

    # ------------------------------ encoder ---------------------------------
    x = x_src_ref[0].astype(f32)      # (Ls, D)
    for l in range(N_LAYERS):
        n1 = layer_norm(x, e_ln1g[l], e_ln1b[l])
        qkv = matmul(n1, e_wqkv[l], e_bqkv[l])                  # fused QKV
        q = qkv[:, 0:D_MODEL]
        k = qkv[:, D_MODEL:2 * D_MODEL]
        v = qkv[:, 2 * D_MODEL:3 * D_MODEL]
        x = x + matmul(attend(q, k, v, src_bias), e_wo[l], e_bo[l])
        n2 = layer_norm(x, e_ln2g[l], e_ln2b[l])
        x = x + ffn(n2, e_w1[l], e_b1[l], e_w2[l], e_b2[l])
    memory = layer_norm(x, enc_ng[...], enc_nb[...])            # (Ls, D)

    # ------------------------------ decoder ---------------------------------
    y = x_tgt_ref[0].astype(f32)      # (Lt, D)
    for l in range(N_LAYERS):
        # masked self-attention
        n1 = layer_norm(y, d_ln1g[l], d_ln1b[l])
        qkv = matmul(n1, d_wqkv[l], d_bqkv[l])
        q = qkv[:, 0:D_MODEL]
        k = qkv[:, D_MODEL:2 * D_MODEL]
        v = qkv[:, 2 * D_MODEL:3 * D_MODEL]
        y = y + matmul(attend(q, k, v, tgt_bias), d_wos[l], d_bos[l])

        # cross-attention over encoder memory (fused KV projection)
        n2 = layer_norm(y, d_ln2g[l], d_ln2b[l])
        qc = matmul(n2, d_wqc[l], d_bqc[l])
        kv = matmul(memory, d_wkvc[l], d_bkvc[l])
        kc = kv[:, 0:D_MODEL]
        vc = kv[:, D_MODEL:2 * D_MODEL]
        y = y + matmul(attend(qc, kc, vc, cross_bias), d_woc[l], d_boc[l])

        # feed-forward
        n3 = layer_norm(y, d_ln3g[l], d_ln3b[l])
        y = y + ffn(n3, d_w1[l], d_b1[l], d_w2[l], d_b2[l])

    o_ref[0] = layer_norm(y, dec_ng[...], dec_nb[...]).astype(o_ref.dtype)
    # TODO(synk): the `generator` (Linear + log_softmax) exists in the PyTorch
    # module but is not called inside forward(), so it is not applied here.


# ----------------------------- BlockSpec helpers ------------------------------
def _batched_spec(a):
    """One batch element per grid step; last two dims kept whole."""
    nd = a.ndim
    return pl.BlockSpec((1,) + a.shape[1:], lambda b, _n=nd: (b,) + (0,) * (_n - 1))


def _replicated_spec(a):
    """Full array, same block for every grid step (weights stay in VMEM)."""
    nd = a.ndim
    return pl.BlockSpec(a.shape, lambda b, _n=nd: (0,) * _n)


# ----------------------------- plain-JAX glue ---------------------------------
def mask_to_bias(mask, Lq, Lk):
    """mask (B,1,Lk)/(B,Lq,Lk)/(B,Lk) with 1=attend -> additive bias (B,Lq,Lk)."""
    B = mask.shape[0]
    m = mask.astype(jnp.float32)
    if m.ndim == 2:
        m = m[:, None, :]
    m = jnp.broadcast_to(m, (B, Lq, Lk))
    return (1.0 - m) * jnp.float32(NEG_INF)


def positional_encoding(L, d_model):
    pos = jnp.arange(L, dtype=jnp.float32)[:, None]
    div = jnp.exp(jnp.arange(0, d_model, 2, dtype=jnp.float32)
                  * (-math.log(10000.0) / d_model))
    pe = jnp.zeros((L, d_model), jnp.float32)
    pe = pe.at[:, 0::2].set(jnp.sin(pos * div))
    pe = pe.at[:, 1::2].set(jnp.cos(pos * div))
    return pe


def embed(tokens, table):
    return jnp.take(table, tokens, axis=0) * math.sqrt(D_MODEL)


def encoder_decoder_forward(params, src, tgt, src_mask, tgt_mask):
    B, Ls = src.shape
    _, Lt = tgt.shape

    # src_embed / tgt_embed = Embeddings*sqrt(d_model) + PositionalEncoding
    # (eval mode -> dropout is identity)
    x_src = embed(src, params["src_emb"]) + positional_encoding(Ls, D_MODEL)[None]
    x_tgt = embed(tgt, params["tgt_emb"]) + positional_encoding(Lt, D_MODEL)[None]

    src_bias = mask_to_bias(src_mask, Ls, Ls)     # encoder self-attn
    cross_bias = mask_to_bias(src_mask, Lt, Ls)   # decoder cross-attn
    tgt_bias = mask_to_bias(tgt_mask, Lt, Lt)     # decoder self-attn

    e, d = params["enc"], params["dec"]
    batched = [x_src, x_tgt, src_bias, cross_bias, tgt_bias]
    weights = [
        e["wqkv"], e["bqkv"], e["wo"], e["bo"], e["w1"], e["b1"], e["w2"], e["b2"],
        e["ln1_g"], e["ln1_b"], e["ln2_g"], e["ln2_b"],
        d["wqkv"], d["bqkv"], d["wo_s"], d["bo_s"], d["wq_c"], d["bq_c"],
        d["wkv_c"], d["bkv_c"], d["wo_c"], d["bo_c"],
        d["w1"], d["b1"], d["w2"], d["b2"],
        d["ln1_g"], d["ln1_b"], d["ln2_g"], d["ln2_b"], d["ln3_g"], d["ln3_b"],
        params["enc_norm_g"], params["enc_norm_b"],
        params["dec_norm_g"], params["dec_norm_b"],
    ]

    out = pl.pallas_call(
        _fused_encdec_kernel,
        out_shape=jax.ShapeDtypeStruct((B, Lt, D_MODEL), jnp.float32),
        grid=(B,),
        in_specs=[_batched_spec(a) for a in batched]
                 + [_replicated_spec(a) for a in weights],
        out_specs=pl.BlockSpec((1, Lt, D_MODEL), lambda b: (b, 0, 0)),
        compiler_params=pltpu.CompilerParams(
            dimension_semantics=("parallel",)),   # v7x: one batch per TC
    )(*batched, *weights)
    return out


# ----------------------------- parameter init --------------------------------
def init_params(key):
    keys = iter(jax.random.split(key, 64))
    L = N_LAYERS

    def nrm(shape, scale=0.05):
        return (scale * jax.random.normal(next(keys), shape)).astype(jnp.float32)

    def zeros(*s):
        return jnp.zeros(s, jnp.float32)

    def ones(*s):
        return jnp.ones(s, jnp.float32)

    enc = dict(
        wqkv=nrm((L, D_MODEL, 3 * D_MODEL)), bqkv=zeros(L, 1, 3 * D_MODEL),
        wo=nrm((L, D_MODEL, D_MODEL)), bo=zeros(L, 1, D_MODEL),
        w1=nrm((L, D_MODEL, D_FF)), b1=zeros(L, 1, D_FF),
        w2=nrm((L, D_FF, D_MODEL)), b2=zeros(L, 1, D_MODEL),
        ln1_g=ones(L, 1, D_MODEL), ln1_b=zeros(L, 1, D_MODEL),
        ln2_g=ones(L, 1, D_MODEL), ln2_b=zeros(L, 1, D_MODEL),
    )
    dec = dict(
        wqkv=nrm((L, D_MODEL, 3 * D_MODEL)), bqkv=zeros(L, 1, 3 * D_MODEL),
        wo_s=nrm((L, D_MODEL, D_MODEL)), bo_s=zeros(L, 1, D_MODEL),
        wq_c=nrm((L, D_MODEL, D_MODEL)), bq_c=zeros(L, 1, D_MODEL),
        wkv_c=nrm((L, D_MODEL, 2 * D_MODEL)), bkv_c=zeros(L, 1, 2 * D_MODEL),
        wo_c=nrm((L, D_MODEL, D_MODEL)), bo_c=zeros(L, 1, D_MODEL),
        w1=nrm((L, D_MODEL, D_FF)), b1=zeros(L, 1, D_FF),
        w2=nrm((L, D_FF, D_MODEL)), b2=zeros(L, 1, D_MODEL),
        ln1_g=ones(L, 1, D_MODEL), ln1_b=zeros(L, 1, D_MODEL),
        ln2_g=ones(L, 1, D_MODEL), ln2_b=zeros(L, 1, D_MODEL),
        ln3_g=ones(L, 1, D_MODEL), ln3_b=zeros(L, 1, D_MODEL),
    )
    return dict(
        src_emb=nrm((VOCAB, D_MODEL), scale=1.0),
        tgt_emb=nrm((VOCAB, D_MODEL), scale=1.0),
        enc=enc, dec=dec,
        enc_norm_g=ones(1, D_MODEL), enc_norm_b=zeros(1, D_MODEL),
        dec_norm_g=ones(1, D_MODEL), dec_norm_b=zeros(1, D_MODEL),
    )


# ----------------------------- main -------------------------------------------
if __name__ == "__main__":
    B, LS, LT = 2, 8, 8

    params = init_params(jax.random.PRNGKey(42))

    key = jax.random.PRNGKey(0)
    k_src, k_tgt = jax.random.split(key)
    src = jax.random.randint(k_src, (B, LS), 0, VOCAB, dtype=jnp.int32)
    tgt = jax.random.randint(k_tgt, (B, LT), 0, VOCAB, dtype=jnp.int32)

    # src_mask: (B, 1, LS) all-ones (no padding); tgt_mask: (B, LT, LT) causal.
    src_mask = jnp.ones((B, 1, LS), jnp.float32)
    causal = jnp.tril(jnp.ones((LT, LT), jnp.float32))
    tgt_mask = jnp.broadcast_to(causal[None], (B, LT, LT))

    fwd = jax.jit(encoder_decoder_forward)
    out = jax.block_until_ready(fwd(params, src, tgt, src_mask, tgt_mask))

    assert out.shape == (B, LT, D_MODEL), out.shape
    assert bool(jnp.all(jnp.isfinite(out)))
    print("KERNEL_OK")
</pallas_src>

<mosaic_0001>
module attributes {stable_mosaic.version = 11 : i64} {
  func.func @_fused_encdec_kernel(%arg0: i32, %arg1: memref<1x8x32xf32, #tpu.memory_space<vmem>>, %arg2: memref<1x8x32xf32, #tpu.memory_space<vmem>>, %arg3: memref<1x8x8xf32, #tpu.memory_space<vmem>>, %arg4: memref<1x8x8xf32, #tpu.memory_space<vmem>>, %arg5: memref<1x8x8xf32, #tpu.memory_space<vmem>>, %arg6: memref<2x32x96xf32, #tpu.memory_space<vmem>>, %arg7: memref<2x1x96xf32, #tpu.memory_space<vmem>>, %arg8: memref<2x32x32xf32, #tpu.memory_space<vmem>>, %arg9: memref<2x1x32xf32, #tpu.memory_space<vmem>>, %arg10: memref<2x32x64xf32, #tpu.memory_space<vmem>>, %arg11: memref<2x1x64xf32, #tpu.memory_space<vmem>>, %arg12: memref<2x64x32xf32, #tpu.memory_space<vmem>>, %arg13: memref<2x1x32xf32, #tpu.memory_space<vmem>>, %arg14: memref<2x1x32xf32, #tpu.memory_space<vmem>>, %arg15: memref<2x1x32xf32, #tpu.memory_space<vmem>>, %arg16: memref<2x1x32xf32, #tpu.memory_space<vmem>>, %arg17: memref<2x1x32xf32, #tpu.memory_space<vmem>>, %arg18: memref<2x32x96xf32, #tpu.memory_space<vmem>>, %arg19: memref<2x1x96xf32, #tpu.memory_space<vmem>>, %arg20: memref<2x32x32xf32, #tpu.memory_space<vmem>>, %arg21: memref<2x1x32xf32, #tpu.memory_space<vmem>>, %arg22: memref<2x32x32xf32, #tpu.memory_space<vmem>>, %arg23: memref<2x1x32xf32, #tpu.memory_space<vmem>>, %arg24: memref<2x32x64xf32, #tpu.memory_space<vmem>>, %arg25: memref<2x1x64xf32, #tpu.memory_space<vmem>>, %arg26: memref<2x32x32xf32, #tpu.memory_space<vmem>>, %arg27: memref<2x1x32xf32, #tpu.memory_space<vmem>>, %arg28: memref<2x32x64xf32, #tpu.memory_space<vmem>>, %arg29: memref<2x1x64xf32, #tpu.memory_space<vmem>>, %arg30: memref<2x64x32xf32, #tpu.memory_space<vmem>>, %arg31: memref<2x1x32xf32, #tpu.memory_space<vmem>>, %arg32: memref<2x1x32xf32, #tpu.memory_space<vmem>>, %arg33: memref<2x1x32xf32, #tpu.memory_space<vmem>>, %arg34: memref<2x1x32xf32, #tpu.memory_space<vmem>>, %arg35: memref<2x1x32xf32, #tpu.memory_space<vmem>>, %arg36: memref<2x1x32xf32, #tpu.memory_space<vmem>>, %arg37: memref<2x1x32xf32, #tpu.memory_space<vmem>>, %arg38: memref<1x32xf32, #tpu.memory_space<vmem>>, %arg39: memref<1x32xf32, #tpu.memory_space<vmem>>, %arg40: memref<1x32xf32, #tpu.memory_space<vmem>>, %arg41: memref<1x32xf32, #tpu.memory_space<vmem>>, %arg42: memref<1x8x32xf32, #tpu.memory_space<vmem>>) attributes {dimension_semantics = [#tpu.dimension_semantics<parallel>], iteration_bounds = array<i64: 2>, scalar_prefetch = 0 : i64, scratch_operands = 0 : i64, tpu.core_type = #tpu.core_type<tc>, window_params = [{transform_indices = @transform_0, window_bounds = array<i64: 1, 8, 32>}, {transform_indices = @transform_1, window_bounds = array<i64: 1, 8, 32>}, {transform_indices = @transform_2, window_bounds = array<i64: 1, 8, 8>}, {transform_indices = @transform_3, window_bounds = array<i64: 1, 8, 8>}, {transform_indices = @transform_4, window_bounds = array<i64: 1, 8, 8>}, {pipeline_mode = #tpu.pipeline_mode<synchronous>, transform_indices = @transform_5, window_bounds = array<i64: 2, 32, 96>}, {pipeline_mode = #tpu.pipeline_mode<synchronous>, transform_indices = @transform_6, window_bounds = array<i64: 2, 1, 96>}, {pipeline_mode = #tpu.pipeline_mode<synchronous>, transform_indices = @transform_7, window_bounds = array<i64: 2, 32, 32>}, {pipeline_mode = #tpu.pipeline_mode<synchronous>, transform_indices = @transform_8, window_bounds = array<i64: 2, 1, 32>}, {pipeline_mode = #tpu.pipeline_mode<synchronous>, transform_indices = @transform_9, window_bounds = array<i64: 2, 32, 64>}, {pipeline_mode = #tpu.pipeline_mode<synchronous>, transform_indices = @transform_10, window_bounds = array<i64: 2, 1, 64>}, {pipeline_mode = #tpu.pipeline_mode<synchronous>, transform_indices = @transform_11, window_bounds = array<i64: 2, 64, 32>}, {pipeline_mode = #tpu.pipeline_mode<synchronous>, transform_indices = @transform_12, window_bounds = array<i64: 2, 1, 32>}, {pipeline_mode = #tpu.pipeline_mode<synchronous>, transform_indices = @transform_13, window_bounds = array<i64: 2, 1, 32>}, {pipeline_mode = #tpu.pipeline_mode<synchronous>, transform_indices = @transform_14, window_bounds = array<i64: 2, 1, 32>}, {pipeline_mode = #tpu.pipeline_mode<synchronous>, transform_indices = @transform_15, window_bounds = array<i64: 2, 1, 32>}, {pipeline_mode = #tpu.pipeline_mode<synchronous>, transform_indices = @transform_16, window_bounds = array<i64: 2, 1, 32>}, {pipeline_mode = #tpu.pipeline_mode<synchronous>, transform_indices = @transform_17, window_bounds = array<i64: 2, 32, 96>}, {pipeline_mode = #tpu.pipeline_mode<synchronous>, transform_indices = @transform_18, window_bounds = array<i64: 2, 1, 96>}, {pipeline_mode = #tpu.pipeline_mode<synchronous>, transform_indices = @transform_19, window_bounds = array<i64: 2, 32, 32>}, {pipeline_mode = #tpu.pipeline_mode<synchronous>, transform_indices = @transform_20, window_bounds = array<i64: 2, 1, 32>}, {pipeline_mode = #tpu.pipeline_mode<synchronous>, transform_indices = @transform_21, window_bounds = array<i64: 2, 32, 32>}, {pipeline_mode = #tpu.pipeline_mode<synchronous>, transform_indices = @transform_22, window_bounds = array<i64: 2, 1, 32>}, {pipeline_mode = #tpu.pipeline_mode<synchronous>, transform_indices = @transform_23, window_bounds = array<i64: 2, 32, 64>}, {pipeline_mode = #tpu.pipeline_mode<synchronous>, transform_indices = @transform_24, window_bounds = array<i64: 2, 1, 64>}, {pipeline_mode = #tpu.pipeline_mode<synchronous>, transform_indices = @transform_25, window_bounds = array<i64: 2, 32, 32>}, {pipeline_mode = #tpu.pipeline_mode<synchronous>, transform_indices = @transform_26, window_bounds = array<i64: 2, 1, 32>}, {pipeline_mode = #tpu.pipeline_mode<synchronous>, transform_indices = @transform_27, window_bounds = array<i64: 2, 32, 64>}, {pipeline_mode = #tpu.pipeline_mode<synchronous>, transform_indices = @transform_28, window_bounds = array<i64: 2, 1, 64>}, {pipeline_mode = #tpu.pipeline_mode<synchronous>, transform_indices = @transform_29, window_bounds = array<i64: 2, 64, 32>}, {pipeline_mode = #tpu.pipeline_mode<synchronous>, transform_indices = @transform_30, window_bounds = array<i64: 2, 1, 32>}, {pipeline_mode = #tpu.pipeline_mode<synchronous>, transform_indices = @transform_31, window_bounds = array<i64: 2, 1, 32>}, {pipeline_mode = #tpu.pipeline_mode<synchronous>, transform_indices = @transform_32, window_bounds = array<i64: 2, 1, 32>}, {pipeline_mode = #tpu.pipeline_mode<synchronous>, transform_indices = @transform_33, window_bounds = array<i64: 2, 1, 32>}, {pipeline_mode = #tpu.pipeline_mode<synchronous>, transform_indices = @transform_34, window_bounds = array<i64: 2, 1, 32>}, {pipeline_mode = #tpu.pipeline_mode<synchronous>, transform_indices = @transform_35, window_bounds = array<i64: 2, 1, 32>}, {pipeline_mode = #tpu.pipeline_mode<synchronous>, transform_indices = @transform_36, window_bounds = array<i64: 2, 1, 32>}, {pipeline_mode = #tpu.pipeline_mode<synchronous>, transform_indices = @transform_37, window_bounds = array<i64: 1, 32>}, {pipeline_mode = #tpu.pipeline_mode<synchronous>, transform_indices = @transform_38, window_bounds = array<i64: 1, 32>}, {pipeline_mode = #tpu.pipeline_mode<synchronous>, transform_indices = @transform_39, window_bounds = array<i64: 1, 32>}, {pipeline_mode = #tpu.pipeline_mode<synchronous>, transform_indices = @transform_40, window_bounds = array<i64: 1, 32>}, {transform_indices = @transform_41, window_bounds = array<i64: 1, 8, 32>}]} {
    %c0 = arith.constant 0 : index
    %c0_0 = arith.constant 0 : index
    %c0_1 = arith.constant 0 : index
    %0 = vector.load %arg3[%c0, %c0_0, %c0_1] : memref<1x8x8xf32, #tpu.memory_space<vmem>>, vector<1x8x8xf32>
    %1 = vector.shape_cast %0 : vector<1x8x8xf32> to vector<8x8xf32>
    %c0_2 = arith.constant 0 : index
    %c0_3 = arith.constant 0 : index
    %c0_4 = arith.constant 0 : index
    %2 = vector.load %arg4[%c0_2, %c0_3, %c0_4] : memref<1x8x8xf32, #tpu.memory_space<vmem>>, vector<1x8x8xf32>
    %3 = vector.shape_cast %2 : vector<1x8x8xf32> to vector<8x8xf32>
    %c0_5 = arith.constant 0 : index
    %c0_6 = arith.constant 0 : index
    %c0_7 = arith.constant 0 : index
    %4 = vector.load %arg5[%c0_5, %c0_6, %c0_7] : memref<1x8x8xf32, #tpu.memory_space<vmem>>, vector<1x8x8xf32>
    %5 = vector.shape_cast %4 : vector<1x8x8xf32> to vector<8x8xf32>
    %c0_8 = arith.constant 0 : index
    %c0_9 = arith.constant 0 : index
    %c0_10 = arith.constant 0 : index
    %6 = vector.load %arg1[%c0_8, %c0_9, %c0_10] : memref<1x8x32xf32, #tpu.memory_space<vmem>>, vector<1x8x32xf32>
    %7 = vector.shape_cast %6 : vector<1x8x32xf32> to vector<8x32xf32>
    %c0_11 = arith.constant 0 : index
    %c0_12 = arith.constant 0 : index
    %c0_13 = arith.constant 0 : index
    %8 = vector.load %arg14[%c0_11, %c0_12, %c0_13] : memref<2x1x32xf32, #tpu.memory_space<vmem>>, vector<1x1x32xf32>
    %9 = vector.shape_cast %8 : vector<1x1x32xf32> to vector<1x32xf32>
    %c0_14 = arith.constant 0 : index
    %c0_15 = arith.constant 0 : index
    %c0_16 = arith.constant 0 : index
    %10 = vector.load %arg15[%c0_14, %c0_15, %c0_16] : memref<2x1x32xf32, #tpu.memory_space<vmem>>, vector<1x1x32xf32>
    %11 = vector.shape_cast %10 : vector<1x1x32xf32> to vector<1x32xf32>
    %cst = arith.constant dense<0.000000e+00> : vector<8xf32>
    %12 = vector.multi_reduction <add>, %7, %cst [1] : vector<8x32xf32> to vector<8xf32>
    %13 = vector.shape_cast %12 : vector<8xf32> to vector<8x1xf32>
    %cst_17 = arith.constant 3.200000e+01 : f32
    %14 = vector.broadcast %cst_17 : f32 to vector<8x1xf32>
    %15 = arith.divf %13, %14 : vector<8x1xf32>
    %16 = vector.broadcast %15 : vector<8x1xf32> to vector<8x32xf32>
    %17 = arith.subf %7, %16 : vector<8x32xf32>
    %18 = arith.mulf %17, %17 : vector<8x32xf32>
    %cst_18 = arith.constant dense<0.000000e+00> : vector<8xf32>
    %19 = vector.multi_reduction <add>, %18, %cst_18 [1] : vector<8x32xf32> to vector<8xf32>
    %20 = vector.shape_cast %19 : vector<8xf32> to vector<8x1xf32>
    %cst_19 = arith.constant 0.0322580636 : f32
    %21 = vector.broadcast %cst_19 : f32 to vector<8x1xf32>
    %22 = arith.mulf %20, %21 : vector<8x1xf32>
    %23 = math.sqrt %22 : vector<8x1xf32>
    %cst_20 = arith.constant 9.99999997E-7 : f32
    %24 = vector.broadcast %cst_20 : f32 to vector<8x1xf32>
    %25 = arith.addf %23, %24 : vector<8x1xf32>
    %26 = tpu.reciprocal %25 {approx = true} : vector<8x1xf32> -> vector<8x1xf32>
    %27 = vector.broadcast %26 : vector<8x1xf32> to vector<8x32xf32>
    %28 = arith.mulf %17, %27 : vector<8x32xf32>
    %29 = vector.broadcast %9 : vector<1x32xf32> to vector<8x32xf32>
    %30 = arith.mulf %29, %28 : vector<8x32xf32>
    %31 = vector.broadcast %11 : vector<1x32xf32> to vector<8x32xf32>
    %32 = arith.addf %30, %31 : vector<8x32xf32>
    %c0_21 = arith.constant 0 : index
    %c0_22 = arith.constant 0 : index
    %c0_23 = arith.constant 0 : index
    %33 = vector.load %arg6[%c0_21, %c0_22, %c0_23] : memref<2x32x96xf32, #tpu.memory_space<vmem>>, vector<1x32x96xf32>
    %34 = vector.shape_cast %33 : vector<1x32x96xf32> to vector<32x96xf32>
    %c0_24 = arith.constant 0 : index
    %c0_25 = arith.constant 0 : index
    %c0_26 = arith.constant 0 : index
    %35 = vector.load %arg7[%c0_24, %c0_25, %c0_26] : memref<2x1x96xf32, #tpu.memory_space<vmem>>, vector<1x1x96xf32>
    %36 = vector.shape_cast %35 : vector<1x1x96xf32> to vector<1x96xf32>
    %cst_27 = arith.constant dense<0.000000e+00> : vector<8x96xf32>
    %37 = tpu.matmul %32, %34, %cst_27 {dimension_numbers = #tpu.dot_dimension_numbers<[1], [0], [0], [1], [0, 0, 1, 1], [], []>} : vector<8x32xf32>, vector<32x96xf32>, vector<8x96xf32> -> vector<8x96xf32>
    %38 = vector.broadcast %36 : vector<1x96xf32> to vector<8x96xf32>
    %39 = arith.addf %37, %38 : vector<8x96xf32>
    %40 = vector.extract_strided_slice %39 {offsets = [0, 0], sizes = [8, 32], strides = [1, 1]} : vector<8x96xf32> to vector<8x32xf32>
    %41 = vector.extract_strided_slice %39 {offsets = [0, 32], sizes = [8, 32], strides = [1, 1]} : vector<8x96xf32> to vector<8x32xf32>
    %42 = vector.extract_strided_slice %39 {offsets = [0, 64], sizes = [8, 32], strides = [1, 1]} : vector<8x96xf32> to vector<8x32xf32>
    %43 = vector.extract_strided_slice %40 {offsets = [0, 0], sizes = [8, 8], strides = [1, 1]} : vector<8x32xf32> to vector<8x8xf32>
    %44 = vector.extract_strided_slice %41 {offsets = [0, 0], sizes = [8, 8], strides = [1, 1]} : vector<8x32xf32> to vector<8x8xf32>
    %cst_28 = arith.constant dense<0.000000e+00> : vector<8x8xf32>
    %45 = tpu.matmul %43, %44, %cst_28 {dimension_numbers = #tpu.dot_dimension_numbers<[1], [1], [0], [0], [0, 0, 1, 0], [], []>} : vector<8x8xf32>, vector<8x8xf32>, vector<8x8xf32> -> vector<8x8xf32>
    %cst_29 = arith.constant 0.353553385 : f32
    %46 = vector.broadcast %cst_29 : f32 to vector<8x8xf32>
    %47 = arith.mulf %45, %46 : vector<8x8xf32>
    %48 = arith.addf %47, %1 : vector<8x8xf32>
    %cst_30 = arith.constant dense<0xFF800000> : vector<8xf32>
    %49 = vector.multi_reduction <maximumf>, %48, %cst_30 [1] : vector<8x8xf32> to vector<8xf32>
    %50 = vector.shape_cast %49 : vector<8xf32> to vector<8x1xf32>
    %51 = vector.broadcast %50 : vector<8x1xf32> to vector<8x8xf32>
    %52 = arith.subf %48, %51 : vector<8x8xf32>
    %53 = math.exp %52 : vector<8x8xf32>
    %cst_31 = arith.constant dense<0.000000e+00> : vector<8xf32>
    %54 = vector.multi_reduction <add>, %53, %cst_31 [1] : vector<8x8xf32> to vector<8xf32>
    %55 = vector.shape_cast %54 : vector<8xf32> to vector<8x1xf32>
    %56 = tpu.reciprocal %55 {approx = true} : vector<8x1xf32> -> vector<8x1xf32>
    %57 = vector.broadcast %56 : vector<8x1xf32> to vector<8x8xf32>
    %58 = arith.mulf %53, %57 : vector<8x8xf32>
    %59 = vector.extract_strided_slice %42 {offsets = [0, 0], sizes = [8, 8], strides = [1, 1]} : vector<8x32xf32> to vector<8x8xf32>
    %cst_32 = arith.constant dense<0.000000e+00> : vector<8x8xf32>
    %60 = tpu.matmul %58, %59, %cst_32 {dimension_numbers = #tpu.dot_dimension_numbers<[1], [0], [0], [1], [0, 0, 1, 1], [], []>} : vector<8x8xf32>, vector<8x8xf32>, vector<8x8xf32> -> vector<8x8xf32>
    %61 = vector.extract_strided_slice %40 {offsets = [0, 8], sizes = [8, 8], strides = [1, 1]} : vector<8x32xf32> to vector<8x8xf32>
    %62 = vector.extract_strided_slice %41 {offsets = [0, 8], sizes = [8, 8], strides = [1, 1]} : vector<8x32xf32> to vector<8x8xf32>
    %cst_33 = arith.constant dense<0.000000e+00> : vector<8x8xf32>
    %63 = tpu.matmul %61, %62, %cst_33 {dimension_numbers = #tpu.dot_dimension_numbers<[1], [1], [0], [0], [0, 0, 1, 0], [], []>} : vector<8x8xf32>, vector<8x8xf32>, vector<8x8xf32> -> vector<8x8xf32>
    %cst_34 = arith.constant 0.353553385 : f32
    %64 = vector.broadcast %cst_34 : f32 to vector<8x8xf32>
    %65 = arith.mulf %63, %64 : vector<8x8xf32>
    %66 = arith.addf %65, %1 : vector<8x8xf32>
    %cst_35 = arith.constant dense<0xFF800000> : vector<8xf32>
    %67 = vector.multi_reduction <maximumf>, %66, %cst_35 [1] : vector<8x8xf32> to vector<8xf32>
    %68 = vector.shape_cast %67 : vector<8xf32> to vector<8x1xf32>
    %69 = vector.broadcast %68 : vector<8x1xf32> to vector<8x8xf32>
    %70 = arith.subf %66, %69 : vector<8x8xf32>
    %71 = math.exp %70 : vector<8x8xf32>
    %cst_36 = arith.constant dense<0.000000e+00> : vector<8xf32>
    %72 = vector.multi_reduction <add>, %71, %cst_36 [1] : vector<8x8xf32> to vector<8xf32>
    %73 = vector.shape_cast %72 : vector<8xf32> to vector<8x1xf32>
    %74 = tpu.reciprocal %73 {approx = true} : vector<8x1xf32> -> vector<8x1xf32>
    %75 = vector.broadcast %74 : vector<8x1xf32> to vector<8x8xf32>
    %76 = arith.mulf %71, %75 : vector<8x8xf32>
    %77 = vector.extract_strided_slice %42 {offsets = [0, 8], sizes = [8, 8], strides = [1, 1]} : vector<8x32xf32> to vector<8x8xf32>
    %cst_37 = arith.constant dense<0.000000e+00> : vector<8x8xf32>
    %78 = tpu.matmul %76, %77, %cst_37 {dimension_numbers = #tpu.dot_dimension_numbers<[1], [0], [0], [1], [0, 0, 1, 1], [], []>} : vector<8x8xf32>, vector<8x8xf32>, vector<8x8xf32> -> vector<8x8xf32>
    %79 = vector.extract_strided_slice %40 {offsets = [0, 16], sizes = [8, 8], strides = [1, 1]} : vector<8x32xf32> to vector<8x8xf32>
    %80 = vector.extract_strided_slice %41 {offsets = [0, 16], sizes = [8, 8], strides = [1, 1]} : vector<8x32xf32> to vector<8x8xf32>
    %cst_38 = arith.constant dense<0.000000e+00> : vector<8x8xf32>
    %81 = tpu.matmul %79, %80, %cst_38 {dimension_numbers = #tpu.dot_dimension_numbers<[1], [1], [0], [0], [0, 0, 1, 0], [], []>} : vector<8x8xf32>, vector<8x8xf32>, vector<8x8xf32> -> vector<8x8xf32>
    %cst_39 = arith.constant 0.353553385 : f32
    %82 = vector.broadcast %cst_39 : f32 to vector<8x8xf32>
    %83 = arith.mulf %81, %82 : vector<8x8xf32>
    %84 = arith.addf %83, %1 : vector<8x8xf32>
    %cst_40 = arith.constant dense<0xFF800000> : vector<8xf32>
    %85 = vector.multi_reduction <maximumf>, %84, %cst_40 [1] : vector<8x8xf32> to vector<8xf32>
    %86 = vector.shape_cast %85 : vector<8xf32> to vector<8x1xf32>
    %87 = vector.broadcast %86 : vector<8x1xf32> to vector<8x8xf32>
    %88 = arith.subf %84, %87 : vector<8x8xf32>
    %89 = math.exp %88 : vector<8x8xf32>
    %cst_41 = arith.constant dense<0.000000e+00> : vector<8xf32>
    %90 = vector.multi_reduction <add>, %89, %cst_41 [1] : vector<8x8xf32> to vector<8xf32>
    %91 = vector.shape_cast %90 : vector<8xf32> to vector<8x1xf32>
    %92 = tpu.reciprocal %91 {approx = true} : vector<8x1xf32> -> vector<8x1xf32>
    %93 = vector.broadcast %92 : vector<8x1xf32> to vector<8x8xf32>
    %94 = arith.mulf %89, %93 : vector<8x8xf32>
    %95 = vector.extract_strided_slice %42 {offsets = [0, 16], sizes = [8, 8], strides = [1, 1]} : vector<8x32xf32> to vector<8x8xf32>
    %cst_42 = arith.constant dense<0.000000e+00> : vector<8x8xf32>
    %96 = tpu.matmul %94, %95, %cst_42 {dimension_numbers = #tpu.dot_dimension_numbers<[1], [0], [0], [1], [0, 0, 1, 1], [], []>} : vector<8x8xf32>, vector<8x8xf32>, vector<8x8xf32> -> vector<8x8xf32>
    %97 = vector.extract_strided_slice %40 {offsets = [0, 24], sizes = [8, 8], strides = [1, 1]} : vector<8x32xf32> to vector<8x8xf32>
    %98 = vector.extract_strided_slice %41 {offsets = [0, 24], sizes = [8, 8], strides = [1, 1]} : vector<8x32xf32> to vector<8x8xf32>
    %cst_43 = arith.constant dense<0.000000e+00> : vector<8x8xf32>
    %99 = tpu.matmul %97, %98, %cst_43 {dimension_numbers = #tpu.dot_dimension_numbers<[1], [1], [0], [0], [0, 0, 1, 0], [], []>} : vector<8x8xf32>, vector<8x8xf32>, vector<8x8xf32> -> vector<8x8xf32>
    %cst_44 = arith.constant 0.353553385 : f32
    %100 = vector.broadcast %cst_44 : f32 to vector<8x8xf32>
    %101 = arith.mulf %99, %100 : vector<8x8xf32>
    %102 = arith.addf %101, %1 : vector<8x8xf32>
    %cst_45 = arith.constant dense<0xFF800000> : vector<8xf32>
    %103 = vector.multi_reduction <maximumf>, %102, %cst_45 [1] : vector<8x8xf32> to vector<8xf32>
    %104 = vector.shape_cast %103 : vector<8xf32> to vector<8x1xf32>
    %105 = vector.broadcast %104 : vector<8x1xf32> to vector<8x8xf32>
    %106 = arith.subf %102, %105 : vector<8x8xf32>
    %107 = math.exp %106 : vector<8x8xf32>
    %cst_46 = arith.constant dense<0.000000e+00> : vector<8xf32>
    %108 = vector.multi_reduction <add>, %107, %cst_46 [1] : vector<8x8xf32> to vector<8xf32>
    %109 = vector.shape_cast %108 : vector<8xf32> to vector<8x1xf32>
    %110 = tpu.reciprocal %109 {approx = true} : vector<8x1xf32> -> vector<8x1xf32>
    %111 = vector.broadcast %110 : vector<8x1xf32> to vector<8x8xf32>
    %112 = arith.mulf %107, %111 : vector<8x8xf32>
    %113 = vector.extract_strided_slice %42 {offsets = [0, 24], sizes = [8, 8], strides = [1, 1]} : vector<8x32xf32> to vector<8x8xf32>
    %cst_47 = arith.constant dense<0.000000e+00> : vector<8x8xf32>
    %114 = tpu.matmul %112, %113, %cst_47 {dimension_numbers = #tpu.dot_dimension_numbers<[1], [0], [0], [1], [0, 0, 1, 1], [], []>} : vector<8x8xf32>, vector<8x8xf32>, vector<8x8xf32> -> vector<8x8xf32>
    %115 = tpu.concatenate %60, %78, %96, %114 in 1 : vector<8x8xf32>, vector<8x8xf32>, vector<8x8xf32>, vector<8x8xf32> -> vector<8x32xf32>
    %c0_48 = arith.constant 0 : index
    %c0_49 = arith.constant 0 : index
    %c0_50 = arith.constant 0 : index
    %116 = vector.load %arg8[%c0_48, %c0_49, %c0_50] : memref<2x32x32xf32, #tpu.memory_space<vmem>>, vector<1x32x32xf32>
    %117 = vector.shape_cast %116 : vector<1x32x32xf32> to vector<32x32xf32>
    %c0_51 = arith.constant 0 : index
    %c0_52 = arith.constant 0 : index
    %c0_53 = arith.constant 0 : index
    %118 = vector.load %arg9[%c0_51, %c0_52, %c0_53] : memref<2x1x32xf32, #tpu.memory_space<vmem>>, vector<1x1x32xf32>
    %119 = vector.shape_cast %118 : vector<1x1x32xf32> to vector<1x32xf32>
    %cst_54 = arith.constant dense<0.000000e+00> : vector<8x32xf32>
    %120 = tpu.matmul %115, %117, %cst_54 {dimension_numbers = #tpu.dot_dimension_numbers<[1], [0], [0], [1], [0, 0, 1, 1], [], []>} : vector<8x32xf32>, vector<32x32xf32>, vector<8x32xf32> -> vector<8x32xf32>
    %121 = vector.broadcast %119 : vector<1x32xf32> to vector<8x32xf32>
    %122 = arith.addf %120, %121 : vector<8x32xf32>
    %123 = arith.addf %7, %122 : vector<8x32xf32>
    %c0_55 = arith.constant 0 : index
    %c0_56 = arith.constant 0 : index
    %c0_57 = arith.constant 0 : index
    %124 = vector.load %arg16[%c0_55, %c0_56, %c0_57] : memref<2x1x32xf32, #tpu.memory_space<vmem>>, vector<1x1x32xf32>
    %125 = vector.shape_cast %124 : vector<1x1x32xf32> to vector<1x32xf32>
    %c0_58 = arith.constant 0 : index
    %c0_59 = arith.constant 0 : index
    %c0_60 = arith.constant 0 : index
    %126 = vector.load %arg17[%c0_58, %c0_59, %c0_60] : memref<2x1x32xf32, #tpu.memory_space<vmem>>, vector<1x1x32xf32>
    %127 = vector.shape_cast %126 : vector<1x1x32xf32> to vector<1x32xf32>
    %cst_61 = arith.constant dense<0.000000e+00> : vector<8xf32>
    %128 = vector.multi_reduction <add>, %123, %cst_61 [1] : vector<8x32xf32> to vector<8xf32>
    %129 = vector.shape_cast %128 : vector<8xf32> to vector<8x1xf32>
    %cst_62 = arith.constant 3.200000e+01 : f32
    %130 = vector.broadcast %cst_62 : f32 to vector<8x1xf32>
    %131 = arith.divf %129, %130 : vector<8x1xf32>
    %132 = vector.broadcast %131 : vector<8x1xf32> to vector<8x32xf32>
    %133 = arith.subf %123, %132 : vector<8x32xf32>
    %134 = arith.mulf %133, %133 : vector<8x32xf32>
    %cst_63 = arith.constant dense<0.000000e+00> : vector<8xf32>
    %135 = vector.multi_reduction <add>, %134, %cst_63 [1] : vector<8x32xf32> to vector<8xf32>
    %136 = vector.shape_cast %135 : vector<8xf32> to vector<8x1xf32>
    %cst_64 = arith.constant 0.0322580636 : f32
    %137 = vector.broadcast %cst_64 : f32 to vector<8x1xf32>
    %138 = arith.mulf %136, %137 : vector<8x1xf32>
    %139 = math.sqrt %138 : vector<8x1xf32>
    %cst_65 = arith.constant 9.99999997E-7 : f32
    %140 = vector.broadcast %cst_65 : f32 to vector<8x1xf32>
    %141 = arith.addf %139, %140 : vector<8x1xf32>
    %142 = tpu.reciprocal %141 {approx = true} : vector<8x1xf32> -> vector<8x1xf32>
    %143 = vector.broadcast %142 : vector<8x1xf32> to vector<8x32xf32>
    %144 = arith.mulf %133, %143 : vector<8x32xf32>
    %145 = vector.broadcast %125 : vector<1x32xf32> to vector<8x32xf32>
    %146 = arith.mulf %145, %144 : vector<8x32xf32>
    %147 = vector.broadcast %127 : vector<1x32xf32> to vector<8x32xf32>
    %148 = arith.addf %146, %147 : vector<8x32xf32>
    %c0_66 = arith.constant 0 : index
    %c0_67 = arith.constant 0 : index
    %c0_68 = arith.constant 0 : index
    %149 = vector.load %arg10[%c0_66, %c0_67, %c0_68] : memref<2x32x64xf32, #tpu.memory_space<vmem>>, vector<1x32x64xf32>
    %150 = vector.shape_cast %149 : vector<1x32x64xf32> to vector<32x64xf32>
    %c0_69 = arith.constant 0 : index
    %c0_70 = arith.constant 0 : index
    %c0_71 = arith.constant 0 : index
    %151 = vector.load %arg11[%c0_69, %c0_70, %c0_71] : memref<2x1x64xf32, #tpu.memory_space<vmem>>, vector<1x1x64xf32>
    %152 = vector.shape_cast %151 : vector<1x1x64xf32> to vector<1x64xf32>
    %c0_72 = arith.constant 0 : index
    %c0_73 = arith.constant 0 : index
    %c0_74 = arith.constant 0 : index
    %153 = vector.load %arg12[%c0_72, %c0_73, %c0_74] : memref<2x64x32xf32, #tpu.memory_space<vmem>>, vector<1x64x32xf32>
    %154 = vector.shape_cast %153 : vector<1x64x32xf32> to vector<64x32xf32>
    %c0_75 = arith.constant 0 : index
    %c0_76 = arith.constant 0 : index
    %c0_77 = arith.constant 0 : index
    %155 = vector.load %arg13[%c0_75, %c0_76, %c0_77] : memref<2x1x32xf32, #tpu.memory_space<vmem>>, vector<1x1x32xf32>
    %156 = vector.shape_cast %155 : vector<1x1x32xf32> to vector<1x32xf32>
    %cst_78 = arith.constant dense<0.000000e+00> : vector<8x64xf32>
    %157 = tpu.matmul %148, %150, %cst_78 {dimension_numbers = #tpu.dot_dimension_numbers<[1], [0], [0], [1], [0, 0, 1, 1], [], []>} : vector<8x32xf32>, vector<32x64xf32>, vector<8x64xf32> -> vector<8x64xf32>
    %158 = vector.broadcast %152 : vector<1x64xf32> to vector<8x64xf32>
    %159 = arith.addf %157, %158 : vector<8x64xf32>
    %cst_79 = arith.constant 0.000000e+00 : f32
    %160 = vector.broadcast %cst_79 : f32 to vector<8x64xf32>
    %161 = arith.maximumf %159, %160 : vector<8x64xf32>
    %cst_80 = arith.constant dense<0.000000e+00> : vector<8x32xf32>
    %162 = tpu.matmul %161, %154, %cst_80 {dimension_numbers = #tpu.dot_dimension_numbers<[1], [0], [0], [1], [0, 0, 1, 1], [], []>} : vector<8x64xf32>, vector<64x32xf32>, vector<8x32xf32> -> vector<8x32xf32>
    %163 = vector.broadcast %156 : vector<1x32xf32> to vector<8x32xf32>
    %164 = arith.addf %162, %163 : vector<8x32xf32>
    %165 = arith.addf %123, %164 : vector<8x32xf32>
    %c1 = arith.constant 1 : index
    %c0_81 = arith.constant 0 : index
    %c0_82 = arith.constant 0 : index
    %166 = vector.load %arg14[%c1, %c0_81, %c0_82] : memref<2x1x32xf32, #tpu.memory_space<vmem>>, vector<1x1x32xf32>
    %167 = vector.shape_cast %166 : vector<1x1x32xf32> to vector<1x32xf32>
    %c1_83 = arith.constant 1 : index
    %c0_84 = arith.constant 0 : index
    %c0_85 = arith.constant 0 : index
    %168 = vector.load %arg15[%c1_83, %c0_84, %c0_85] : memref<2x1x32xf32, #tpu.memory_space<vmem>>, vector<1x1x32xf32>
    %169 = vector.shape_cast %168 : vector<1x1x32xf32> to vector<1x32xf32>
    %cst_86 = arith.constant dense<0.000000e+00> : vector<8xf32>
    %170 = vector.multi_reduction <add>, %165, %cst_86 [1] : vector<8x32xf32> to vector<8xf32>
    %171 = vector.shape_cast %170 : vector<8xf32> to vector<8x1xf32>
    %cst_87 = arith.constant 3.200000e+01 : f32
    %172 = vector.broadcast %cst_87 : f32 to vector<8x1xf32>
    %173 = arith.divf %171, %172 : vector<8x1xf32>
    %174 = vector.broadcast %173 : vector<8x1xf32> to vector<8x32xf32>
    %175 = arith.subf %165, %174 : vector<8x32xf32>
    %176 = arith.mulf %175, %175 : vector<8x32xf32>
    %cst_88 = arith.constant dense<0.000000e+00> : vector<8xf32>
    %177 = vector.multi_reduction <add>, %176, %cst_88 [1] : vector<8x32xf32> to vector<8xf32>
    %178 = vector.shape_cast %177 : vector<8xf32> to vector<8x1xf32>
    %cst_89 = arith.constant 0.0322580636 : f32
    %179 = vector.broadcast %cst_89 : f32 to vector<8x1xf32>
    %180 = arith.mulf %178, %179 : vector<8x1xf32>
    %181 = math.sqrt %180 : vector<8x1xf32>
    %cst_90 = arith.constant 9.99999997E-7 : f32
    %182 = vector.broadcast %cst_90 : f32 to vector<8x1xf32>
    %183 = arith.addf %181, %182 : vector<8x1xf32>
    %184 = tpu.reciprocal %183 {approx = true} : vector<8x1xf32> -> vector<8x1xf32>
    %185 = vector.broadcast %184 : vector<8x1xf32> to vector<8x32xf32>
    %186 = arith.mulf %175, %185 : vector<8x32xf32>
    %187 = vector.broadcast %167 : vector<1x32xf32> to vector<8x32xf32>
    %188 = arith.mulf %187, %186 : vector<8x32xf32>
    %189 = vector.broadcast %169 : vector<1x32xf32> to vector<8x32xf32>
    %190 = arith.addf %188, %189 : vector<8x32xf32>
    %c1_91 = arith.constant 1 : index
    %c0_92 = arith.constant 0 : index
    %c0_93 = arith.constant 0 : index
    %191 = vector.load %arg6[%c1_91, %c0_92, %c0_93] : memref<2x32x96xf32, #tpu.memory_space<vmem>>, vector<1x32x96xf32>
    %192 = vector.shape_cast %191 : vector<1x32x96xf32> to vector<32x96xf32>
    %c1_94 = arith.constant 1 : index
    %c0_95 = arith.constant 0 : index
    %c0_96 = arith.constant 0 : index
    %193 = vector.load %arg7[%c1_94, %c0_95, %c0_96] : memref<2x1x96xf32, #tpu.memory_space<vmem>>, vector<1x1x96xf32>
    %194 = vector.shape_cast %193 : vector<1x1x96xf32> to vector<1x96xf32>
    %cst_97 = arith.constant dense<0.000000e+00> : vector<8x96xf32>
    %195 = tpu.matmul %190, %192, %cst_97 {dimension_numbers = #tpu.dot_dimension_numbers<[1], [0], [0], [1], [0, 0, 1, 1], [], []>} : vector<8x32xf32>, vector<32x96xf32>, vector<8x96xf32> -> vector<8x96xf32>
    %196 = vector.broadcast %194 : vector<1x96xf32> to vector<8x96xf32>
    %197 = arith.addf %195, %196 : vector<8x96xf32>
    %198 = vector.extract_strided_slice %197 {offsets = [0, 0], sizes = [8, 32], strides = [1, 1]} : vector<8x96xf32> to vector<8x32xf32>
    %199 = vector.extract_strided_slice %197 {offsets = [0, 32], sizes = [8, 32], strides = [1, 1]} : vector<8x96xf32> to vector<8x32xf32>
    %200 = vector.extract_strided_slice %197 {offsets = [0, 64], sizes = [8, 32], strides = [1, 1]} : vector<8x96xf32> to vector<8x32xf32>
    %201 = vector.extract_strided_slice %198 {offsets = [0, 0], sizes = [8, 8], strides = [1, 1]} : vector<8x32xf32> to vector<8x8xf32>
    %202 = vector.extract_strided_slice %199 {offsets = [0, 0], sizes = [8, 8], strides = [1, 1]} : vector<8x32xf32> to vector<8x8xf32>
    %cst_98 = arith.constant dense<0.000000e+00> : vector<8x8xf32>
    %203 = tpu.matmul %201, %202, %cst_98 {dimension_numbers = #tpu.dot_dimension_numbers<[1], [1], [0], [0], [0, 0, 1, 0], [], []>} : vector<8x8xf32>, vector<8x8xf32>, vector<8x8xf32> -> vector<8x8xf32>
    %cst_99 = arith.constant 0.353553385 : f32
    %204 = vector.broadcast %cst_99 : f32 to vector<8x8xf32>
    %205 = arith.mulf %203, %204 : vector<8x8xf32>
    %206 = arith.addf %205, %1 : vector<8x8xf32>
    %cst_100 = arith.constant dense<0xFF800000> : vector<8xf32>
    %207 = vector.multi_reduction <maximumf>, %206, %cst_100 [1] : vector<8x8xf32> to vector<8xf32>
    %208 = vector.shape_cast %207 : vector<8xf32> to vector<8x1xf32>
    %209 = vector.broadcast %208 : vector<8x1xf32> to vector<8x8xf32>
    %210 = arith.subf %206, %209 : vector<8x8xf32>
    %211 = math.exp %210 : vector<8x8xf32>
    %cst_101 = arith.constant dense<0.000000e+00> : vector<8xf32>
    %212 = vector.multi_reduction <add>, %211, %cst_101 [1] : vector<8x8xf32> to vector<8xf32>
    %213 = vector.shape_cast %212 : vector<8xf32> to vector<8x1xf32>
    %214 = tpu.reciprocal %213 {approx = true} : vector<8x1xf32> -> vector<8x1xf32>
    %215 = vector.broadcast %214 : vector<8x1xf32> to vector<8x8xf32>
    %216 = arith.mulf %211, %215 : vector<8x8xf32>
    %217 = vector.extract_strided_slice %200 {offsets = [0, 0], sizes = [8, 8], strides = [1, 1]} : vector<8x32xf32> to vector<8x8xf32>
    %cst_102 = arith.constant dense<0.000000e+00> : vector<8x8xf32>
    %218 = tpu.matmul %216, %217, %cst_102 {dimension_numbers = #tpu.dot_dimension_numbers<[1], [0], [0], [1], [0, 0, 1, 1], [], []>} : vector<8x8xf32>, vector<8x8xf32>, vector<8x8xf32> -> vector<8x8xf32>
    %219 = vector.extract_strided_slice %198 {offsets = [0, 8], sizes = [8, 8], strides = [1, 1]} : vector<8x32xf32> to vector<8x8xf32>
    %220 = vector.extract_strided_slice %199 {offsets = [0, 8], sizes = [8, 8], strides = [1, 1]} : vector<8x32xf32> to vector<8x8xf32>
    %cst_103 = arith.constant dense<0.000000e+00> : vector<8x8xf32>
    %221 = tpu.matmul %219, %220, %cst_103 {dimension_numbers = #tpu.dot_dimension_numbers<[1], [1], [0], [0], [0, 0, 1, 0], [], []>} : vector<8x8xf32>, vector<8x8xf32>, vector<8x8xf32> -> vector<8x8xf32>
    %cst_104 = arith.constant 0.353553385 : f32
    %222 = vector.broadcast %cst_104 : f32 to vector<8x8xf32>
    %223 = arith.mulf %221, %222 : vector<8x8xf32>
    %224 = arith.addf %223, %1 : vector<8x8xf32>
    %cst_105 = arith.constant dense<0xFF800000> : vector<8xf32>
    %225 = vector.multi_reduction <maximumf>, %224, %cst_105 [1] : vector<8x8xf32> to vector<8xf32>
    %226 = vector.shape_cast %225 : vector<8xf32> to vector<8x1xf32>
    %227 = vector.broadcast %226 : vector<8x1xf32> to vector<8x8xf32>
    %228 = arith.subf %224, %227 : vector<8x8xf32>
    %229 = math.exp %228 : vector<8x8xf32>
    %cst_106 = arith.constant dense<0.000000e+00> : vector<8xf32>
    %230 = vector.multi_reduction <add>, %229, %cst_106 [1] : vector<8x8xf32> to vector<8xf32>
    %231 = vector.shape_cast %230 : vector<8xf32> to vector<8x1xf32>
    %232 = tpu.reciprocal %231 {approx = true} : vector<8x1xf32> -> vector<8x1xf32>
    %233 = vector.broadcast %232 : vector<8x1xf32> to vector<8x8xf32>
    %234 = arith.mulf %229, %233 : vector<8x8xf32>
    %235 = vector.extract_strided_slice %200 {offsets = [0, 8], sizes = [8, 8], strides = [1, 1]} : vector<8x32xf32> to vector<8x8xf32>
    %cst_107 = arith.constant dense<0.000000e+00> : vector<8x8xf32>
    %236 = tpu.matmul %234, %235, %cst_107 {dimension_numbers = #tpu.dot_dimension_numbers<[1], [0], [0], [1], [0, 0, 1, 1], [], []>} : vector<8x8xf32>, vector<8x8xf32>, vector<8x8xf32> -> vector<8x8xf32>
    %237 = vector.extract_strided_slice %198 {offsets = [0, 16], sizes = [8, 8], strides = [1, 1]} : vector<8x32xf32> to vector<8x8xf32>
    %238 = vector.extract_strided_slice %199 {offsets = [0, 16], sizes = [8, 8], strides = [1, 1]} : vector<8x32xf32> to vector<8x8xf32>
    %cst_108 = arith.constant dense<0.000000e+00> : vector<8x8xf32>
    %239 = tpu.matmul %237, %238, %cst_108 {dimension_numbers = #tpu.dot_dimension_numbers<[1], [1], [0], [0], [0, 0, 1, 0], [], []>} : vector<8x8xf32>, vector<8x8xf32>, vector<8x8xf32> -> vector<8x8xf32>
    %cst_109 = arith.constant 0.353553385 : f32
    %240 = vector.broadcast %cst_109 : f32 to vector<8x8xf32>
    %241 = arith.mulf %239, %240 : vector<8x8xf32>
    %242 = arith.addf %241, %1 : vector<8x8xf32>
    %cst_110 = arith.constant dense<0xFF800000> : vector<8xf32>
    %243 = vector.multi_reduction <maximumf>, %242, %cst_110 [1] : vector<8x8xf32> to vector<8xf32>
    %244 = vector.shape_cast %243 : vector<8xf32> to vector<8x1xf32>
    %245 = vector.broadcast %244 : vector<8x1xf32> to vector<8x8xf32>
    %246 = arith.subf %242, %245 : vector<8x8xf32>
    %247 = math.exp %246 : vector<8x8xf32>
    %cst_111 = arith.constant dense<0.000000e+00> : vector<8xf32>
    %248 = vector.multi_reduction <add>, %247, %cst_111 [1] : vector<8x8xf32> to vector<8xf32>
    %249 = vector.shape_cast %248 : vector<8xf32> to vector<8x1xf32>
    %250 = tpu.reciprocal %249 {approx = true} : vector<8x1xf32> -> vector<8x1xf32>
    %251 = vector.broadcast %250 : vector<8x1xf32> to vector<8x8xf32>
    %252 = arith.mulf %247, %251 : vector<8x8xf32>
    %253 = vector.extract_strided_slice %200 {offsets = [0, 16], sizes = [8, 8], strides = [1, 1]} : vector<8x32xf32> to vector<8x8xf32>
    %cst_112 = arith.constant dense<0.000000e+00> : vector<8x8xf32>
    %254 = tpu.matmul %252, %253, %cst_112 {dimension_numbers = #tpu.dot_dimension_numbers<[1], [0], [0], [1], [0, 0, 1, 1], [], []>} : vector<8x8xf32>, vector<8x8xf32>, vector<8x8xf32> -> vector<8x8xf32>
    %255 = vector.extract_strided_slice %198 {offsets = [0, 24], sizes = [8, 8], strides = [1, 1]} : vector<8x32xf32> to vector<8x8xf32>
    %256 = vector.extract_strided_slice %199 {offsets = [0, 24], sizes = [8, 8], strides = [1, 1]} : vector<8x32xf32> to vector<8x8xf32>
    %cst_113 = arith.constant dense<0.000000e+00> : vector<8x8xf32>
    %257 = tpu.matmul %255, %256, %cst_113 {dimension_numbers = #tpu.dot_dimension_numbers<[1], [1], [0], [0], [0, 0, 1, 0], [], []>} : vector<8x8xf32>, vector<8x8xf32>, vector<8x8xf32> -> vector<8x8xf32>
    %cst_114 = arith.constant 0.353553385 : f32
    %258 = vector.broadcast %cst_114 : f32 to vector<8x8xf32>
    %259 = arith.mulf %257, %258 : vector<8x8xf32>
    %260 = arith.addf %259, %1 : vector<8x8xf32>
    %cst_115 = arith.constant dense<0xFF800000> : vector<8xf32>
    %261 = vector.multi_reduction <maximumf>, %260, %cst_115 [1] : vector<8x8xf32> to vector<8xf32>
    %262 = vector.shape_cast %261 : vector<8xf32> to vector<8x1xf32>
    %263 = vector.broadcast %262 : vector<8x1xf32> to vector<8x8xf32>
    %264 = arith.subf %260, %263 : vector<8x8xf32>
    %265 = math.exp %264 : vector<8x8xf32>
    %cst_116 = arith.constant dense<0.000000e+00> : vector<8xf32>
    %266 = vector.multi_reduction <add>, %265, %cst_116 [1] : vector<8x8xf32> to vector<8xf32>
    %267 = vector.shape_cast %266 : vector<8xf32> to vector<8x1xf32>
    %268 = tpu.reciprocal %267 {approx = true} : vector<8x1xf32> -> vector<8x1xf32>
    %269 = vector.broadcast %268 : vector<8x1xf32> to vector<8x8xf32>
    %270 = arith.mulf %265, %269 : vector<8x8xf32>
    %271 = vector.extract_strided_slice %200 {offsets = [0, 24], sizes = [8, 8], strides = [1, 1]} : vector<8x32xf32> to vector<8x8xf32>
    %cst_117 = arith.constant dense<0.000000e+00> : vector<8x8xf32>
    %272 = tpu.matmul %270, %271, %cst_117 {dimension_numbers = #tpu.dot_dimension_numbers<[1], [0], [0], [1], [0, 0, 1, 1], [], []>} : vector<8x8xf32>, vector<8x8xf32>, vector<8x8xf32> -> vector<8x8xf32>
    %273 = tpu.concatenate %218, %236, %254, %272 in 1 : vector<8x8xf32>, vector<8x8xf32>, vector<8x8xf32>, vector<8x8xf32> -> vector<8x32xf32>
    %c1_118 = arith.constant 1 : index
    %c0_119 = arith.constant 0 : index
    %c0_120 = arith.constant 0 : index
    %274 = vector.load %arg8[%c1_118, %c0_119, %c0_120] : memref<2x32x32xf32, #tpu.memory_space<vmem>>, vector<1x32x32xf32>
    %275 = vector.shape_cast %274 : vector<1x32x32xf32> to vector<32x32xf32>
    %c1_121 = arith.constant 1 : index
    %c0_122 = arith.constant 0 : index
    %c0_123 = arith.constant 0 : index
    %276 = vector.load %arg9[%c1_121, %c0_122, %c0_123] : memref<2x1x32xf32, #tpu.memory_space<vmem>>, vector<1x1x32xf32>
    %277 = vector.shape_cast %276 : vector<1x1x32xf32> to vector<1x32xf32>
    %cst_124 = arith.constant dense<0.000000e+00> : vector<8x32xf32>
    %278 = tpu.matmul %273, %275, %cst_124 {dimension_numbers = #tpu.dot_dimension_numbers<[1], [0], [0], [1], [0, 0, 1, 1], [], []>} : vector<8x32xf32>, vector<32x32xf32>, vector<8x32xf32> -> vector<8x32xf32>
    %279 = vector.broadcast %277 : vector<1x32xf32> to vector<8x32xf32>
    %280 = arith.addf %278, %279 : vector<8x32xf32>
    %281 = arith.addf %165, %280 : vector<8x32xf32>
    %c1_125 = arith.constant 1 : index
    %c0_126 = arith.constant 0 : index
    %c0_127 = arith.constant 0 : index
    %282 = vector.load %arg16[%c1_125, %c0_126, %c0_127] : memref<2x1x32xf32, #tpu.memory_space<vmem>>, vector<1x1x32xf32>
    %283 = vector.shape_cast %282 : vector<1x1x32xf32> to vector<1x32xf32>
    %c1_128 = arith.constant 1 : index
    %c0_129 = arith.constant 0 : index
    %c0_130 = arith.constant 0 : index
    %284 = vector.load %arg17[%c1_128, %c0_129, %c0_130] : memref<2x1x32xf32, #tpu.memory_space<vmem>>, vector<1x1x32xf32>
    %285 = vector.shape_cast %284 : vector<1x1x32xf32> to vector<1x32xf32>
    %cst_131 = arith.constant dense<0.000000e+00> : vector<8xf32>
    %286 = vector.multi_reduction <add>, %281, %cst_131 [1] : vector<8x32xf32> to vector<8xf32>
    %287 = vector.shape_cast %286 : vector<8xf32> to vector<8x1xf32>
    %cst_132 = arith.constant 3.200000e+01 : f32
    %288 = vector.broadcast %cst_132 : f32 to vector<8x1xf32>
    %289 = arith.divf %287, %288 : vector<8x1xf32>
    %290 = vector.broadcast %289 : vector<8x1xf32> to vector<8x32xf32>
    %291 = arith.subf %281, %290 : vector<8x32xf32>
    %292 = arith.mulf %291, %291 : vector<8x32xf32>
    %cst_133 = arith.constant dense<0.000000e+00> : vector<8xf32>
    %293 = vector.multi_reduction <add>, %292, %cst_133 [1] : vector<8x32xf32> to vector<8xf32>
    %294 = vector.shape_cast %293 : vector<8xf32> to vector<8x1xf32>
    %cst_134 = arith.constant 0.0322580636 : f32
    %295 = vector.broadcast %cst_134 : f32 to vector<8x1xf32>
    %296 = arith.mulf %294, %295 : vector<8x1xf32>
    %297 = math.sqrt %296 : vector<8x1xf32>
    %cst_135 = arith.constant 9.99999997E-7 : f32
    %298 = vector.broadcast %cst_135 : f32 to vector<8x1xf32>
    %299 = arith.addf %297, %298 : vector<8x1xf32>
    %300 = tpu.reciprocal %299 {approx = true} : vector<8x1xf32> -> vector<8x1xf32>
    %301 = vector.broadcast %300 : vector<8x1xf32> to vector<8x32xf32>
    %302 = arith.mulf %291, %301 : vector<8x32xf32>
    %303 = vector.broadcast %283 : vector<1x32xf32> to vector<8x32xf32>
    %304 = arith.mulf %303, %302 : vector<8x32xf32>
    %305 = vector.broadcast %285 : vector<1x32xf32> to vector<8x32xf32>
    %306 = arith.addf %304, %305 : vector<8x32xf32>
    %c1_136 = arith.constant 1 : index
    %c0_137 = arith.constant 0 : index
    %c0_138 = arith.constant 0 : index
    %307 = vector.load %arg10[%c1_136, %c0_137, %c0_138] : memref<2x32x64xf32, #tpu.memory_space<vmem>>, vector<1x32x64xf32>
    %308 = vector.shape_cast %307 : vector<1x32x64xf32> to vector<32x64xf32>
    %c1_139 = arith.constant 1 : index
    %c0_140 = arith.constant 0 : index
    %c0_141 = arith.constant 0 : index
    %309 = vector.load %arg11[%c1_139, %c0_140, %c0_141] : memref<2x1x64xf32, #tpu.memory_space<vmem>>, vector<1x1x64xf32>
    %310 = vector.shape_cast %309 : vector<1x1x64xf32> to vector<1x64xf32>
    %c1_142 = arith.constant 1 : index
    %c0_143 = arith.constant 0 : index
    %c0_144 = arith.constant 0 : index
    %311 = vector.load %arg12[%c1_142, %c0_143, %c0_144] : memref<2x64x32xf32, #tpu.memory_space<vmem>>, vector<1x64x32xf32>
    %312 = vector.shape_cast %311 : vector<1x64x32xf32> to vector<64x32xf32>
    %c1_145 = arith.constant 1 : index
    %c0_146 = arith.constant 0 : index
    %c0_147 = arith.constant 0 : index
    %313 = vector.load %arg13[%c1_145, %c0_146, %c0_147] : memref<2x1x32xf32, #tpu.memory_space<vmem>>, vector<1x1x32xf32>
    %314 = vector.shape_cast %313 : vector<1x1x32xf32> to vector<1x32xf32>
    %cst_148 = arith.constant dense<0.000000e+00> : vector<8x64xf32>
    %315 = tpu.matmul %306, %308, %cst_148 {dimension_numbers = #tpu.dot_dimension_numbers<[1], [0], [0], [1], [0, 0, 1, 1], [], []>} : vector<8x32xf32>, vector<32x64xf32>, vector<8x64xf32> -> vector<8x64xf32>
    %316 = vector.broadcast %310 : vector<1x64xf32> to vector<8x64xf32>
    %317 = arith.addf %315, %316 : vector<8x64xf32>
    %cst_149 = arith.constant 0.000000e+00 : f32
    %318 = vector.broadcast %cst_149 : f32 to vector<8x64xf32>
    %319 = arith.maximumf %317, %318 : vector<8x64xf32>
    %cst_150 = arith.constant dense<0.000000e+00> : vector<8x32xf32>
    %320 = tpu.matmul %319, %312, %cst_150 {dimension_numbers = #tpu.dot_dimension_numbers<[1], [0], [0], [1], [0, 0, 1, 1], [], []>} : vector<8x64xf32>, vector<64x32xf32>, vector<8x32xf32> -> vector<8x32xf32>
    %321 = vector.broadcast %314 : vector<1x32xf32> to vector<8x32xf32>
    %322 = arith.addf %320, %321 : vector<8x32xf32>
    %323 = arith.addf %281, %322 : vector<8x32xf32>
    %c0_151 = arith.constant 0 : index
    %c0_152 = arith.constant 0 : index
    %324 = vector.load %arg38[%c0_151, %c0_152] : memref<1x32xf32, #tpu.memory_space<vmem>>, vector<1x32xf32>
    %c0_153 = arith.constant 0 : index
    %c0_154 = arith.constant 0 : index
    %325 = vector.load %arg39[%c0_153, %c0_154] : memref<1x32xf32, #tpu.memory_space<vmem>>, vector<1x32xf32>
    %cst_155 = arith.constant dense<0.000000e+00> : vector<8xf32>
    %326 = vector.multi_reduction <add>, %323, %cst_155 [1] : vector<8x32xf32> to vector<8xf32>
    %327 = vector.shape_cast %326 : vector<8xf32> to vector<8x1xf32>
    %cst_156 = arith.constant 3.200000e+01 : f32
    %328 = vector.broadcast %cst_156 : f32 to vector<8x1xf32>
    %329 = arith.divf %327, %328 : vector<8x1xf32>
    %330 = vector.broadcast %329 : vector<8x1xf32> to vector<8x32xf32>
    %331 = arith.subf %323, %330 : vector<8x32xf32>
    %332 = arith.mulf %331, %331 : vector<8x32xf32>
    %cst_157 = arith.constant dense<0.000000e+00> : vector<8xf32>
    %333 = vector.multi_reduction <add>, %332, %cst_157 [1] : vector<8x32xf32> to vector<8xf32>
    %334 = vector.shape_cast %333 : vector<8xf32> to vector<8x1xf32>
    %cst_158 = arith.constant 0.0322580636 : f32
    %335 = vector.broadcast %cst_158 : f32 to vector<8x1xf32>
    %336 = arith.mulf %334, %335 : vector<8x1xf32>
    %337 = math.sqrt %336 : vector<8x1xf32>
    %cst_159 = arith.constant 9.99999997E-7 : f32
    %338 = vector.broadcast %cst_159 : f32 to vector<8x1xf32>
    %339 = arith.addf %337, %338 : vector<8x1xf32>
    %340 = tpu.reciprocal %339 {approx = true} : vector<8x1xf32> -> vector<8x1xf32>
    %341 = vector.broadcast %340 : vector<8x1xf32> to vector<8x32xf32>
    %342 = arith.mulf %331, %341 : vector<8x32xf32>
    %343 = vector.broadcast %324 : vector<1x32xf32> to vector<8x32xf32>
    %344 = arith.mulf %343, %342 : vector<8x32xf32>
    %345 = vector.broadcast %325 : vector<1x32xf32> to vector<8x32xf32>
    %346 = arith.addf %344, %345 : vector<8x32xf32>
    %c0_160 = arith.constant 0 : index
    %c0_161 = arith.constant 0 : index
    %c0_162 = arith.constant 0 : index
    %347 = vector.load %arg2[%c0_160, %c0_161, %c0_162] : memref<1x8x32xf32, #tpu.memory_space<vmem>>, vector<1x8x32xf32>
    %348 = vector.shape_cast %347 : vector<1x8x32xf32> to vector<8x32xf32>
    %c0_163 = arith.constant 0 : index
    %c0_164 = arith.constant 0 : index
    %c0_165 = arith.constant 0 : index
    %349 = vector.load %arg32[%c0_163, %c0_164, %c0_165] : memref<2x1x32xf32, #tpu.memory_space<vmem>>, vector<1x1x32xf32>
    %350 = vector.shape_cast %349 : vector<1x1x32xf32> to vector<1x32xf32>
    %c0_166 = arith.constant 0 : index
    %c0_167 = arith.constant 0 : index
    %c0_168 = arith.constant 0 : index
    %351 = vector.load %arg33[%c0_166, %c0_167, %c0_168] : memref<2x1x32xf32, #tpu.memory_space<vmem>>, vector<1x1x32xf32>
    %352 = vector.shape_cast %351 : vector<1x1x32xf32> to vector<1x32xf32>
    %cst_169 = arith.constant dense<0.000000e+00> : vector<8xf32>
    %353 = vector.multi_reduction <add>, %348, %cst_169 [1] : vector<8x32xf32> to vector<8xf32>
    %354 = vector.shape_cast %353 : vector<8xf32> to vector<8x1xf32>
    %cst_170 = arith.constant 3.200000e+01 : f32
    %355 = vector.broadcast %cst_170 : f32 to vector<8x1xf32>
    %356 = arith.divf %354, %355 : vector<8x1xf32>
    %357 = vector.broadcast %356 : vector<8x1xf32> to vector<8x32xf32>
    %358 = arith.subf %348, %357 : vector<8x32xf32>
    %359 = arith.mulf %358, %358 : vector<8x32xf32>
    %cst_171 = arith.constant dense<0.000000e+00> : vector<8xf32>
    %360 = vector.multi_reduction <add>, %359, %cst_171 [1] : vector<8x32xf32> to vector<8xf32>
    %361 = vector.shape_cast %360 : vector<8xf32> to vector<8x1xf32>
    %cst_172 = arith.constant 0.0322580636 : f32
    %362 = vector.broadcast %cst_172 : f32 to vector<8x1xf32>
    %363 = arith.mulf %361, %362 : vector<8x1xf32>
    %364 = math.sqrt %363 : vector<8x1xf32>
    %cst_173 = arith.constant 9.99999997E-7 : f32
    %365 = vector.broadcast %cst_173 : f32 to vector<8x1xf32>
    %366 = arith.addf %364, %365 : vector<8x1xf32>
    %367 = tpu.reciprocal %366 {approx = true} : vector<8x1xf32> -> vector<8x1xf32>
    %368 = vector.broadcast %367 : vector<8x1xf32> to vector<8x32xf32>
    %369 = arith.mulf %358, %368 : vector<8x32xf32>
    %370 = vector.broadcast %350 : vector<1x32xf32> to vector<8x32xf32>
    %371 = arith.mulf %370, %369 : vector<8x32xf32>
    %372 = vector.broadcast %352 : vector<1x32xf32> to vector<8x32xf32>
    %373 = arith.addf %371, %372 : vector<8x32xf32>
    %c0_174 = arith.constant 0 : index
    %c0_175 = arith.constant 0 : index
    %c0_176 = arith.constant 0 : index
    %374 = vector.load %arg18[%c0_174, %c0_175, %c0_176] : memref<2x32x96xf32, #tpu.memory_space<vmem>>, vector<1x32x96xf32>
    %375 = vector.shape_cast %374 : vector<1x32x96xf32> to vector<32x96xf32>
    %c0_177 = arith.constant 0 : index
    %c0_178 = arith.constant 0 : index
    %c0_179 = arith.constant 0 : index
    %376 = vector.load %arg19[%c0_177, %c0_178, %c0_179] : memref<2x1x96xf32, #tpu.memory_space<vmem>>, vector<1x1x96xf32>
    %377 = vector.shape_cast %376 : vector<1x1x96xf32> to vector<1x96xf32>
    %cst_180 = arith.constant dense<0.000000e+00> : vector<8x96xf32>
    %378 = tpu.matmul %373, %375, %cst_180 {dimension_numbers = #tpu.dot_dimension_numbers<[1], [0], [0], [1], [0, 0, 1, 1], [], []>} : vector<8x32xf32>, vector<32x96xf32>, vector<8x96xf32> -> vector<8x96xf32>
    %379 = vector.broadcast %377 : vector<1x96xf32> to vector<8x96xf32>
    %380 = arith.addf %378, %379 : vector<8x96xf32>
    %381 = vector.extract_strided_slice %380 {offsets = [0, 0], sizes = [8, 32], strides = [1, 1]} : vector<8x96xf32> to vector<8x32xf32>
    %382 = vector.extract_strided_slice %380 {offsets = [0, 32], sizes = [8, 32], strides = [1, 1]} : vector<8x96xf32> to vector<8x32xf32>
    %383 = vector.extract_strided_slice %380 {offsets = [0, 64], sizes = [8, 32], strides = [1, 1]} : vector<8x96xf32> to vector<8x32xf32>
    %384 = vector.extract_strided_slice %381 {offsets = [0, 0], sizes = [8, 8], strides = [1, 1]} : vector<8x32xf32> to vector<8x8xf32>
    %385 = vector.extract_strided_slice %382 {offsets = [0, 0], sizes = [8, 8], strides = [1, 1]} : vector<8x32xf32> to vector<8x8xf32>
    %cst_181 = arith.constant dense<0.000000e+00> : vector<8x8xf32>
    %386 = tpu.matmul %384, %385, %cst_181 {dimension_numbers = #tpu.dot_dimension_numbers<[1], [1], [0], [0], [0, 0, 1, 0], [], []>} : vector<8x8xf32>, vector<8x8xf32>, vector<8x8xf32> -> vector<8x8xf32>
    %cst_182 = arith.constant 0.353553385 : f32
    %387 = vector.broadcast %cst_182 : f32 to vector<8x8xf32>
    %388 = arith.mulf %386, %387 : vector<8x8xf32>
    %389 = arith.addf %388, %5 : vector<8x8xf32>
    %cst_183 = arith.constant dense<0xFF800000> : vector<8xf32>
    %390 = vector.multi_reduction <maximumf>, %389, %cst_183 [1] : vector<8x8xf32> to vector<8xf32>
    %391 = vector.shape_cast %390 : vector<8xf32> to vector<8x1xf32>
    %392 = vector.broadcast %391 : vector<8x1xf32> to vector<8x8xf32>
    %393 = arith.subf %389, %392 : vector<8x8xf32>
    %394 = math.exp %393 : vector<8x8xf32>
    %cst_184 = arith.constant dense<0.000000e+00> : vector<8xf32>
    %395 = vector.multi_reduction <add>, %394, %cst_184 [1] : vector<8x8xf32> to vector<8xf32>
    %396 = vector.shape_cast %395 : vector<8xf32> to vector<8x1xf32>
    %397 = tpu.reciprocal %396 {approx = true} : vector<8x1xf32> -> vector<8x1xf32>
    %398 = vector.broadcast %397 : vector<8x1xf32> to vector<8x8xf32>
    %399 = arith.mulf %394, %398 : vector<8x8xf32>
    %400 = vector.extract_strided_slice %383 {offsets = [0, 0], sizes = [8, 8], strides = [1, 1]} : vector<8x32xf32> to vector<8x8xf32>
    %cst_185 = arith.constant dense<0.000000e+00> : vector<8x8xf32>
    %401 = tpu.matmul %399, %400, %cst_185 {dimension_numbers = #tpu.dot_dimension_numbers<[1], [0], [0], [1], [0, 0, 1, 1], [], []>} : vector<8x8xf32>, vector<8x8xf32>, vector<8x8xf32> -> vector<8x8xf32>
    %402 = vector.extract_strided_slice %381 {offsets = [0, 8], sizes = [8, 8], strides = [1, 1]} : vector<8x32xf32> to vector<8x8xf32>
    %403 = vector.extract_strided_slice %382 {offsets = [0, 8], sizes = [8, 8], strides = [1, 1]} : vector<8x32xf32> to vector<8x8xf32>
    %cst_186 = arith.constant dense<0.000000e+00> : vector<8x8xf32>
    %404 = tpu.matmul %402, %403, %cst_186 {dimension_numbers = #tpu.dot_dimension_numbers<[1], [1], [0], [0], [0, 0, 1, 0], [], []>} : vector<8x8xf32>, vector<8x8xf32>, vector<8x8xf32> -> vector<8x8xf32>
    %cst_187 = arith.constant 0.353553385 : f32
    %405 = vector.broadcast %cst_187 : f32 to vector<8x8xf32>
    %406 = arith.mulf %404, %405 : vector<8x8xf32>
    %407 = arith.addf %406, %5 : vector<8x8xf32>
    %cst_188 = arith.constant dense<0xFF800000> : vector<8xf32>
    %408 = vector.multi_reduction <maximumf>, %407, %cst_188 [1] : vector<8x8xf32> to vector<8xf32>
    %409 = vector.shape_cast %408 : vector<8xf32> to vector<8x1xf32>
    %410 = vector.broadcast %409 : vector<8x1xf32> to vector<8x8xf32>
    %411 = arith.subf %407, %410 : vector<8x8xf32>
    %412 = math.exp %411 : vector<8x8xf32>
    %cst_189 = arith.constant dense<0.000000e+00> : vector<8xf32>
    %413 = vector.multi_reduction <add>, %412, %cst_189 [1] : vector<8x8xf32> to vector<8xf32>
    %414 = vector.shape_cast %413 : vector<8xf32> to vector<8x1xf32>
    %415 = tpu.reciprocal %414 {approx = true} : vector<8x1xf32> -> vector<8x1xf32>
    %416 = vector.broadcast %415 : vector<8x1xf32> to vector<8x8xf32>
    %417 = arith.mulf %412, %416 : vector<8x8xf32>
    %418 = vector.extract_strided_slice %383 {offsets = [0, 8], sizes = [8, 8], strides = [1, 1]} : vector<8x32xf32> to vector<8x8xf32>
    %cst_190 = arith.constant dense<0.000000e+00> : vector<8x8xf32>
    %419 = tpu.matmul %417, %418, %cst_190 {dimension_numbers = #tpu.dot_dimension_numbers<[1], [0], [0], [1], [0, 0, 1, 1], [], []>} : vector<8x8xf32>, vector<8x8xf32>, vector<8x8xf32> -> vector<8x8xf32>
    %420 = vector.extract_strided_slice %381 {offsets = [0, 16], sizes = [8, 8], strides = [1, 1]} : vector<8x32xf32> to vector<8x8xf32>
    %421 = vector.extract_strided_slice %382 {offsets = [0, 16], sizes = [8, 8], strides = [1, 1]} : vector<8x32xf32> to vector<8x8xf32>
    %cst_191 = arith.constant dense<0.000000e+00> : vector<8x8xf32>
    %422 = tpu.matmul %420, %421, %cst_191 {dimension_numbers = #tpu.dot_dimension_numbers<[1], [1], [0], [0], [0, 0, 1, 0], [], []>} : vector<8x8xf32>, vector<8x8xf32>, vector<8x8xf32> -> vector<8x8xf32>
    %cst_192 = arith.constant 0.353553385 : f32
    %423 = vector.broadcast %cst_192 : f32 to vector<8x8xf32>
    %424 = arith.mulf %422, %423 : vector<8x8xf32>
    %425 = arith.addf %424, %5 : vector<8x8xf32>
    %cst_193 = arith.constant dense<0xFF800000> : vector<8xf32>
    %426 = vector.multi_reduction <maximumf>, %425, %cst_193 [1] : vector<8x8xf32> to vector<8xf32>
    %427 = vector.shape_cast %426 : vector<8xf32> to vector<8x1xf32>
    %428 = vector.broadcast %427 : vector<8x1xf32> to vector<8x8xf32>
    %429 = arith.subf %425, %428 : vector<8x8xf32>
    %430 = math.exp %429 : vector<8x8xf32>
    %cst_194 = arith.constant dense<0.000000e+00> : vector<8xf32>
    %431 = vector.multi_reduction <add>, %430, %cst_194 [1] : vector<8x8xf32> to vector<8xf32>
    %432 = vector.shape_cast %431 : vector<8xf32> to vector<8x1xf32>
    %433 = tpu.reciprocal %432 {approx = true} : vector<8x1xf32> -> vector<8x1xf32>
    %434 = vector.broadcast %433 : vector<8x1xf32> to vector<8x8xf32>
    %435 = arith.mulf %430, %434 : vector<8x8xf32>
    %436 = vector.extract_strided_slice %383 {offsets = [0, 16], sizes = [8, 8], strides = [1, 1]} : vector<8x32xf32> to vector<8x8xf32>
    %cst_195 = arith.constant dense<0.000000e+00> : vector<8x8xf32>
    %437 = tpu.matmul %435, %436, %cst_195 {dimension_numbers = #tpu.dot_dimension_numbers<[1], [0], [0], [1], [0, 0, 1, 1], [], []>} : vector<8x8xf32>, vector<8x8xf32>, vector<8x8xf32> -> vector<8x8xf32>
    %438 = vector.extract_strided_slice %381 {offsets = [0, 24], sizes = [8, 8], strides = [1, 1]} : vector<8x32xf32> to vector<8x8xf32>
    %439 = vector.extract_strided_slice %382 {offsets = [0, 24], sizes = [8, 8], strides = [1, 1]} : vector<8x32xf32> to vector<8x8xf32>
    %cst_196 = arith.constant dense<0.000000e+00> : vector<8x8xf32>
    %440 = tpu.matmul %438, %439, %cst_196 {dimension_numbers = #tpu.dot_dimension_numbers<[1], [1], [0], [0], [0, 0, 1, 0], [], []>} : vector<8x8xf32>, vector<8x8xf32>, vector<8x8xf32> -> vector<8x8xf32>
    %cst_197 = arith.constant 0.353553385 : f32
    %441 = vector.broadcast %cst_197 : f32 to vector<8x8xf32>
    %442 = arith.mulf %440, %441 : vector<8x8xf32>
    %443 = arith.addf %442, %5 : vector<8x8xf32>
    %cst_198 = arith.constant dense<0xFF800000> : vector<8xf32>
    %444 = vector.multi_reduction <maximumf>, %443, %cst_198 [1] : vector<8x8xf32> to vector<8xf32>
    %445 = vector.shape_cast %444 : vector<8xf32> to vector<8x1xf32>
    %446 = vector.broadcast %445 : vector<8x1xf32> to vector<8x8xf32>
    %447 = arith.subf %443, %446 : vector<8x8xf32>
    %448 = math.exp %447 : vector<8x8xf32>
    %cst_199 = arith.constant dense<0.000000e+00> : vector<8xf32>
    %449 = vector.multi_reduction <add>, %448, %cst_199 [1] : vector<8x8xf32> to vector<8xf32>
    %450 = vector.shape_cast %449 : vector<8xf32> to vector<8x1xf32>
    %451 = tpu.reciprocal %450 {approx = true} : vector<8x1xf32> -> vector<8x1xf32>
    %452 = vector.broadcast %451 : vector<8x1xf32> to vector<8x8xf32>
    %453 = arith.mulf %448, %452 : vector<8x8xf32>
    %454 = vector.extract_strided_slice %383 {offsets = [0, 24], sizes = [8, 8], strides = [1, 1]} : vector<8x32xf32> to vector<8x8xf32>
    %cst_200 = arith.constant dense<0.000000e+00> : vector<8x8xf32>
    %455 = tpu.matmul %453, %454, %cst_200 {dimension_numbers = #tpu.dot_dimension_numbers<[1], [0], [0], [1], [0, 0, 1, 1], [], []>} : vector<8x8xf32>, vector<8x8xf32>, vector<8x8xf32> -> vector<8x8xf32>
    %456 = tpu.concatenate %401, %419, %437, %455 in 1 : vector<8x8xf32>, vector<8x8xf32>, vector<8x8xf32>, vector<8x8xf32> -> vector<8x32xf32>
    %c0_201 = arith.constant 0 : index
    %c0_202 = arith.constant 0 : index
    %c0_203 = arith.constant 0 : index
    %457 = vector.load %arg20[%c0_201, %c0_202, %c0_203] : memref<2x32x32xf32, #tpu.memory_space<vmem>>, vector<1x32x32xf32>
    %458 = vector.shape_cast %457 : vector<1x32x32xf32> to vector<32x32xf32>
    %c0_204 = arith.constant 0 : index
    %c0_205 = arith.constant 0 : index
    %c0_206 = arith.constant 0 : index
    %459 = vector.load %arg21[%c0_204, %c0_205, %c0_206] : memref<2x1x32xf32, #tpu.memory_space<vmem>>, vector<1x1x32xf32>
    %460 = vector.shape_cast %459 : vector<1x1x32xf32> to vector<1x32xf32>
    %cst_207 = arith.constant dense<0.000000e+00> : vector<8x32xf32>
    %461 = tpu.matmul %456, %458, %cst_207 {dimension_numbers = #tpu.dot_dimension_numbers<[1], [0], [0], [1], [0, 0, 1, 1], [], []>} : vector<8x32xf32>, vector<32x32xf32>, vector<8x32xf32> -> vector<8x32xf32>
    %462 = vector.broadcast %460 : vector<1x32xf32> to vector<8x32xf32>
    %463 = arith.addf %461, %462 : vector<8x32xf32>
    %464 = arith.addf %348, %463 : vector<8x32xf32>
    %c0_208 = arith.constant 0 : index
    %c0_209 = arith.constant 0 : index
    %c0_210 = arith.constant 0 : index
    %465 = vector.load %arg34[%c0_208, %c0_209, %c0_210] : memref<2x1x32xf32, #tpu.memory_space<vmem>>, vector<1x1x32xf32>
    %466 = vector.shape_cast %465 : vector<1x1x32xf32> to vector<1x32xf32>
    %c0_211 = arith.constant 0 : index
    %c0_212 = arith.constant 0 : index
    %c0_213 = arith.constant 0 : index
    %467 = vector.load %arg35[%c0_211, %c0_212, %c0_213] : memref<2x1x32xf32, #tpu.memory_space<vmem>>, vector<1x1x32xf32>
    %468 = vector.shape_cast %467 : vector<1x1x32xf32> to vector<1x32xf32>
    %cst_214 = arith.constant dense<0.000000e+00> : vector<8xf32>
    %469 = vector.multi_reduction <add>, %464, %cst_214 [1] : vector<8x32xf32> to vector<8xf32>
    %470 = vector.shape_cast %469 : vector<8xf32> to vector<8x1xf32>
    %cst_215 = arith.constant 3.200000e+01 : f32
    %471 = vector.broadcast %cst_215 : f32 to vector<8x1xf32>
    %472 = arith.divf %470, %471 : vector<8x1xf32>
    %473 = vector.broadcast %472 : vector<8x1xf32> to vector<8x32xf32>
    %474 = arith.subf %464, %473 : vector<8x32xf32>
    %475 = arith.mulf %474, %474 : vector<8x32xf32>
    %cst_216 = arith.constant dense<0.000000e+00> : vector<8xf32>
    %476 = vector.multi_reduction <add>, %475, %cst_216 [1] : vector<8x32xf32> to vector<8xf32>
    %477 = vector.shape_cast %476 : vector<8xf32> to vector<8x1xf32>
    %cst_217 = arith.constant 0.0322580636 : f32
    %478 = vector.broadcast %cst_217 : f32 to vector<8x1xf32>
    %479 = arith.mulf %477, %478 : vector<8x1xf32>
    %480 = math.sqrt %479 : vector<8x1xf32>
    %cst_218 = arith.constant 9.99999997E-7 : f32
    %481 = vector.broadcast %cst_218 : f32 to vector<8x1xf32>
    %482 = arith.addf %480, %481 : vector<8x1xf32>
    %483 = tpu.reciprocal %482 {approx = true} : vector<8x1xf32> -> vector<8x1xf32>
    %484 = vector.broadcast %483 : vector<8x1xf32> to vector<8x32xf32>
    %485 = arith.mulf %474, %484 : vector<8x32xf32>
    %486 = vector.broadcast %466 : vector<1x32xf32> to vector<8x32xf32>
    %487 = arith.mulf %486, %485 : vector<8x32xf32>
    %488 = vector.broadcast %468 : vector<1x32xf32> to vector<8x32xf32>
    %489 = arith.addf %487, %488 : vector<8x32xf32>
    %c0_219 = arith.constant 0 : index
    %c0_220 = arith.constant 0 : index
    %c0_221 = arith.constant 0 : index
    %490 = vector.load %arg22[%c0_219, %c0_220, %c0_221] : memref<2x32x32xf32, #tpu.memory_space<vmem>>, vector<1x32x32xf32>
    %491 = vector.shape_cast %490 : vector<1x32x32xf32> to vector<32x32xf32>
    %c0_222 = arith.constant 0 : index
    %c0_223 = arith.constant 0 : index
    %c0_224 = arith.constant 0 : index
    %492 = vector.load %arg23[%c0_222, %c0_223, %c0_224] : memref<2x1x32xf32, #tpu.memory_space<vmem>>, vector<1x1x32xf32>
    %493 = vector.shape_cast %492 : vector<1x1x32xf32> to vector<1x32xf32>
    %cst_225 = arith.constant dense<0.000000e+00> : vector<8x32xf32>
    %494 = tpu.matmul %489, %491, %cst_225 {dimension_numbers = #tpu.dot_dimension_numbers<[1], [0], [0], [1], [0, 0, 1, 1], [], []>} : vector<8x32xf32>, vector<32x32xf32>, vector<8x32xf32> -> vector<8x32xf32>
    %495 = vector.broadcast %493 : vector<1x32xf32> to vector<8x32xf32>
    %496 = arith.addf %494, %495 : vector<8x32xf32>
    %c0_226 = arith.constant 0 : index
    %c0_227 = arith.constant 0 : index
    %c0_228 = arith.constant 0 : index
    %497 = vector.load %arg24[%c0_226, %c0_227, %c0_228] : memref<2x32x64xf32, #tpu.memory_space<vmem>>, vector<1x32x64xf32>
    %498 = vector.shape_cast %497 : vector<1x32x64xf32> to vector<32x64xf32>
    %c0_229 = arith.constant 0 : index
    %c0_230 = arith.constant 0 : index
    %c0_231 = arith.constant 0 : index
    %499 = vector.load %arg25[%c0_229, %c0_230, %c0_231] : memref<2x1x64xf32, #tpu.memory_space<vmem>>, vector<1x1x64xf32>
    %500 = vector.shape_cast %499 : vector<1x1x64xf32> to vector<1x64xf32>
    %cst_232 = arith.constant dense<0.000000e+00> : vector<8x64xf32>
    %501 = tpu.matmul %346, %498, %cst_232 {dimension_numbers = #tpu.dot_dimension_numbers<[1], [0], [0], [1], [0, 0, 1, 1], [], []>} : vector<8x32xf32>, vector<32x64xf32>, vector<8x64xf32> -> vector<8x64xf32>
    %502 = vector.broadcast %500 : vector<1x64xf32> to vector<8x64xf32>
    %503 = arith.addf %501, %502 : vector<8x64xf32>
    %504 = vector.extract_strided_slice %503 {offsets = [0, 0], sizes = [8, 32], strides = [1, 1]} : vector<8x64xf32> to vector<8x32xf32>
    %505 = vector.extract_strided_slice %503 {offsets = [0, 32], sizes = [8, 32], strides = [1, 1]} : vector<8x64xf32> to vector<8x32xf32>
    %506 = vector.extract_strided_slice %496 {offsets = [0, 0], sizes = [8, 8], strides = [1, 1]} : vector<8x32xf32> to vector<8x8xf32>
    %507 = vector.extract_strided_slice %504 {offsets = [0, 0], sizes = [8, 8], strides = [1, 1]} : vector<8x32xf32> to vector<8x8xf32>
    %cst_233 = arith.constant dense<0.000000e+00> : vector<8x8xf32>
    %508 = tpu.matmul %506, %507, %cst_233 {dimension_numbers = #tpu.dot_dimension_numbers<[1], [1], [0], [0], [0, 0, 1, 0], [], []>} : vector<8x8xf32>, vector<8x8xf32>, vector<8x8xf32> -> vector<8x8xf32>
    %cst_234 = arith.constant 0.353553385 : f32
    %509 = vector.broadcast %cst_234 : f32 to vector<8x8xf32>
    %510 = arith.mulf %508, %509 : vector<8x8xf32>
    %511 = arith.addf %510, %3 : vector<8x8xf32>
    %cst_235 = arith.constant dense<0xFF800000> : vector<8xf32>
    %512 = vector.multi_reduction <maximumf>, %511, %cst_235 [1] : vector<8x8xf32> to vector<8xf32>
    %513 = vector.shape_cast %512 : vector<8xf32> to vector<8x1xf32>
    %514 = vector.broadcast %513 : vector<8x1xf32> to vector<8x8xf32>
    %515 = arith.subf %511, %514 : vector<8x8xf32>
    %516 = math.exp %515 : vector<8x8xf32>
    %cst_236 = arith.constant dense<0.000000e+00> : vector<8xf32>
    %517 = vector.multi_reduction <add>, %516, %cst_236 [1] : vector<8x8xf32> to vector<8xf32>
    %518 = vector.shape_cast %517 : vector<8xf32> to vector<8x1xf32>
    %519 = tpu.reciprocal %518 {approx = true} : vector<8x1xf32> -> vector<8x1xf32>
    %520 = vector.broadcast %519 : vector<8x1xf32> to vector<8x8xf32>
    %521 = arith.mulf %516, %520 : vector<8x8xf32>
    %522 = vector.extract_strided_slice %505 {offsets = [0, 0], sizes = [8, 8], strides = [1, 1]} : vector<8x32xf32> to vector<8x8xf32>
    %cst_237 = arith.constant dense<0.000000e+00> : vector<8x8xf32>
    %523 = tpu.matmul %521, %522, %cst_237 {dimension_numbers = #tpu.dot_dimension_numbers<[1], [0], [0], [1], [0, 0, 1, 1], [], []>} : vector<8x8xf32>, vector<8x8xf32>, vector<8x8xf32> -> vector<8x8xf32>
    %524 = vector.extract_strided_slice %496 {offsets = [0, 8], sizes = [8, 8], strides = [1, 1]} : vector<8x32xf32> to vector<8x8xf32>
    %525 = vector.extract_strided_slice %504 {offsets = [0, 8], sizes = [8, 8], strides = [1, 1]} : vector<8x32xf32> to vector<8x8xf32>
    %cst_238 = arith.constant dense<0.000000e+00> : vector<8x8xf32>
    %526 = tpu.matmul %524, %525, %cst_238 {dimension_numbers = #tpu.dot_dimension_numbers<[1], [1], [0], [0], [0, 0, 1, 0], [], []>} : vector<8x8xf32>, vector<8x8xf32>, vector<8x8xf32> -> vector<8x8xf32>
    %cst_239 = arith.constant 0.353553385 : f32
    %527 = vector.broadcast %cst_239 : f32 to vector<8x8xf32>
    %528 = arith.mulf %526, %527 : vector<8x8xf32>
    %529 = arith.addf %528, %3 : vector<8x8xf32>
    %cst_240 = arith.constant dense<0xFF800000> : vector<8xf32>
    %530 = vector.multi_reduction <maximumf>, %529, %cst_240 [1] : vector<8x8xf32> to vector<8xf32>
    %531 = vector.shape_cast %530 : vector<8xf32> to vector<8x1xf32>
    %532 = vector.broadcast %531 : vector<8x1xf32> to vector<8x8xf32>
    %533 = arith.subf %529, %532 : vector<8x8xf32>
    %534 = math.exp %533 : vector<8x8xf32>
    %cst_241 = arith.constant dense<0.000000e+00> : vector<8xf32>
    %535 = vector.multi_reduction <add>, %534, %cst_241 [1] : vector<8x8xf32> to vector<8xf32>
    %536 = vector.shape_cast %535 : vector<8xf32> to vector<8x1xf32>
    %537 = tpu.reciprocal %536 {approx = true} : vector<8x1xf32> -> vector<8x1xf32>
    %538 = vector.broadcast %537 : vector<8x1xf32> to vector<8x8xf32>
    %539 = arith.mulf %534, %538 : vector<8x8xf32>
    %540 = vector.extract_strided_slice %505 {offsets = [0, 8], sizes = [8, 8], strides = [1, 1]} : vector<8x32xf32> to vector<8x8xf32>
    %cst_242 = arith.constant dense<0.000000e+00> : vector<8x8xf32>
    %541 = tpu.matmul %539, %540, %cst_242 {dimension_numbers = #tpu.dot_dimension_numbers<[1], [0], [0], [1], [0, 0, 1, 1], [], []>} : vector<8x8xf32>, vector<8x8xf32>, vector<8x8xf32> -> vector<8x8xf32>
    %542 = vector.extract_strided_slice %496 {offsets = [0, 16], sizes = [8, 8], strides = [1, 1]} : vector<8x32xf32> to vector<8x8xf32>
    %543 = vector.extract_strided_slice %504 {offsets = [0, 16], sizes = [8, 8], strides = [1, 1]} : vector<8x32xf32> to vector<8x8xf32>
    %cst_243 = arith.constant dense<0.000000e+00> : vector<8x8xf32>
    %544 = tpu.matmul %542, %543, %cst_243 {dimension_numbers = #tpu.dot_dimension_numbers<[1], [1], [0], [0], [0, 0, 1, 0], [], []>} : vector<8x8xf32>, vector<8x8xf32>, vector<8x8xf32> -> vector<8x8xf32>
    %cst_244 = arith.constant 0.353553385 : f32
    %545 = vector.broadcast %cst_244 : f32 to vector<8x8xf32>
    %546 = arith.mulf %544, %545 : vector<8x8xf32>
    %547 = arith.addf %546, %3 : vector<8x8xf32>
    %cst_245 = arith.constant dense<0xFF800000> : vector<8xf32>
    %548 = vector.multi_reduction <maximumf>, %547, %cst_245 [1] : vector<8x8xf32> to vector<8xf32>
    %549 = vector.shape_cast %548 : vector<8xf32> to vector<8x1xf32>
    %550 = vector.broadcast %549 : vector<8x1xf32> to vector<8x8xf32>
    %551 = arith.subf %547, %550 : vector<8x8xf32>
    %552 = math.exp %551 : vector<8x8xf32>
    %cst_246 = arith.constant dense<0.000000e+00> : vector<8xf32>
    %553 = vector.multi_reduction <add>, %552, %cst_246 [1] : vector<8x8xf32> to vector<8xf32>
    %554 = vector.shape_cast %553 : vector<8xf32> to vector<8x1xf32>
    %555 = tpu.reciprocal %554 {approx = true} : vector<8x1xf32> -> vector<8x1xf32>
    %556 = vector.broadcast %555 : vector<8x1xf32> to vector<8x8xf32>
    %557 = arith.mulf %552, %556 : vector<8x8xf32>
    %558 = vector.extract_strided_slice %505 {offsets = [0, 16], sizes = [8, 8], strides = [1, 1]} : vector<8x32xf32> to vector<8x8xf32>
    %cst_247 = arith.constant dense<0.000000e+00> : vector<8x8xf32>
    %559 = tpu.matmul %557, %558, %cst_247 {dimension_numbers = #tpu.dot_dimension_numbers<[1], [0], [0], [1], [0, 0, 1, 1], [], []>} : vector<8x8xf32>, vector<8x8xf32>, vector<8x8xf32> -> vector<8x8xf32>
    %560 = vector.extract_strided_slice %496 {offsets = [0, 24], sizes = [8, 8], strides = [1, 1]} : vector<8x32xf32> to vector<8x8xf32>
    %561 = vector.extract_strided_slice %504 {offsets = [0, 24], sizes = [8, 8], strides = [1, 1]} : vector<8x32xf32> to vector<8x8xf32>
    %cst_248 = arith.constant dense<0.000000e+00> : vector<8x8xf32>
    %562 = tpu.matmul %560, %561, %cst_248 {dimension_numbers = #tpu.dot_dimension_numbers<[1], [1], [0], [0], [0, 0, 1, 0], [], []>} : vector<8x8xf32>, vector<8x8xf32>, vector<8x8xf32> -> vector<8x8xf32>
    %cst_249 = arith.constant 0.353553385 : f32
    %563 = vector.broadcast %cst_249 : f32 to vector<8x8xf32>
    %564 = arith.mulf %562, %563 : vector<8x8xf32>
    %565 = arith.addf %564, %3 : vector<8x8xf32>
    %cst_250 = arith.constant dense<0xFF800000> : vector<8xf32>
    %566 = vector.multi_reduction <maximumf>, %565, %cst_250 [1] : vector<8x8xf32> to vector<8xf32>
    %567 = vector.shape_cast %566 : vector<8xf32> to vector<8x1xf32>
    %568 = vector.broadcast %567 : vector<8x1xf32> to vector<8x8xf32>
    %569 = arith.subf %565, %568 : vector<8x8xf32>
    %570 = math.exp %569 : vector<8x8xf32>
    %cst_251 = arith.constant dense<0.000000e+00> : vector<8xf32>
    %571 = vector.multi_reduction <add>, %570, %cst_251 [1] : vector<8x8xf32> to vector<8xf32>
    %572 = vector.shape_cast %571 : vector<8xf32> to vector<8x1xf32>
    %573 = tpu.reciprocal %572 {approx = true} : vector<8x1xf32> -> vector<8x1xf32>
    %574 = vector.broadcast %573 : vector<8x1xf32> to vector<8x8xf32>
    %575 = arith.mulf %570, %574 : vector<8x8xf32>
    %576 = vector.extract_strided_slice %505 {offsets = [0, 24], sizes = [8, 8], strides = [1, 1]} : vector<8x32xf32> to vector<8x8xf32>
    %cst_252 = arith.constant dense<0.000000e+00> : vector<8x8xf32>
    %577 = tpu.matmul %575, %576, %cst_252 {dimension_numbers = #tpu.dot_dimension_numbers<[1], [0], [0], [1], [0, 0, 1, 1], [], []>} : vector<8x8xf32>, vector<8x8xf32>, vector<8x8xf32> -> vector<8x8xf32>
    %578 = tpu.concatenate %523, %541, %559, %577 in 1 : vector<8x8xf32>, vector<8x8xf32>, vector<8x8xf32>, vector<8x8xf32> -> vector<8x32xf32>
    %c0_253 = arith.constant 0 : index
    %c0_254 = arith.constant 0 : index
    %c0_255 = arith.constant 0 : index
    %579 = vector.load %arg26[%c0_253, %c0_254, %c0_255] : memref<2x32x32xf32, #tpu.memory_space<vmem>>, vector<1x32x32xf32>
    %580 = vector.shape_cast %579 : vector<1x32x32xf32> to vector<32x32xf32>
    %c0_256 = arith.constant 0 : index
    %c0_257 = arith.constant 0 : index
    %c0_258 = arith.constant 0 : index
    %581 = vector.load %arg27[%c0_256, %c0_257, %c0_258] : memref<2x1x32xf32, #tpu.memory_space<vmem>>, vector<1x1x32xf32>
    %582 = vector.shape_cast %581 : vector<1x1x32xf32> to vector<1x32xf32>
    %cst_259 = arith.constant dense<0.000000e+00> : vector<8x32xf32>
    %583 = tpu.matmul %578, %580, %cst_259 {dimension_numbers = #tpu.dot_dimension_numbers<[1], [0], [0], [1], [0, 0, 1, 1], [], []>} : vector<8x32xf32>, vector<32x32xf32>, vector<8x32xf32> -> vector<8x32xf32>
    %584 = vector.broadcast %582 : vector<1x32xf32> to vector<8x32xf32>
    %585 = arith.addf %583, %584 : vector<8x32xf32>
    %586 = arith.addf %464, %585 : vector<8x32xf32>
    %c0_260 = arith.constant 0 : index
    %c0_261 = arith.constant 0 : index
    %c0_262 = arith.constant 0 : index
    %587 = vector.load %arg36[%c0_260, %c0_261, %c0_262] : memref<2x1x32xf32, #tpu.memory_space<vmem>>, vector<1x1x32xf32>
    %588 = vector.shape_cast %587 : vector<1x1x32xf32> to vector<1x32xf32>
    %c0_263 = arith.constant 0 : index
    %c0_264 = arith.constant 0 : index
    %c0_265 = arith.constant 0 : index
    %589 = vector.load %arg37[%c0_263, %c0_264, %c0_265] : memref<2x1x32xf32, #tpu.memory_space<vmem>>, vector<1x1x32xf32>
    %590 = vector.shape_cast %589 : vector<1x1x32xf32> to vector<1x32xf32>
    %cst_266 = arith.constant dense<0.000000e+00> : vector<8xf32>
    %591 = vector.multi_reduction <add>, %586, %cst_266 [1] : vector<8x32xf32> to vector<8xf32>
    %592 = vector.shape_cast %591 : vector<8xf32> to vector<8x1xf32>
    %cst_267 = arith.constant 3.200000e+01 : f32
    %593 = vector.broadcast %cst_267 : f32 to vector<8x1xf32>
    %594 = arith.divf %592, %593 : vector<8x1xf32>
    %595 = vector.broadcast %594 : vector<8x1xf32> to vector<8x32xf32>
    %596 = arith.subf %586, %595 : vector<8x32xf32>
    %597 = arith.mulf %596, %596 : vector<8x32xf32>
    %cst_268 = arith.constant dense<0.000000e+00> : vector<8xf32>
    %598 = vector.multi_reduction <add>, %597, %cst_268 [1] : vector<8x32xf32> to vector<8xf32>
    %599 = vector.shape_cast %598 : vector<8xf32> to vector<8x1xf32>
    %cst_269 = arith.constant 0.0322580636 : f32
    %600 = vector.broadcast %cst_269 : f32 to vector<8x1xf32>
    %601 = arith.mulf %599, %600 : vector<8x1xf32>
    %602 = math.sqrt %601 : vector<8x1xf32>
    %cst_270 = arith.constant 9.99999997E-7 : f32
    %603 = vector.broadcast %cst_270 : f32 to vector<8x1xf32>
    %604 = arith.addf %602, %603 : vector<8x1xf32>
    %605 = tpu.reciprocal %604 {approx = true} : vector<8x1xf32> -> vector<8x1xf32>
    %606 = vector.broadcast %605 : vector<8x1xf32> to vector<8x32xf32>
    %607 = arith.mulf %596, %606 : vector<8x32xf32>
    %608 = vector.broadcast %588 : vector<1x32xf32> to vector<8x32xf32>
    %609 = arith.mulf %608, %607 : vector<8x32xf32>
    %610 = vector.broadcast %590 : vector<1x32xf32> to vector<8x32xf32>
    %611 = arith.addf %609, %610 : vector<8x32xf32>
    %c0_271 = arith.constant 0 : index
    %c0_272 = arith.constant 0 : index
    %c0_273 = arith.constant 0 : index
    %612 = vector.load %arg28[%c0_271, %c0_272, %c0_273] : memref<2x32x64xf32, #tpu.memory_space<vmem>>, vector<1x32x64xf32>
    %613 = vector.shape_cast %612 : vector<1x32x64xf32> to vector<32x64xf32>
    %c0_274 = arith.constant 0 : index
    %c0_275 = arith.constant 0 : index
    %c0_276 = arith.constant 0 : index
    %614 = vector.load %arg29[%c0_274, %c0_275, %c0_276] : memref<2x1x64xf32, #tpu.memory_space<vmem>>, vector<1x1x64xf32>
    %615 = vector.shape_cast %614 : vector<1x1x64xf32> to vector<1x64xf32>
    %c0_277 = arith.constant 0 : index
    %c0_278 = arith.constant 0 : index
    %c0_279 = arith.constant 0 : index
    %616 = vector.load %arg30[%c0_277, %c0_278, %c0_279] : memref<2x64x32xf32, #tpu.memory_space<vmem>>, vector<1x64x32xf32>
    %617 = vector.shape_cast %616 : vector<1x64x32xf32> to vector<64x32xf32>
    %c0_280 = arith.constant 0 : index
    %c0_281 = arith.constant 0 : index
    %c0_282 = arith.constant 0 : index
    %618 = vector.load %arg31[%c0_280, %c0_281, %c0_282] : memref<2x1x32xf32, #tpu.memory_space<vmem>>, vector<1x1x32xf32>
    %619 = vector.shape_cast %618 : vector<1x1x32xf32> to vector<1x32xf32>
    %cst_283 = arith.constant dense<0.000000e+00> : vector<8x64xf32>
    %620 = tpu.matmul %611, %613, %cst_283 {dimension_numbers = #tpu.dot_dimension_numbers<[1], [0], [0], [1], [0, 0, 1, 1], [], []>} : vector<8x32xf32>, vector<32x64xf32>, vector<8x64xf32> -> vector<8x64xf32>
    %621 = vector.broadcast %615 : vector<1x64xf32> to vector<8x64xf32>
    %622 = arith.addf %620, %621 : vector<8x64xf32>
    %cst_284 = arith.constant 0.000000e+00 : f32
    %623 = vector.broadcast %cst_284 : f32 to vector<8x64xf32>
    %624 = arith.maximumf %622, %623 : vector<8x64xf32>
    %cst_285 = arith.constant dense<0.000000e+00> : vector<8x32xf32>
    %625 = tpu.matmul %624, %617, %cst_285 {dimension_numbers = #tpu.dot_dimension_numbers<[1], [0], [0], [1], [0, 0, 1, 1], [], []>} : vector<8x64xf32>, vector<64x32xf32>, vector<8x32xf32> -> vector<8x32xf32>
    %626 = vector.broadcast %619 : vector<1x32xf32> to vector<8x32xf32>
    %627 = arith.addf %625, %626 : vector<8x32xf32>
    %628 = arith.addf %586, %627 : vector<8x32xf32>
    %c1_286 = arith.constant 1 : index
    %c0_287 = arith.constant 0 : index
    %c0_288 = arith.constant 0 : index
    %629 = vector.load %arg32[%c1_286, %c0_287, %c0_288] : memref<2x1x32xf32, #tpu.memory_space<vmem>>, vector<1x1x32xf32>
    %630 = vector.shape_cast %629 : vector<1x1x32xf32> to vector<1x32xf32>
    %c1_289 = arith.constant 1 : index
    %c0_290 = arith.constant 0 : index
    %c0_291 = arith.constant 0 : index
    %631 = vector.load %arg33[%c1_289, %c0_290, %c0_291] : memref<2x1x32xf32, #tpu.memory_space<vmem>>, vector<1x1x32xf32>
    %632 = vector.shape_cast %631 : vector<1x1x32xf32> to vector<1x32xf32>
    %cst_292 = arith.constant dense<0.000000e+00> : vector<8xf32>
    %633 = vector.multi_reduction <add>, %628, %cst_292 [1] : vector<8x32xf32> to vector<8xf32>
    %634 = vector.shape_cast %633 : vector<8xf32> to vector<8x1xf32>
    %cst_293 = arith.constant 3.200000e+01 : f32
    %635 = vector.broadcast %cst_293 : f32 to vector<8x1xf32>
    %636 = arith.divf %634, %635 : vector<8x1xf32>
    %637 = vector.broadcast %636 : vector<8x1xf32> to vector<8x32xf32>
    %638 = arith.subf %628, %637 : vector<8x32xf32>
    %639 = arith.mulf %638, %638 : vector<8x32xf32>
    %cst_294 = arith.constant dense<0.000000e+00> : vector<8xf32>
    %640 = vector.multi_reduction <add>, %639, %cst_294 [1] : vector<8x32xf32> to vector<8xf32>
    %641 = vector.shape_cast %640 : vector<8xf32> to vector<8x1xf32>
    %cst_295 = arith.constant 0.0322580636 : f32
    %642 = vector.broadcast %cst_295 : f32 to vector<8x1xf32>
    %643 = arith.mulf %641, %642 : vector<8x1xf32>
    %644 = math.sqrt %643 : vector<8x1xf32>
    %cst_296 = arith.constant 9.99999997E-7 : f32
    %645 = vector.broadcast %cst_296 : f32 to vector<8x1xf32>
    %646 = arith.addf %644, %645 : vector<8x1xf32>
    %647 = tpu.reciprocal %646 {approx = true} : vector<8x1xf32> -> vector<8x1xf32>
    %648 = vector.broadcast %647 : vector<8x1xf32> to vector<8x32xf32>
    %649 = arith.mulf %638, %648 : vector<8x32xf32>
    %650 = vector.broadcast %630 : vector<1x32xf32> to vector<8x32xf32>
    %651 = arith.mulf %650, %649 : vector<8x32xf32>
    %652 = vector.broadcast %632 : vector<1x32xf32> to vector<8x32xf32>
    %653 = arith.addf %651, %652 : vector<8x32xf32>
    %c1_297 = arith.constant 1 : index
    %c0_298 = arith.constant 0 : index
    %c0_299 = arith.constant 0 : index
    %654 = vector.load %arg18[%c1_297, %c0_298, %c0_299] : memref<2x32x96xf32, #tpu.memory_space<vmem>>, vector<1x32x96xf32>
    %655 = vector.shape_cast %654 : vector<1x32x96xf32> to vector<32x96xf32>
    %c1_300 = arith.constant 1 : index
    %c0_301 = arith.constant 0 : index
    %c0_302 = arith.constant 0 : index
    %656 = vector.load %arg19[%c1_300, %c0_301, %c0_302] : memref<2x1x96xf32, #tpu.memory_space<vmem>>, vector<1x1x96xf32>
    %657 = vector.shape_cast %656 : vector<1x1x96xf32> to vector<1x96xf32>
    %cst_303 = arith.constant dense<0.000000e+00> : vector<8x96xf32>
    %658 = tpu.matmul %653, %655, %cst_303 {dimension_numbers = #tpu.dot_dimension_numbers<[1], [0], [0], [1], [0, 0, 1, 1], [], []>} : vector<8x32xf32>, vector<32x96xf32>, vector<8x96xf32> -> vector<8x96xf32>
    %659 = vector.broadcast %657 : vector<1x96xf32> to vector<8x96xf32>
    %660 = arith.addf %658, %659 : vector<8x96xf32>
    %661 = vector.extract_strided_slice %660 {offsets = [0, 0], sizes = [8, 32], strides = [1, 1]} : vector<8x96xf32> to vector<8x32xf32>
    %662 = vector.extract_strided_slice %660 {offsets = [0, 32], sizes = [8, 32], strides = [1, 1]} : vector<8x96xf32> to vector<8x32xf32>
    %663 = vector.extract_strided_slice %660 {offsets = [0, 64], sizes = [8, 32], strides = [1, 1]} : vector<8x96xf32> to vector<8x32xf32>
    %664 = vector.extract_strided_slice %661 {offsets = [0, 0], sizes = [8, 8], strides = [1, 1]} : vector<8x32xf32> to vector<8x8xf32>
    %665 = vector.extract_strided_slice %662 {offsets = [0, 0], sizes = [8, 8], strides = [1, 1]} : vector<8x32xf32> to vector<8x8xf32>
    %cst_304 = arith.constant dense<0.000000e+00> : vector<8x8xf32>
    %666 = tpu.matmul %664, %665, %cst_304 {dimension_numbers = #tpu.dot_dimension_numbers<[1], [1], [0], [0], [0, 0, 1, 0], [], []>} : vector<8x8xf32>, vector<8x8xf32>, vector<8x8xf32> -> vector<8x8xf32>
    %cst_305 = arith.constant 0.353553385 : f32
    %667 = vector.broadcast %cst_305 : f32 to vector<8x8xf32>
    %668 = arith.mulf %666, %667 : vector<8x8xf32>
    %669 = arith.addf %668, %5 : vector<8x8xf32>
    %cst_306 = arith.constant dense<0xFF800000> : vector<8xf32>
    %670 = vector.multi_reduction <maximumf>, %669, %cst_306 [1] : vector<8x8xf32> to vector<8xf32>
    %671 = vector.shape_cast %670 : vector<8xf32> to vector<8x1xf32>
    %672 = vector.broadcast %671 : vector<8x1xf32> to vector<8x8xf32>
    %673 = arith.subf %669, %672 : vector<8x8xf32>
    %674 = math.exp %673 : vector<8x8xf32>
    %cst_307 = arith.constant dense<0.000000e+00> : vector<8xf32>
    %675 = vector.multi_reduction <add>, %674, %cst_307 [1] : vector<8x8xf32> to vector<8xf32>
    %676 = vector.shape_cast %675 : vector<8xf32> to vector<8x1xf32>
    %677 = tpu.reciprocal %676 {approx = true} : vector<8x1xf32> -> vector<8x1xf32>
    %678 = vector.broadcast %677 : vector<8x1xf32> to vector<8x8xf32>
    %679 = arith.mulf %674, %678 : vector<8x8xf32>
    %680 = vector.extract_strided_slice %663 {offsets = [0, 0], sizes = [8, 8], strides = [1, 1]} : vector<8x32xf32> to vector<8x8xf32>
    %cst_308 = arith.constant dense<0.000000e+00> : vector<8x8xf32>
    %681 = tpu.matmul %679, %680, %cst_308 {dimension_numbers = #tpu.dot_dimension_numbers<[1], [0], [0], [1], [0, 0, 1, 1], [], []>} : vector<8x8xf32>, vector<8x8xf32>, vector<8x8xf32> -> vector<8x8xf32>
    %682 = vector.extract_strided_slice %661 {offsets = [0, 8], sizes = [8, 8], strides = [1, 1]} : vector<8x32xf32> to vector<8x8xf32>
    %683 = vector.extract_strided_slice %662 {offsets = [0, 8], sizes = [8, 8], strides = [1, 1]} : vector<8x32xf32> to vector<8x8xf32>
    %cst_309 = arith.constant dense<0.000000e+00> : vector<8x8xf32>
    %684 = tpu.matmul %682, %683, %cst_309 {dimension_numbers = #tpu.dot_dimension_numbers<[1], [1], [0], [0], [0, 0, 1, 0], [], []>} : vector<8x8xf32>, vector<8x8xf32>, vector<8x8xf32> -> vector<8x8xf32>
    %cst_310 = arith.constant 0.353553385 : f32
    %685 = vector.broadcast %cst_310 : f32 to vector<8x8xf32>
    %686 = arith.mulf %684, %685 : vector<8x8xf32>
    %687 = arith.addf %686, %5 : vector<8x8xf32>
    %cst_311 = arith.constant dense<0xFF800000> : vector<8xf32>
    %688 = vector.multi_reduction <maximumf>, %687, %cst_311 [1] : vector<8x8xf32> to vector<8xf32>
    %689 = vector.shape_cast %688 : vector<8xf32> to vector<8x1xf32>
    %690 = vector.broadcast %689 : vector<8x1xf32> to vector<8x8xf32>
    %691 = arith.subf %687, %690 : vector<8x8xf32>
    %692 = math.exp %691 : vector<8x8xf32>
    %cst_312 = arith.constant dense<0.000000e+00> : vector<8xf32>
    %693 = vector.multi_reduction <add>, %692, %cst_312 [1] : vector<8x8xf32> to vector<8xf32>
    %694 = vector.shape_cast %693 : vector<8xf32> to vector<8x1xf32>
    %695 = tpu.reciprocal %694 {approx = true} : vector<8x1xf32> -> vector<8x1xf32>
    %696 = vector.broadcast %695 : vector<8x1xf32> to vector<8x8xf32>
    %697 = arith.mulf %692, %696 : vector<8x8xf32>
    %698 = vector.extract_strided_slice %663 {offsets = [0, 8], sizes = [8, 8], strides = [1, 1]} : vector<8x32xf32> to vector<8x8xf32>
    %cst_313 = arith.constant dense<0.000000e+00> : vector<8x8xf32>
    %699 = tpu.matmul %697, %698, %cst_313 {dimension_numbers = #tpu.dot_dimension_numbers<[1], [0], [0], [1], [0, 0, 1, 1], [], []>} : vector<8x8xf32>, vector<8x8xf32>, vector<8x8xf32> -> vector<8x8xf32>
    %700 = vector.extract_strided_slice %661 {offsets = [0, 16], sizes = [8, 8], strides = [1, 1]} : vector<8x32xf32> to vector<8x8xf32>
    %701 = vector.extract_strided_slice %662 {offsets = [0, 16], sizes = [8, 8], strides = [1, 1]} : vector<8x32xf32> to vector<8x8xf32>
    %cst_314 = arith.constant dense<0.000000e+00> : vector<8x8xf32>
    %702 = tpu.matmul %700, %701, %cst_314 {dimension_numbers = #tpu.dot_dimension_numbers<[1], [1], [0], [0], [0, 0, 1, 0], [], []>} : vector<8x8xf32>, vector<8x8xf32>, vector<8x8xf32> -> vector<8x8xf32>
    %cst_315 = arith.constant 0.353553385 : f32
    %703 = vector.broadcast %cst_315 : f32 to vector<8x8xf32>
    %704 = arith.mulf %702, %703 : vector<8x8xf32>
    %705 = arith.addf %704, %5 : vector<8x8xf32>
    %cst_316 = arith.constant dense<0xFF800000> : vector<8xf32>
    %706 = vector.multi_reduction <maximumf>, %705, %cst_316 [1] : vector<8x8xf32> to vector<8xf32>
    %707 = vector.shape_cast %706 : vector<8xf32> to vector<8x1xf32>
    %708 = vector.broadcast %707 : vector<8x1xf32> to vector<8x8xf32>
    %709 = arith.subf %705, %708 : vector<8x8xf32>
    %710 = math.exp %709 : vector<8x8xf32>
    %cst_317 = arith.constant dense<0.000000e+00> : vector<8xf32>
    %711 = vector.multi_reduction <add>, %710, %cst_317 [1] : vector<8x8xf32> to vector<8xf32>
    %712 = vector.shape_cast %711 : vector<8xf32> to vector<8x1xf32>
    %713 = tpu.reciprocal %712 {approx = true} : vector<8x1xf32> -> vector<8x1xf32>
    %714 = vector.broadcast %713 : vector<8x1xf32> to vector<8x8xf32>
    %715 = arith.mulf %710, %714 : vector<8x8xf32>
    %716 = vector.extract_strided_slice %663 {offsets = [0, 16], sizes = [8, 8], strides = [1, 1]} : vector<8x32xf32> to vector<8x8xf32>
    %cst_318 = arith.constant dense<0.000000e+00> : vector<8x8xf32>
    %717 = tpu.matmul %715, %716, %cst_318 {dimension_numbers = #tpu.dot_dimension_numbers<[1], [0], [0], [1], [0, 0, 1, 1], [], []>} : vector<8x8xf32>, vector<8x8xf32>, vector<8x8xf32> -> vector<8x8xf32>
    %718 = vector.extract_strided_slice %661 {offsets = [0, 24], sizes = [8, 8], strides = [1, 1]} : vector<8x32xf32> to vector<8x8xf32>
    %719 = vector.extract_strided_slice %662 {offsets = [0, 24], sizes = [8, 8], strides = [1, 1]} : vector<8x32xf32> to vector<8x8xf32>
    %cst_319 = arith.constant dense<0.000000e+00> : vector<8x8xf32>
    %720 = tpu.matmul %718, %719, %cst_319 {dimension_numbers = #tpu.dot_dimension_numbers<[1], [1], [0], [0], [0, 0, 1, 0], [], []>} : vector<8x8xf32>, vector<8x8xf32>, vector<8x8xf32> -> vector<8x8xf32>
    %cst_320 = arith.constant 0.353553385 : f32
    %721 = vector.broadcast %cst_320 : f32 to vector<8x8xf32>
    %722 = arith.mulf %720, %721 : vector<8x8xf32>
    %723 = arith.addf %722, %5 : vector<8x8xf32>
    %cst_321 = arith.constant dense<0xFF800000> : vector<8xf32>
    %724 = vector.multi_reduction <maximumf>, %723, %cst_321 [1] : vector<8x8xf32> to vector<8xf32>
    %725 = vector.shape_cast %724 : vector<8xf32> to vector<8x1xf32>
    %726 = vector.broadcast %725 : vector<8x1xf32> to vector<8x8xf32>
    %727 = arith.subf %723, %726 : vector<8x8xf32>
    %728 = math.exp %727 : vector<8x8xf32>
    %cst_322 = arith.constant dense<0.000000e+00> : vector<8xf32>
    %729 = vector.multi_reduction <add>, %728, %cst_322 [1] : vector<8x8xf32> to vector<8xf32>
    %730 = vector.shape_cast %729 : vector<8xf32> to vector<8x1xf32>
    %731 = tpu.reciprocal %730 {approx = true} : vector<8x1xf32> -> vector<8x1xf32>
    %732 = vector.broadcast %731 : vector<8x1xf32> to vector<8x8xf32>
    %733 = arith.mulf %728, %732 : vector<8x8xf32>
    %734 = vector.extract_strided_slice %663 {offsets = [0, 24], sizes = [8, 8], strides = [1, 1]} : vector<8x32xf32> to vector<8x8xf32>
    %cst_323 = arith.constant dense<0.000000e+00> : vector<8x8xf32>
    %735 = tpu.matmul %733, %734, %cst_323 {dimension_numbers = #tpu.dot_dimension_numbers<[1], [0], [0], [1], [0, 0, 1, 1], [], []>} : vector<8x8xf32>, vector<8x8xf32>, vector<8x8xf32> -> vector<8x8xf32>
    %736 = tpu.concatenate %681, %699, %717, %735 in 1 : vector<8x8xf32>, vector<8x8xf32>, vector<8x8xf32>, vector<8x8xf32> -> vector<8x32xf32>
    %c1_324 = arith.constant 1 : index
    %c0_325 = arith.constant 0 : index
    %c0_326 = arith.constant 0 : index
    %737 = vector.load %arg20[%c1_324, %c0_325, %c0_326] : memref<2x32x32xf32, #tpu.memory_space<vmem>>, vector<1x32x32xf32>
    %738 = vector.shape_cast %737 : vector<1x32x32xf32> to vector<32x32xf32>
    %c1_327 = arith.constant 1 : index
    %c0_328 = arith.constant 0 : index
    %c0_329 = arith.constant 0 : index
    %739 = vector.load %arg21[%c1_327, %c0_328, %c0_329] : memref<2x1x32xf32, #tpu.memory_space<vmem>>, vector<1x1x32xf32>
    %740 = vector.shape_cast %739 : vector<1x1x32xf32> to vector<1x32xf32>
    %cst_330 = arith.constant dense<0.000000e+00> : vector<8x32xf32>
    %741 = tpu.matmul %736, %738, %cst_330 {dimension_numbers = #tpu.dot_dimension_numbers<[1], [0], [0], [1], [0, 0, 1, 1], [], []>} : vector<8x32xf32>, vector<32x32xf32>, vector<8x32xf32> -> vector<8x32xf32>
    %742 = vector.broadcast %740 : vector<1x32xf32> to vector<8x32xf32>
    %743 = arith.addf %741, %742 : vector<8x32xf32>
    %744 = arith.addf %628, %743 : vector<8x32xf32>
    %c1_331 = arith.constant 1 : index
    %c0_332 = arith.constant 0 : index
    %c0_333 = arith.constant 0 : index
    %745 = vector.load %arg34[%c1_331, %c0_332, %c0_333] : memref<2x1x32xf32, #tpu.memory_space<vmem>>, vector<1x1x32xf32>
    %746 = vector.shape_cast %745 : vector<1x1x32xf32> to vector<1x32xf32>
    %c1_334 = arith.constant 1 : index
    %c0_335 = arith.constant 0 : index
    %c0_336 = arith.constant 0 : index
    %747 = vector.load %arg35[%c1_334, %c0_335, %c0_336] : memref<2x1x32xf32, #tpu.memory_space<vmem>>, vector<1x1x32xf32>
    %748 = vector.shape_cast %747 : vector<1x1x32xf32> to vector<1x32xf32>
    %cst_337 = arith.constant dense<0.000000e+00> : vector<8xf32>
    %749 = vector.multi_reduction <add>, %744, %cst_337 [1] : vector<8x32xf32> to vector<8xf32>
    %750 = vector.shape_cast %749 : vector<8xf32> to vector<8x1xf32>
    %cst_338 = arith.constant 3.200000e+01 : f32
    %751 = vector.broadcast %cst_338 : f32 to vector<8x1xf32>
    %752 = arith.divf %750, %751 : vector<8x1xf32>
    %753 = vector.broadcast %752 : vector<8x1xf32> to vector<8x32xf32>
    %754 = arith.subf %744, %753 : vector<8x32xf32>
    %755 = arith.mulf %754, %754 : vector<8x32xf32>
    %cst_339 = arith.constant dense<0.000000e+00> : vector<8xf32>
    %756 = vector.multi_reduction <add>, %755, %cst_339 [1] : vector<8x32xf32> to vector<8xf32>
    %757 = vector.shape_cast %756 : vector<8xf32> to vector<8x1xf32>
    %cst_340 = arith.constant 0.0322580636 : f32
    %758 = vector.broadcast %cst_340 : f32 to vector<8x1xf32>
    %759 = arith.mulf %757, %758 : vector<8x1xf32>
    %760 = math.sqrt %759 : vector<8x1xf32>
    %cst_341 = arith.constant 9.99999997E-7 : f32
    %761 = vector.broadcast %cst_341 : f32 to vector<8x1xf32>
    %762 = arith.addf %760, %761 : vector<8x1xf32>
    %763 = tpu.reciprocal %762 {approx = true} : vector<8x1xf32> -> vector<8x1xf32>
    %764 = vector.broadcast %763 : vector<8x1xf32> to vector<8x32xf32>
    %765 = arith.mulf %754, %764 : vector<8x32xf32>
    %766 = vector.broadcast %746 : vector<1x32xf32> to vector<8x32xf32>
    %767 = arith.mulf %766, %765 : vector<8x32xf32>
    %768 = vector.broadcast %748 : vector<1x32xf32> to vector<8x32xf32>
    %769 = arith.addf %767, %768 : vector<8x32xf32>
    %c1_342 = arith.constant 1 : index
    %c0_343 = arith.constant 0 : index
    %c0_344 = arith.constant 0 : index
    %770 = vector.load %arg22[%c1_342, %c0_343, %c0_344] : memref<2x32x32xf32, #tpu.memory_space<vmem>>, vector<1x32x32xf32>
    %771 = vector.shape_cast %770 : vector<1x32x32xf32> to vector<32x32xf32>
    %c1_345 = arith.constant 1 : index
    %c0_346 = arith.constant 0 : index
    %c0_347 = arith.constant 0 : index
    %772 = vector.load %arg23[%c1_345, %c0_346, %c0_347] : memref<2x1x32xf32, #tpu.memory_space<vmem>>, vector<1x1x32xf32>
    %773 = vector.shape_cast %772 : vector<1x1x32xf32> to vector<1x32xf32>
    %cst_348 = arith.constant dense<0.000000e+00> : vector<8x32xf32>
    %774 = tpu.matmul %769, %771, %cst_348 {dimension_numbers = #tpu.dot_dimension_numbers<[1], [0], [0], [1], [0, 0, 1, 1], [], []>} : vector<8x32xf32>, vector<32x32xf32>, vector<8x32xf32> -> vector<8x32xf32>
    %775 = vector.broadcast %773 : vector<1x32xf32> to vector<8x32xf32>
    %776 = arith.addf %774, %775 : vector<8x32xf32>
    %c1_349 = arith.constant 1 : index
    %c0_350 = arith.constant 0 : index
    %c0_351 = arith.constant 0 : index
    %777 = vector.load %arg24[%c1_349, %c0_350, %c0_351] : memref<2x32x64xf32, #tpu.memory_space<vmem>>, vector<1x32x64xf32>
    %778 = vector.shape_cast %777 : vector<1x32x64xf32> to vector<32x64xf32>
    %c1_352 = arith.constant 1 : index
    %c0_353 = arith.constant 0 : index
    %c0_354 = arith.constant 0 : index
    %779 = vector.load %arg25[%c1_352, %c0_353, %c0_354] : memref<2x1x64xf32, #tpu.memory_space<vmem>>, vector<1x1x64xf32>
    %780 = vector.shape_cast %779 : vector<1x1x64xf32> to vector<1x64xf32>
    %cst_355 = arith.constant dense<0.000000e+00> : vector<8x64xf32>
    %781 = tpu.matmul %346, %778, %cst_355 {dimension_numbers = #tpu.dot_dimension_numbers<[1], [0], [0], [1], [0, 0, 1, 1], [], []>} : vector<8x32xf32>, vector<32x64xf32>, vector<8x64xf32> -> vector<8x64xf32>
    %782 = vector.broadcast %780 : vector<1x64xf32> to vector<8x64xf32>
    %783 = arith.addf %781, %782 : vector<8x64xf32>
    %784 = vector.extract_strided_slice %783 {offsets = [0, 0], sizes = [8, 32], strides = [1, 1]} : vector<8x64xf32> to vector<8x32xf32>
    %785 = vector.extract_strided_slice %783 {offsets = [0, 32], sizes = [8, 32], strides = [1, 1]} : vector<8x64xf32> to vector<8x32xf32>
    %786 = vector.extract_strided_slice %776 {offsets = [0, 0], sizes = [8, 8], strides = [1, 1]} : vector<8x32xf32> to vector<8x8xf32>
    %787 = vector.extract_strided_slice %784 {offsets = [0, 0], sizes = [8, 8], strides = [1, 1]} : vector<8x32xf32> to vector<8x8xf32>
    %cst_356 = arith.constant dense<0.000000e+00> : vector<8x8xf32>
    %788 = tpu.matmul %786, %787, %cst_356 {dimension_numbers = #tpu.dot_dimension_numbers<[1], [1], [0], [0], [0, 0, 1, 0], [], []>} : vector<8x8xf32>, vector<8x8xf32>, vector<8x8xf32> -> vector<8x8xf32>
    %cst_357 = arith.constant 0.353553385 : f32
    %789 = vector.broadcast %cst_357 : f32 to vector<8x8xf32>
    %790 = arith.mulf %788, %789 : vector<8x8xf32>
    %791 = arith.addf %790, %3 : vector<8x8xf32>
    %cst_358 = arith.constant dense<0xFF800000> : vector<8xf32>
    %792 = vector.multi_reduction <maximumf>, %791, %cst_358 [1] : vector<8x8xf32> to vector<8xf32>
    %793 = vector.shape_cast %792 : vector<8xf32> to vector<8x1xf32>
    %794 = vector.broadcast %793 : vector<8x1xf32> to vector<8x8xf32>
    %795 = arith.subf %791, %794 : vector<8x8xf32>
    %796 = math.exp %795 : vector<8x8xf32>
    %cst_359 = arith.constant dense<0.000000e+00> : vector<8xf32>
    %797 = vector.multi_reduction <add>, %796, %cst_359 [1] : vector<8x8xf32> to vector<8xf32>
    %798 = vector.shape_cast %797 : vector<8xf32> to vector<8x1xf32>
    %799 = tpu.reciprocal %798 {approx = true} : vector<8x1xf32> -> vector<8x1xf32>
    %800 = vector.broadcast %799 : vector<8x1xf32> to vector<8x8xf32>
    %801 = arith.mulf %796, %800 : vector<8x8xf32>
    %802 = vector.extract_strided_slice %785 {offsets = [0, 0], sizes = [8, 8], strides = [1, 1]} : vector<8x32xf32> to vector<8x8xf32>
    %cst_360 = arith.constant dense<0.000000e+00> : vector<8x8xf32>
    %803 = tpu.matmul %801, %802, %cst_360 {dimension_numbers = #tpu.dot_dimension_numbers<[1], [0], [0], [1], [0, 0, 1, 1], [], []>} : vector<8x8xf32>, vector<8x8xf32>, vector<8x8xf32> -> vector<8x8xf32>
    %804 = vector.extract_strided_slice %776 {offsets = [0, 8], sizes = [8, 8], strides = [1, 1]} : vector<8x32xf32> to vector<8x8xf32>
    %805 = vector.extract_strided_slice %784 {offsets = [0, 8], sizes = [8, 8], strides = [1, 1]} : vector<8x32xf32> to vector<8x8xf32>
    %cst_361 = arith.constant dense<0.000000e+00> : vector<8x8xf32>
    %806 = tpu.matmul %804, %805, %cst_361 {dimension_numbers = #tpu.dot_dimension_numbers<[1], [1], [0], [0], [0, 0, 1, 0], [], []>} : vector<8x8xf32>, vector<8x8xf32>, vector<8x8xf32> -> vector<8x8xf32>
    %cst_362 = arith.constant 0.353553385 : f32
    %807 = vector.broadcast %cst_362 : f32 to vector<8x8xf32>
    %808 = arith.mulf %806, %807 : vector<8x8xf32>
    %809 = arith.addf %808, %3 : vector<8x8xf32>
    %cst_363 = arith.constant dense<0xFF800000> : vector<8xf32>
    %810 = vector.multi_reduction <maximumf>, %809, %cst_363 [1] : vector<8x8xf32> to vector<8xf32>
    %811 = vector.shape_cast %810 : vector<8xf32> to vector<8x1xf32>
    %812 = vector.broadcast %811 : vector<8x1xf32> to vector<8x8xf32>
    %813 = arith.subf %809, %812 : vector<8x8xf32>
    %814 = math.exp %813 : vector<8x8xf32>
    %cst_364 = arith.constant dense<0.000000e+00> : vector<8xf32>
    %815 = vector.multi_reduction <add>, %814, %cst_364 [1] : vector<8x8xf32> to vector<8xf32>
    %816 = vector.shape_cast %815 : vector<8xf32> to vector<8x1xf32>
    %817 = tpu.reciprocal %816 {approx = true} : vector<8x1xf32> -> vector<8x1xf32>
    %818 = vector.broadcast %817 : vector<8x1xf32> to vector<8x8xf32>
    %819 = arith.mulf %814, %818 : vector<8x8xf32>
    %820 = vector.extract_strided_slice %785 {offsets = [0, 8], sizes = [8, 8], strides = [1, 1]} : vector<8x32xf32> to vector<8x8xf32>
    %cst_365 = arith.constant dense<0.000000e+00> : vector<8x8xf32>
    %821 = tpu.matmul %819, %820, %cst_365 {dimension_numbers = #tpu.dot_dimension_numbers<[1], [0], [0], [1], [0, 0, 1, 1], [], []>} : vector<8x8xf32>, vector<8x8xf32>, vector<8x8xf32> -> vector<8x8xf32>
    %822 = vector.extract_strided_slice %776 {offsets = [0, 16], sizes = [8, 8], strides = [1, 1]} : vector<8x32xf32> to vector<8x8xf32>
    %823 = vector.extract_strided_slice %784 {offsets = [0, 16], sizes = [8, 8], strides = [1, 1]} : vector<8x32xf32> to vector<8x8xf32>
    %cst_366 = arith.constant dense<0.000000e+00> : vector<8x8xf32>
    %824 = tpu.matmul %822, %823, %cst_366 {dimension_numbers = #tpu.dot_dimension_numbers<[1], [1], [0], [0], [0, 0, 1, 0], [], []>} : vector<8x8xf32>, vector<8x8xf32>, vector<8x8xf32> -> vector<8x8xf32>
    %cst_367 = arith.constant 0.353553385 : f32
    %825 = vector.broadcast %cst_367 : f32 to vector<8x8xf32>
    %826 = arith.mulf %824, %825 : vector<8x8xf32>
    %827 = arith.addf %826, %3 : vector<8x8xf32>
    %cst_368 = arith.constant dense<0xFF800000> : vector<8xf32>
    %828 = vector.multi_reduction <maximumf>, %827, %cst_368 [1] : vector<8x8xf32> to vector<8xf32>
    %829 = vector.shape_cast %828 : vector<8xf32> to vector<8x1xf32>
    %830 = vector.broadcast %829 : vector<8x1xf32> to vector<8x8xf32>
    %831 = arith.subf %827, %830 : vector<8x8xf32>
    %832 = math.exp %831 : vector<8x8xf32>
    %cst_369 = arith.constant dense<0.000000e+00> : vector<8xf32>
    %833 = vector.multi_reduction <add>, %832, %cst_369 [1] : vector<8x8xf32> to vector<8xf32>
    %834 = vector.shape_cast %833 : vector<8xf32> to vector<8x1xf32>
    %835 = tpu.reciprocal %834 {approx = true} : vector<8x1xf32> -> vector<8x1xf32>
    %836 = vector.broadcast %835 : vector<8x1xf32> to vector<8x8xf32>
    %837 = arith.mulf %832, %836 : vector<8x8xf32>
    %838 = vector.extract_strided_slice %785 {offsets = [0, 16], sizes = [8, 8], strides = [1, 1]} : vector<8x32xf32> to vector<8x8xf32>
    %cst_370 = arith.constant dense<0.000000e+00> : vector<8x8xf32>
    %839 = tpu.matmul %837, %838, %cst_370 {dimension_numbers = #tpu.dot_dimension_numbers<[1], [0], [0], [1], [0, 0, 1, 1], [], []>} : vector<8x8xf32>, vector<8x8xf32>, vector<8x8xf32> -> vector<8x8xf32>
    %840 = vector.extract_strided_slice %776 {offsets = [0, 24], sizes = [8, 8], strides = [1, 1]} : vector<8x32xf32> to vector<8x8xf32>
    %841 = vector.extract_strided_slice %784 {offsets = [0, 24], sizes = [8, 8], strides = [1, 1]} : vector<8x32xf32> to vector<8x8xf32>
    %cst_371 = arith.constant dense<0.000000e+00> : vector<8x8xf32>
    %842 = tpu.matmul %840, %841, %cst_371 {dimension_numbers = #tpu.dot_dimension_numbers<[1], [1], [0], [0], [0, 0, 1, 0], [], []>} : vector<8x8xf32>, vector<8x8xf32>, vector<8x8xf32> -> vector<8x8xf32>
    %cst_372 = arith.constant 0.353553385 : f32
    %843 = vector.broadcast %cst_372 : f32 to vector<8x8xf32>
    %844 = arith.mulf %842, %843 : vector<8x8xf32>
    %845 = arith.addf %844, %3 : vector<8x8xf32>
    %cst_373 = arith.constant dense<0xFF800000> : vector<8xf32>
    %846 = vector.multi_reduction <maximumf>, %845, %cst_373 [1] : vector<8x8xf32> to vector<8xf32>
    %847 = vector.shape_cast %846 : vector<8xf32> to vector<8x1xf32>
    %848 = vector.broadcast %847 : vector<8x1xf32> to vector<8x8xf32>
    %849 = arith.subf %845, %848 : vector<8x8xf32>
    %850 = math.exp %849 : vector<8x8xf32>
    %cst_374 = arith.constant dense<0.000000e+00> : vector<8xf32>
    %851 = vector.multi_reduction <add>, %850, %cst_374 [1] : vector<8x8xf32> to vector<8xf32>
    %852 = vector.shape_cast %851 : vector<8xf32> to vector<8x1xf32>
    %853 = tpu.reciprocal %852 {approx = true} : vector<8x1xf32> -> vector<8x1xf32>
    %854 = vector.broadcast %853 : vector<8x1xf32> to vector<8x8xf32>
    %855 = arith.mulf %850, %854 : vector<8x8xf32>
    %856 = vector.extract_strided_slice %785 {offsets = [0, 24], sizes = [8, 8], strides = [1, 1]} : vector<8x32xf32> to vector<8x8xf32>
    %cst_375 = arith.constant dense<0.000000e+00> : vector<8x8xf32>
    %857 = tpu.matmul %855, %856, %cst_375 {dimension_numbers = #tpu.dot_dimension_numbers<[1], [0], [0], [1], [0, 0, 1, 1], [], []>} : vector<8x8xf32>, vector<8x8xf32>, vector<8x8xf32> -> vector<8x8xf32>
    %858 = tpu.concatenate %803, %821, %839, %857 in 1 : vector<8x8xf32>, vector<8x8xf32>, vector<8x8xf32>, vector<8x8xf32> -> vector<8x32xf32>
    %c1_376 = arith.constant 1 : index
    %c0_377 = arith.constant 0 : index
    %c0_378 = arith.constant 0 : index
    %859 = vector.load %arg26[%c1_376, %c0_377, %c0_378] : memref<2x32x32xf32, #tpu.memory_space<vmem>>, vector<1x32x32xf32>
    %860 = vector.shape_cast %859 : vector<1x32x32xf32> to vector<32x32xf32>
    %c1_379 = arith.constant 1 : index
    %c0_380 = arith.constant 0 : index
    %c0_381 = arith.constant 0 : index
    %861 = vector.load %arg27[%c1_379, %c0_380, %c0_381] : memref<2x1x32xf32, #tpu.memory_space<vmem>>, vector<1x1x32xf32>
    %862 = vector.shape_cast %861 : vector<1x1x32xf32> to vector<1x32xf32>
    %cst_382 = arith.constant dense<0.000000e+00> : vector<8x32xf32>
    %863 = tpu.matmul %858, %860, %cst_382 {dimension_numbers = #tpu.dot_dimension_numbers<[1], [0], [0], [1], [0, 0, 1, 1], [], []>} : vector<8x32xf32>, vector<32x32xf32>, vector<8x32xf32> -> vector<8x32xf32>
    %864 = vector.broadcast %862 : vector<1x32xf32> to vector<8x32xf32>
    %865 = arith.addf %863, %864 : vector<8x32xf32>
    %866 = arith.addf %744, %865 : vector<8x32xf32>
    %c1_383 = arith.constant 1 : index
    %c0_384 = arith.constant 0 : index
    %c0_385 = arith.constant 0 : index
    %867 = vector.load %arg36[%c1_383, %c0_384, %c0_385] : memref<2x1x32xf32, #tpu.memory_space<vmem>>, vector<1x1x32xf32>
    %868 = vector.shape_cast %867 : vector<1x1x32xf32> to vector<1x32xf32>
    %c1_386 = arith.constant 1 : index
    %c0_387 = arith.constant 0 : index
    %c0_388 = arith.constant 0 : index
    %869 = vector.load %arg37[%c1_386, %c0_387, %c0_388] : memref<2x1x32xf32, #tpu.memory_space<vmem>>, vector<1x1x32xf32>
    %870 = vector.shape_cast %869 : vector<1x1x32xf32> to vector<1x32xf32>
    %cst_389 = arith.constant dense<0.000000e+00> : vector<8xf32>
    %871 = vector.multi_reduction <add>, %866, %cst_389 [1] : vector<8x32xf32> to vector<8xf32>
    %872 = vector.shape_cast %871 : vector<8xf32> to vector<8x1xf32>
    %cst_390 = arith.constant 3.200000e+01 : f32
    %873 = vector.broadcast %cst_390 : f32 to vector<8x1xf32>
    %874 = arith.divf %872, %873 : vector<8x1xf32>
    %875 = vector.broadcast %874 : vector<8x1xf32> to vector<8x32xf32>
    %876 = arith.subf %866, %875 : vector<8x32xf32>
    %877 = arith.mulf %876, %876 : vector<8x32xf32>
    %cst_391 = arith.constant dense<0.000000e+00> : vector<8xf32>
    %878 = vector.multi_reduction <add>, %877, %cst_391 [1] : vector<8x32xf32> to vector<8xf32>
    %879 = vector.shape_cast %878 : vector<8xf32> to vector<8x1xf32>
    %cst_392 = arith.constant 0.0322580636 : f32
    %880 = vector.broadcast %cst_392 : f32 to vector<8x1xf32>
    %881 = arith.mulf %879, %880 : vector<8x1xf32>
    %882 = math.sqrt %881 : vector<8x1xf32>
    %cst_393 = arith.constant 9.99999997E-7 : f32
    %883 = vector.broadcast %cst_393 : f32 to vector<8x1xf32>
    %884 = arith.addf %882, %883 : vector<8x1xf32>
    %885 = tpu.reciprocal %884 {approx = true} : vector<8x1xf32> -> vector<8x1xf32>
    %886 = vector.broadcast %885 : vector<8x1xf32> to vector<8x32xf32>
    %887 = arith.mulf %876, %886 : vector<8x32xf32>
    %888 = vector.broadcast %868 : vector<1x32xf32> to vector<8x32xf32>
    %889 = arith.mulf %888, %887 : vector<8x32xf32>
    %890 = vector.broadcast %870 : vector<1x32xf32> to vector<8x32xf32>
    %891 = arith.addf %889, %890 : vector<8x32xf32>
    %c1_394 = arith.constant 1 : index
    %c0_395 = arith.constant 0 : index
    %c0_396 = arith.constant 0 : index
    %892 = vector.load %arg28[%c1_394, %c0_395, %c0_396] : memref<2x32x64xf32, #tpu.memory_space<vmem>>, vector<1x32x64xf32>
    %893 = vector.shape_cast %892 : vector<1x32x64xf32> to vector<32x64xf32>
    %c1_397 = arith.constant 1 : index
    %c0_398 = arith.constant 0 : index
    %c0_399 = arith.constant 0 : index
    %894 = vector.load %arg29[%c1_397, %c0_398, %c0_399] : memref<2x1x64xf32, #tpu.memory_space<vmem>>, vector<1x1x64xf32>
    %895 = vector.shape_cast %894 : vector<1x1x64xf32> to vector<1x64xf32>
    %c1_400 = arith.constant 1 : index
    %c0_401 = arith.constant 0 : index
    %c0_402 = arith.constant 0 : index
    %896 = vector.load %arg30[%c1_400, %c0_401, %c0_402] : memref<2x64x32xf32, #tpu.memory_space<vmem>>, vector<1x64x32xf32>
    %897 = vector.shape_cast %896 : vector<1x64x32xf32> to vector<64x32xf32>
    %c1_403 = arith.constant 1 : index
    %c0_404 = arith.constant 0 : index
    %c0_405 = arith.constant 0 : index
    %898 = vector.load %arg31[%c1_403, %c0_404, %c0_405] : memref<2x1x32xf32, #tpu.memory_space<vmem>>, vector<1x1x32xf32>
    %899 = vector.shape_cast %898 : vector<1x1x32xf32> to vector<1x32xf32>
    %cst_406 = arith.constant dense<0.000000e+00> : vector<8x64xf32>
    %900 = tpu.matmul %891, %893, %cst_406 {dimension_numbers = #tpu.dot_dimension_numbers<[1], [0], [0], [1], [0, 0, 1, 1], [], []>} : vector<8x32xf32>, vector<32x64xf32>, vector<8x64xf32> -> vector<8x64xf32>
    %901 = vector.broadcast %895 : vector<1x64xf32> to vector<8x64xf32>
    %902 = arith.addf %900, %901 : vector<8x64xf32>
    %cst_407 = arith.constant 0.000000e+00 : f32
    %903 = vector.broadcast %cst_407 : f32 to vector<8x64xf32>
    %904 = arith.maximumf %902, %903 : vector<8x64xf32>
    %cst_408 = arith.constant dense<0.000000e+00> : vector<8x32xf32>
    %905 = tpu.matmul %904, %897, %cst_408 {dimension_numbers = #tpu.dot_dimension_numbers<[1], [0], [0], [1], [0, 0, 1, 1], [], []>} : vector<8x64xf32>, vector<64x32xf32>, vector<8x32xf32> -> vector<8x32xf32>
    %906 = vector.broadcast %899 : vector<1x32xf32> to vector<8x32xf32>
    %907 = arith.addf %905, %906 : vector<8x32xf32>
    %908 = arith.addf %866, %907 : vector<8x32xf32>
    %c0_409 = arith.constant 0 : index
    %c0_410 = arith.constant 0 : index
    %909 = vector.load %arg40[%c0_409, %c0_410] : memref<1x32xf32, #tpu.memory_space<vmem>>, vector<1x32xf32>
    %c0_411 = arith.constant 0 : index
    %c0_412 = arith.constant 0 : index
    %910 = vector.load %arg41[%c0_411, %c0_412] : memref<1x32xf32, #tpu.memory_space<vmem>>, vector<1x32xf32>
    %cst_413 = arith.constant dense<0.000000e+00> : vector<8xf32>
    %911 = vector.multi_reduction <add>, %908, %cst_413 [1] : vector<8x32xf32> to vector<8xf32>
    %912 = vector.shape_cast %911 : vector<8xf32> to vector<8x1xf32>
    %cst_414 = arith.constant 3.200000e+01 : f32
    %913 = vector.broadcast %cst_414 : f32 to vector<8x1xf32>
    %914 = arith.divf %912, %913 : vector<8x1xf32>
    %915 = vector.broadcast %914 : vector<8x1xf32> to vector<8x32xf32>
    %916 = arith.subf %908, %915 : vector<8x32xf32>
    %917 = arith.mulf %916, %916 : vector<8x32xf32>
    %cst_415 = arith.constant dense<0.000000e+00> : vector<8xf32>
    %918 = vector.multi_reduction <add>, %917, %cst_415 [1] : vector<8x32xf32> to vector<8xf32>
    %919 = vector.shape_cast %918 : vector<8xf32> to vector<8x1xf32>
    %cst_416 = arith.constant 0.0322580636 : f32
    %920 = vector.broadcast %cst_416 : f32 to vector<8x1xf32>
    %921 = arith.mulf %919, %920 : vector<8x1xf32>
    %922 = math.sqrt %921 : vector<8x1xf32>
    %cst_417 = arith.constant 9.99999997E-7 : f32
    %923 = vector.broadcast %cst_417 : f32 to vector<8x1xf32>
    %924 = arith.addf %922, %923 : vector<8x1xf32>
    %925 = tpu.reciprocal %924 {approx = true} : vector<8x1xf32> -> vector<8x1xf32>
    %926 = vector.broadcast %925 : vector<8x1xf32> to vector<8x32xf32>
    %927 = arith.mulf %916, %926 : vector<8x32xf32>
    %928 = vector.broadcast %909 : vector<1x32xf32> to vector<8x32xf32>
    %929 = arith.mulf %928, %927 : vector<8x32xf32>
    %930 = vector.broadcast %910 : vector<1x32xf32> to vector<8x32xf32>
    %931 = arith.addf %929, %930 : vector<8x32xf32>
    %c0_418 = arith.constant 0 : index
    %c0_419 = arith.constant 0 : index
    %c0_420 = arith.constant 0 : index
    %932 = vector.load %arg42[%c0_418, %c0_419, %c0_420] : memref<1x8x32xf32, #tpu.memory_space<vmem>>, vector<1x8x32xf32>
    %933 = vector.shape_cast %932 : vector<1x8x32xf32> to vector<8x32xf32>
    %934 = vector.shape_cast %931 : vector<8x32xf32> to vector<1x8x32xf32>
    tpu.vector_store %arg42[%c0_418, %c0_419, %c0_420], %934 {strides = array<i32>} : memref<1x8x32xf32, #tpu.memory_space<vmem>>, vector<1x8x32xf32>,
    return
  }
  func.func @transform_0(%arg0: i32) -> (i32, i32, i32) {
    %c0_i32 = arith.constant 0 : i32
    %c0_i32_0 = arith.constant 0 : i32
    %c0_i32_1 = arith.constant 0 : i32
    return %arg0, %c0_i32, %c0_i32_0 : i32, i32, i32
  }
  func.func @transform_1(%arg0: i32) -> (i32, i32, i32) {
    %c0_i32 = arith.constant 0 : i32
    %c0_i32_0 = arith.constant 0 : i32
    %c0_i32_1 = arith.constant 0 : i32
    return %arg0, %c0_i32, %c0_i32_0 : i32, i32, i32
  }
  func.func @transform_2(%arg0: i32) -> (i32, i32, i32) {
    %c0_i32 = arith.constant 0 : i32
    %c0_i32_0 = arith.constant 0 : i32
    %c0_i32_1 = arith.constant 0 : i32
    return %arg0, %c0_i32, %c0_i32_0 : i32, i32, i32
  }
  func.func @transform_3(%arg0: i32) -> (i32, i32, i32) {
    %c0_i32 = arith.constant 0 : i32
    %c0_i32_0 = arith.constant 0 : i32
    %c0_i32_1 = arith.constant 0 : i32
    return %arg0, %c0_i32, %c0_i32_0 : i32, i32, i32
  }
  func.func @transform_4(%arg0: i32) -> (i32, i32, i32) {
    %c0_i32 = arith.constant 0 : i32
    %c0_i32_0 = arith.constant 0 : i32
    %c0_i32_1 = arith.constant 0 : i32
    return %arg0, %c0_i32, %c0_i32_0 : i32, i32, i32
  }
  func.func @transform_5(%arg0: i32) -> (i32, i32, i32) {
    %c0_i32 = arith.constant 0 : i32
    %c0_i32_0 = arith.constant 0 : i32
    %c0_i32_1 = arith.constant 0 : i32
    %c0_i32_2 = arith.constant 0 : i32
    return %c0_i32, %c0_i32_0, %c0_i32_1 : i32, i32, i32
  }
  func.func @transform_6(%arg0: i32) -> (i32, i32, i32) {
    %c0_i32 = arith.constant 0 : i32
    %c0_i32_0 = arith.constant 0 : i32
    %c0_i32_1 = arith.constant 0 : i32
    %c0_i32_2 = arith.constant 0 : i32
    return %c0_i32, %c0_i32_0, %c0_i32_1 : i32, i32, i32
  }
  func.func @transform_7(%arg0: i32) -> (i32, i32, i32) {
    %c0_i32 = arith.constant 0 : i32
    %c0_i32_0 = arith.constant 0 : i32
    %c0_i32_1 = arith.constant 0 : i32
    %c0_i32_2 = arith.constant 0 : i32
    return %c0_i32, %c0_i32_0, %c0_i32_1 : i32, i32, i32
  }
  func.func @transform_8(%arg0: i32) -> (i32, i32, i32) {
    %c0_i32 = arith.constant 0 : i32
    %c0_i32_0 = arith.constant 0 : i32
    %c0_i32_1 = arith.constant 0 : i32
    %c0_i32_2 = arith.constant 0 : i32
    return %c0_i32, %c0_i32_0, %c0_i32_1 : i32, i32, i32
  }
  func.func @transform_9(%arg0: i32) -> (i32, i32, i32) {
    %c0_i32 = arith.constant 0 : i32
    %c0_i32_0 = arith.constant 0 : i32
    %c0_i32_1 = arith.constant 0 : i32
    %c0_i32_2 = arith.constant 0 : i32
    return %c0_i32, %c0_i32_0, %c0_i32_1 : i32, i32, i32
  }
  func.func @transform_10(%arg0: i32) -> (i32, i32, i32) {
    %c0_i32 = arith.constant 0 : i32
    %c0_i32_0 = arith.constant 0 : i32
    %c0_i32_1 = arith.constant 0 : i32
    %c0_i32_2 = arith.constant 0 : i32
    return %c0_i32, %c0_i32_0, %c0_i32_1 : i32, i32, i32
  }
  func.func @transform_11(%arg0: i32) -> (i32, i32, i32) {
    %c0_i32 = arith.constant 0 : i32
    %c0_i32_0 = arith.constant 0 : i32
    %c0_i32_1 = arith.constant 0 : i32
    %c0_i32_2 = arith.constant 0 : i32
    return %c0_i32, %c0_i32_0, %c0_i32_1 : i32, i32, i32
  }
  func.func @transform_12(%arg0: i32) -> (i32, i32, i32) {
    %c0_i32 = arith.constant 0 : i32
    %c0_i32_0 = arith.constant 0 : i32
    %c0_i32_1 = arith.constant 0 : i32
    %c0_i32_2 = arith.constant 0 : i32
    return %c0_i32, %c0_i32_0, %c0_i32_1 : i32, i32, i32
  }
  func.func @transform_13(%arg0: i32) -> (i32, i32, i32) {
    %c0_i32 = arith.constant 0 : i32
    %c0_i32_0 = arith.constant 0 : i32
    %c0_i32_1 = arith.constant 0 : i32
    %c0_i32_2 = arith.constant 0 : i32
    return %c0_i32, %c0_i32_0, %c0_i32_1 : i32, i32, i32
  }
  func.func @transform_14(%arg0: i32) -> (i32, i32, i32) {
    %c0_i32 = arith.constant 0 : i32
    %c0_i32_0 = arith.constant 0 : i32
    %c0_i32_1 = arith.constant 0 : i32
    %c0_i32_2 = arith.constant 0 : i32
    return %c0_i32, %c0_i32_0, %c0_i32_1 : i32, i32, i32
  }
  func.func @transform_15(%arg0: i32) -> (i32, i32, i32) {
    %c0_i32 = arith.constant 0 : i32
    %c0_i32_0 = arith.constant 0 : i32
    %c0_i32_1 = arith.constant 0 : i32
    %c0_i32_2 = arith.constant 0 : i32
    return %c0_i32, %c0_i32_0, %c0_i32_1 : i32, i32, i32
  }
  func.func @transform_16(%arg0: i32) -> (i32, i32, i32) {
    %c0_i32 = arith.constant 0 : i32
    %c0_i32_0 = arith.constant 0 : i32
    %c0_i32_1 = arith.constant 0 : i32
    %c0_i32_2 = arith.constant 0 : i32
    return %c0_i32, %c0_i32_0, %c0_i32_1 : i32, i32, i32
  }
  func.func @transform_17(%arg0: i32) -> (i32, i32, i32) {
    %c0_i32 = arith.constant 0 : i32
    %c0_i32_0 = arith.constant 0 : i32
    %c0_i32_1 = arith.constant 0 : i32
    %c0_i32_2 = arith.constant 0 : i32
    return %c0_i32, %c0_i32_0, %c0_i32_1 : i32, i32, i32
  }
  func.func @transform_18(%arg0: i32) -> (i32, i32, i32) {
    %c0_i32 = arith.constant 0 : i32
    %c0_i32_0 = arith.constant 0 : i32
    %c0_i32_1 = arith.constant 0 : i32
    %c0_i32_2 = arith.constant 0 : i32
    return %c0_i32, %c0_i32_0, %c0_i32_1 : i32, i32, i32
  }
  func.func @transform_19(%arg0: i32) -> (i32, i32, i32) {
    %c0_i32 = arith.constant 0 : i32
    %c0_i32_0 = arith.constant 0 : i32
    %c0_i32_1 = arith.constant 0 : i32
    %c0_i32_2 = arith.constant 0 : i32
    return %c0_i32, %c0_i32_0, %c0_i32_1 : i32, i32, i32
  }
  func.func @transform_20(%arg0: i32) -> (i32, i32, i32) {
    %c0_i32 = arith.constant 0 : i32
    %c0_i32_0 = arith.constant 0 : i32
    %c0_i32_1 = arith.constant 0 : i32
    %c0_i32_2 = arith.constant 0 : i32
    return %c0_i32, %c0_i32_0, %c0_i32_1 : i32, i32, i32
  }
  func.func @transform_21(%arg0: i32) -> (i32, i32, i32) {
    %c0_i32 = arith.constant 0 : i32
    %c0_i32_0 = arith.constant 0 : i32
    %c0_i32_1 = arith.constant 0 : i32
    %c0_i32_2 = arith.constant 0 : i32
    return %c0_i32, %c0_i32_0, %c0_i32_1 : i32, i32, i32
  }
  func.func @transform_22(%arg0: i32) -> (i32, i32, i32) {
    %c0_i32 = arith.constant 0 : i32
    %c0_i32_0 = arith.constant 0 : i32
    %c0_i32_1 = arith.constant 0 : i32
    %c0_i32_2 = arith.constant 0 : i32
    return %c0_i32, %c0_i32_0, %c0_i32_1 : i32, i32, i32
  }
  func.func @transform_23(%arg0: i32) -> (i32, i32, i32) {
    %c0_i32 = arith.constant 0 : i32
    %c0_i32_0 = arith.constant 0 : i32
    %c0_i32_1 = arith.constant 0 : i32
    %c0_i32_2 = arith.constant 0 : i32
    return %c0_i32, %c0_i32_0, %c0_i32_1 : i32, i32, i32
  }
  func.func @transform_24(%arg0: i32) -> (i32, i32, i32) {
    %c0_i32 = arith.constant 0 : i32
    %c0_i32_0 = arith.constant 0 : i32
    %c0_i32_1 = arith.constant 0 : i32
    %c0_i32_2 = arith.constant 0 : i32
    return %c0_i32, %c0_i32_0, %c0_i32_1 : i32, i32, i32
  }
  func.func @transform_25(%arg0: i32) -> (i32, i32, i32) {
    %c0_i32 = arith.constant 0 : i32
    %c0_i32_0 = arith.constant 0 : i32
    %c0_i32_1 = arith.constant 0 : i32
    %c0_i32_2 = arith.constant 0 : i32
    return %c0_i32, %c0_i32_0, %c0_i32_1 : i32, i32, i32
  }
  func.func @transform_26(%arg0: i32) -> (i32, i32, i32) {
    %c0_i32 = arith.constant 0 : i32
    %c0_i32_0 = arith.constant 0 : i32
    %c0_i32_1 = arith.constant 0 : i32
    %c0_i32_2 = arith.constant 0 : i32
    return %c0_i32, %c0_i32_0, %c0_i32_1 : i32, i32, i32
  }
  func.func @transform_27(%arg0: i32) -> (i32, i32, i32) {
    %c0_i32 = arith.constant 0 : i32
    %c0_i32_0 = arith.constant 0 : i32
    %c0_i32_1 = arith.constant 0 : i32
    %c0_i32_2 = arith.constant 0 : i32
    return %c0_i32, %c0_i32_0, %c0_i32_1 : i32, i32, i32
  }
  func.func @transform_28(%arg0: i32) -> (i32, i32, i32) {
    %c0_i32 = arith.constant 0 : i32
    %c0_i32_0 = arith.constant 0 : i32
    %c0_i32_1 = arith.constant 0 : i32
    %c0_i32_2 = arith.constant 0 : i32
    return %c0_i32, %c0_i32_0, %c0_i32_1 : i32, i32, i32
  }
  func.func @transform_29(%arg0: i32) -> (i32, i32, i32) {
    %c0_i32 = arith.constant 0 : i32
    %c0_i32_0 = arith.constant 0 : i32
    %c0_i32_1 = arith.constant 0 : i32
    %c0_i32_2 = arith.constant 0 : i32
    return %c0_i32, %c0_i32_0, %c0_i32_1 : i32, i32, i32
  }
  func.func @transform_30(%arg0: i32) -> (i32, i32, i32) {
    %c0_i32 = arith.constant 0 : i32
    %c0_i32_0 = arith.constant 0 : i32
    %c0_i32_1 = arith.constant 0 : i32
    %c0_i32_2 = arith.constant 0 : i32
    return %c0_i32, %c0_i32_0, %c0_i32_1 : i32, i32, i32
  }
  func.func @transform_31(%arg0: i32) -> (i32, i32, i32) {
    %c0_i32 = arith.constant 0 : i32
    %c0_i32_0 = arith.constant 0 : i32
    %c0_i32_1 = arith.constant 0 : i32
    %c0_i32_2 = arith.constant 0 : i32
    return %c0_i32, %c0_i32_0, %c0_i32_1 : i32, i32, i32
  }
  func.func @transform_32(%arg0: i32) -> (i32, i32, i32) {
    %c0_i32 = arith.constant 0 : i32
    %c0_i32_0 = arith.constant 0 : i32
    %c0_i32_1 = arith.constant 0 : i32
    %c0_i32_2 = arith.constant 0 : i32
    return %c0_i32, %c0_i32_0, %c0_i32_1 : i32, i32, i32
  }
  func.func @transform_33(%arg0: i32) -> (i32, i32, i32) {
    %c0_i32 = arith.constant 0 : i32
    %c0_i32_0 = arith.constant 0 : i32
    %c0_i32_1 = arith.constant 0 : i32
    %c0_i32_2 = arith.constant 0 : i32
    return %c0_i32, %c0_i32_0, %c0_i32_1 : i32, i32, i32
  }
  func.func @transform_34(%arg0: i32) -> (i32, i32, i32) {
    %c0_i32 = arith.constant 0 : i32
    %c0_i32_0 = arith.constant 0 : i32
    %c0_i32_1 = arith.constant 0 : i32
    %c0_i32_2 = arith.constant 0 : i32
    return %c0_i32, %c0_i32_0, %c0_i32_1 : i32, i32, i32
  }
  func.func @transform_35(%arg0: i32) -> (i32, i32, i32) {
    %c0_i32 = arith.constant 0 : i32
    %c0_i32_0 = arith.constant 0 : i32
    %c0_i32_1 = arith.constant 0 : i32
    %c0_i32_2 = arith.constant 0 : i32
    return %c0_i32, %c0_i32_0, %c0_i32_1 : i32, i32, i32
  }
  func.func @transform_36(%arg0: i32) -> (i32, i32, i32) {
    %c0_i32 = arith.constant 0 : i32
    %c0_i32_0 = arith.constant 0 : i32
    %c0_i32_1 = arith.constant 0 : i32
    %c0_i32_2 = arith.constant 0 : i32
    return %c0_i32, %c0_i32_0, %c0_i32_1 : i32, i32, i32
  }
  func.func @transform_37(%arg0: i32) -> (i32, i32) {
    %c0_i32 = arith.constant 0 : i32
    %c0_i32_0 = arith.constant 0 : i32
    %c0_i32_1 = arith.constant 0 : i32
    return %c0_i32, %c0_i32_0 : i32, i32
  }
  func.func @transform_38(%arg0: i32) -> (i32, i32) {
    %c0_i32 = arith.constant 0 : i32
    %c0_i32_0 = arith.constant 0 : i32
    %c0_i32_1 = arith.constant 0 : i32
    return %c0_i32, %c0_i32_0 : i32, i32
  }
  func.func @transform_39(%arg0: i32) -> (i32, i32) {
    %c0_i32 = arith.constant 0 : i32
    %c0_i32_0 = arith.constant 0 : i32
    %c0_i32_1 = arith.constant 0 : i32
    return %c0_i32, %c0_i32_0 : i32, i32
  }
  func.func @transform_40(%arg0: i32) -> (i32, i32) {
    %c0_i32 = arith.constant 0 : i32
    %c0_i32_0 = arith.constant 0 : i32
    %c0_i32_1 = arith.constant 0 : i32
    return %c0_i32, %c0_i32_0 : i32, i32
  }
  func.func @transform_41(%arg0: i32) -> (i32, i32, i32) {
    %c0_i32 = arith.constant 0 : i32
    %c0_i32_0 = arith.constant 0 : i32
    %c0_i32_1 = arith.constant 0 : i32
    return %arg0, %c0_i32, %c0_i32_0 : i32, i32, i32
  }
}

</mosaic_0001>

<bundles_post_ra>
// kernel: encoder_decoder_forward.1
= control target key start
LH: loop header
LB: loop body
LE: loop exit
PB: predicated region body
PF: predicated region fallthrough
CT: control target
= control target key end

     0   :  { %s4868_s6 = smov 1   ;;  %s4869_s10 = smov 2   ;;  %s5839_s0 = inlined_call_operand.smem [shape: u32[42], index: -1, kind: input, shape index: {}] }
   0x1   :  { %s4932_s5 = sld [smem:[%s5839_s0]]   ;;  %s4870_s14 = smov 3  }
   0x2   :  { %s4937_s9 = sld [smem:[%s5839_s0 + %s4868_s6]]   ;;  %s4871_s18 = smov 4  }
   0x3   :  { %s4942_s13 = sld [smem:[%s5839_s0 + %s4869_s10]]   ;;  %s4872_s22 = smov 5  }
   0x4   :  { %s4947_s17 = sld [smem:[%s5839_s0 + %s4870_s14]]   ;;  %s4873_s26 = smov 6  }
   0x5   :  { %s4952_s21 = sld [smem:[%s5839_s0 + %s4871_s18]]   ;;  %s4874_s30 = smov 7  }
   0x6   :  { %s4957_s25 = sld [smem:[%s5839_s0 + %s4872_s22]]   ;;  %s4875_s4 = smov 8  }
   0x7   :  { %5913 = sst [smem:[#allocation5_spill]] %s4932_s5  ;;  %s4876_s10 = smov 9  }
   0x8   :  { %5914 = sst [smem:[#allocation6_spill]] %s4937_s9  ;;  %s4877_s15 = smov 10  }
   0x9   :  { %5915 = sst [smem:[#allocation7_spill]] %s4942_s13  ;;  %s4878_s20 = smov 11  }
   0xa   :  { %5916 = sst [smem:[#allocation8_spill]] %s4947_s17  ;;  %s4880_s1 = smov 13  }
   0xb   :  { %5917 = sst [smem:[#allocation9_spill]] %s4952_s21  ;;  %s4881_s7 = smov 14  }
   0xc   :  { %5918 = sst [smem:[#allocation10_spill]] %s4957_s25  ;;  %s4883_s22 = smov 16  }
   0xd   :  { %s4962_s29 = sld [smem:[%s5839_s0 + %s4873_s26]]   ;;  %s4879_s26 = smov 12  }
   0xe   :  { %s4967_s3 = sld [smem:[%s5839_s0 + %s4874_s30]]   ;;  %s4884_s28 = smov 17  }
   0xf   :  { %s4972_s8 = sld [smem:[%s5839_s0 + %s4875_s4]]  }
  0x10   :  { %s4977_s14 = sld [smem:[%s5839_s0 + %s4876_s10]]  }
  0x11   :  { %s4982_s19 = sld [smem:[%s5839_s0 + %s4877_s15]]   ;;  %s4882_s15 = smov 15  }
  0x12   :  { %s4987_s24 = sld [smem:[%s5839_s0 + %s4878_s20]]  }
  0x13   :  { %5919 = sst [smem:[#allocation11_spill]] %s4962_s29 }
  0x14   :  { %5920 = sst [smem:[#allocation12_spill]] %s4967_s3 }
  0x15   :  { %5921 = sst [smem:[#allocation13_spill]] %s4972_s8 }
  0x16   :  { %5922 = sst [smem:[#allocation14_spill]] %s4977_s14 }
  0x17   :  { %5923 = sst [smem:[#allocation15_spill]] %s4982_s19 }
  0x18   :  { %5924 = sst [smem:[#allocation16_spill]] %s4987_s24 }
  0x19   :  { %s4992_s30 = sld [smem:[%s5839_s0 + %s4879_s26]]  }
  0x1a   :  { %s4997_s6 = sld [smem:[%s5839_s0 + %s4880_s1]]  }
  0x1b   :  { %s5002_s12 = sld [smem:[%s5839_s0 + %s4881_s7]]   ;;  %s4885_s7 = smov 18  }
  0x1c   :  { %s5007_s20 = sld [smem:[%s5839_s0 + %s4882_s15]]   ;;  %s4886_s15 = smov 19  }
  0x1d   :  { %s5012_s27 = sld [smem:[%s5839_s0 + %s4883_s22]]   ;;  %s4887_s22 = smov 20  }
  0x1e   :  { %s5017_s4 = sld [smem:[%s5839_s0 + %s4884_s28]]   ;;  %s4888_s28 = smov 21  }
  0x1f   :  { %5925 = sst [smem:[#allocation17_spill]] %s4992_s30 }
  0x20   :  { %5926 = sst [smem:[#allocation18_spill]] %s4997_s6 }
  0x21   :  { %5927 = sst [smem:[#allocation19_spill]] %s5002_s12 }
  0x22   :  { %5928 = sst [smem:[#allocation20_spill]] %s5007_s20 }
  0x23   :  { %5929 = sst [smem:[#allocation21_spill]] %s5012_s27 }
  0x24   :  { %5930 = sst [smem:[#allocation22_spill]] %s5017_s4 }
  0x25   :  { %s5022_s17 = sld [smem:[%s5839_s0 + %s4885_s7]]   ;;  %s4889_s7 = smov 22  }
  0x26   :  { %s5027_s21 = sld [smem:[%s5839_s0 + %s4886_s15]]   ;;  %s4890_s15 = smov 23  }
  0x27   :  { %s5032_s9 = sld [smem:[%s5839_s0 + %s4887_s22]]   ;;  %s4891_s22 = smov 24  }
  0x28   :  { %s5037_s4 = sld [smem:[%s5839_s0 + %s4888_s28]]   ;;  %s4892_s28 = smov 25  }
  0x2b   :  { %5931 = sst [smem:[#allocation23_spill]] %s5022_s17 }
  0x2c   :  { %5932 = sst [smem:[#allocation24_spill]] %s5027_s21 }
  0x2d   :  { %5933 = sst [smem:[#allocation25_spill]] %s5032_s9 }
  0x2e   :  { %5934 = sst [smem:[#allocation26_spill]] %s5037_s4 }
  0x2f   :  { %s5042_s17 = sld [smem:[%s5839_s0 + %s4889_s7]]   ;;  %s4893_s7 = smov 26  }
  0x30   :  { %s5047_s21 = sld [smem:[%s5839_s0 + %s4890_s15]]   ;;  %s4894_s15 = smov 27  }
  0x31   :  { %s5052_s9 = sld [smem:[%s5839_s0 + %s4891_s22]]   ;;  %s4895_s22 = smov 28  }
  0x32   :  { %s5057_s4 = sld [smem:[%s5839_s0 + %s4892_s28]]   ;;  %s4896_s28 = smov 29  }
  0x35   :  { %5935 = sst [smem:[#allocation27_spill]] %s5042_s17 }
  0x36   :  { %5936 = sst [smem:[#allocation28_spill]] %s5047_s21 }
  0x37   :  { %5937 = sst [smem:[#allocation29_spill]] %s5052_s9 }
  0x38   :  { %5938 = sst [smem:[#allocation30_spill]] %s5057_s4 }
  0x39   :  { %s5062_s17 = sld [smem:[%s5839_s0 + %s4893_s7]]   ;;  %s4897_s7 = smov 30  }
  0x3a   :  { %s5067_s21 = sld [smem:[%s5839_s0 + %s4894_s15]]   ;;  %s4898_s15 = smov 31  }
  0x3b   :  { %s5072_s9 = sld [smem:[%s5839_s0 + %s4895_s22]]   ;;  %s4899_s22 = smov 32  }
  0x3c   :  { %s5077_s4 = sld [smem:[%s5839_s0 + %s4896_s28]]   ;;  %s4900_s28 = smov 33  }
  0x3f   :  { %5939 = sst [smem:[#allocation31_spill]] %s5062_s17 }
  0x40   :  { %5940 = sst [smem:[#allocation32_spill]] %s5067_s21 }
  0x41   :  { %5941 = sst [smem:[#allocation33_spill]] %s5072_s9 }
  0x42   :  { %5942 = sst [smem:[#allocation34_spill]] %s5077_s4 }
  0x43   :  { %s5082_s17 = sld [smem:[%s5839_s0 + %s4897_s7]]   ;;  %s4901_s7 = smov 34  }
  0x44   :  { %s5087_s21 = sld [smem:[%s5839_s0 + %s4898_s15]]   ;;  %s4902_s15 = smov 35  }
  0x45   :  { %s5092_s9 = sld [smem:[%s5839_s0 + %s4899_s22]]   ;;  %s4903_s22 = smov 36  }
  0x46   :  { %s5097_s4 = sld [smem:[%s5839_s0 + %s4900_s28]]   ;;  %s4904_s28 = smov 37  }
  0x49   :  { %5943 = sst [smem:[#allocation35_spill]] %s5082_s17 }
  0x4a   :  { %5944 = sst [smem:[#allocation36_spill]] %s5087_s21 }
  0x4b   :  { %5945 = sst [smem:[#allocation37_spill]] %s5092_s9 }
  0x4c   :  { %5946 = sst [smem:[#allocation38_spill]] %s5097_s4 }
  0x4d   :  { %s5102_s17 = sld [smem:[%s5839_s0 + %s4901_s7]]   ;;  %s4905_s7 = smov 38  }
  0x4e   :  { %s5107_s21 = sld [smem:[%s5839_s0 + %s4902_s15]]   ;;  %s4906_s15 = smov 39  }
  0x4f   :  { %s5112_s9 = sld [smem:[%s5839_s0 + %s4903_s22]]   ;;  %s4907_s22 = smov 40  }
  0x50   :  { %s5117_s4 = sld [smem:[%s5839_s0 + %s4904_s28]]   ;;  %s4908_s28 = smov 41  }
  0x53   :  { %5947 = sst [smem:[#allocation39_spill]] %s5102_s17 }
  0x54   :  { %5948 = sst [smem:[#allocation40_spill]] %s5107_s21 }
  0x55   :  { %5949 = sst [smem:[#allocation41_spill]] %s5112_s9 }
  0x56   :  { %5950 = sst [smem:[#allocation42_spill]] %s5117_s4 }
  0x57   :  { %s5122_s17 = sld [smem:[%s5839_s0 + %s4905_s7]]  }
  0x58   :  { %s5127_s21 = sld [smem:[%s5839_s0 + %s4906_s15]]  }
  0x59   :  { %s5132_s9 = sld [smem:[%s5839_s0 + %s4907_s22]]  }
  0x5a   :  { %s5137_s4 = sld [smem:[%s5839_s0 + %s4908_s28]]  }
  0x5d   :  { %5951 = sst [smem:[#allocation43_spill]] %s5122_s17 }
  0x5e   :  { %5952 = sst [smem:[#allocation44_spill]] %s5127_s21 }
  0x5f   :  { %5953 = sst [smem:[#allocation45_spill]] %s5132_s9 }
  0x60   :  { %5954 = sst [smem:[#allocation46_spill]] %s5137_s4 }
  0x61   :  { %88 = vsyncpa [#allocation3], 0 }
  0x62   :  { %90 = vsyncpa [#allocation3 + $0x1], 0  ;;  %s5139_s7 = smov 0   ;;  %s5141_s10 = smov 0  }
  0x63   :  { %s5143_s11 = smov 0   ;;  %s5145_s15 = smov 0  }
  0x64 LB: > { %s5955_s30 = sld [smem:[#allocation17_spill]]  ;;  %s5160_s0 = sadd.s32 4294967295, %s4866_s15   ;;  %s4866_s15 = sphi %s5145_s15, %s6035_s15   ;;  %s4862_s11 = sphi %s5143_s11, %s6038_s11   ;;  %s4858_s10 = sphi %s5141_s10, %s6037_s10   ;;  %s4854_s7 = sphi %s5139_s7, %s6036_s7  }
  0x65   : > { %s5956_s27 = sld [smem:[#allocation21_spill]]  ;;  %s4335_s16 = sadd.s32 4294967294, %s4866_s15  }
  0x66   : > { %s5957_s24 = sld [smem:[#allocation16_spill]]  ;;  %s5164_s18 = sadd.s32 1, %s4866_s15  }
  0x67   : > { %s5958_s20 = sld [smem:[#allocation20_spill]]  ;;  %s989_s22 = sadd.s32 1, %s4862_s11 }
  0x68   : > { %s5959_s19 = sld [smem:[#allocation15_spill]]  ;;  %s986_s23 = ssub.s32 %s4866_s15, %s5164_s18 }
  0x69   : > { %s5960_s14 = sld [smem:[#allocation14_spill]]  ;;  %p999_p0 = scmp.ne.s32.totalorder %s4862_s11, %s4858_s10 }
  0x6a   : > { %s5961_s8 = sld [smem:[#allocation13_spill]]  ;;  %p987_p1 = scmp.eq.s32.totalorder %s986_s23, 0 }
  0x6b   : > { %s5962_s3 = sld [smem:[#allocation12_spill]]  ;;  %p1000_p2 = scmp.eq.s32.totalorder %s5160_s0, 1 }
  0x6c   : > { %s5963_s29 = sld [smem:[#allocation11_spill]]  ;;  %p1005_p3 = scmp.ne.s32.totalorder %s4858_s10, %s4854_s7 }
  0x6d   : > { %s5964_s25 = sld [smem:[#allocation10_spill]]  ;;  %p1006_p4 = scmp.eq.s32.totalorder %s4335_s16, 1 }
  0x6e   : > { %s5965_s12 = sld [smem:[#allocation19_spill]]  ;;  %p5177_p5 = por %p1000_p2, %p999_p0 }
  0x6f   : > { %s5966_s6 = sld [smem:[#allocation18_spill]]  ;;  %p5181_p6 = por %p1006_p4, %p1005_p3 }
  0x70   : > { %5967 = sst [smem:[#allocation47_spill]] %s4854_s7  ;;  %p4338_p7 = scmp.ge.s32.totalorder %s4866_s15, 1 }
  0x71   : > { %5968 = sst [smem:[#allocation48_spill]] %s4858_s10  ;;  %p1167_p8 = scmp.lt.s32.totalorder %s4866_s15, 3 }
  0x72   : > { %5969 = sst [smem:[#allocation49_spill]] %s4862_s11 }
  0x73   : > { %5970 = sst [smem:[#allocation50_spill]] %s4866_s15  ;;  %p1168_p9 = pnand %p4338_p7, %p1167_p8 }
  0x74   : > { %5971 = sst [smem:[#allocation51_spill]] %s5160_s0  ;;  %p1282_p10 = scmp.lt.s32.totalorder (!%p1168_p9), %s5160_s0, 1 }
  0x75   : > { %5972 = sst [smem:[#allocation52_spill]] %s5164_s18  ;;  %s5861_s23 = smov (!%p1168_p9), 88  }
  0x76   : > { %s5175_s26 = scalar_select %p987_p1, %s4862_s11, %s989_s22  }
  0x77   : > { %s5974_s28 = scalar_select %p5177_p5, 1, 0 }
  0x78   : > { %5973 = sst [smem:[#allocation53_spill]] %s5175_s26  ;;  %1171 = sbr.rel (%p1168_p9) target bundleno = 10875 (0x2a7b), region = 184 }
  0x79   : > { %5975 = sst [smem:[#allocation54_spill]] %s5974_s28  ;;  %s5883_s26 = smov (!%p1168_p9), 120  }
  0x7a   : > { %s5976_s1 = scalar_select %p5181_p6, 1, 0 }
  0x7b   : > { %s5978_s5 = sld [smem:[#allocation5_spill]] (!%p1168_p9)  ;;  %s5865_s11 = smov (!%p1168_p9), 112  }
  0x7c   : > { %5977 = sst [smem:[#allocation55_spill]] %s5976_s1  ;;  %s5992_s18 = smov (!%p1168_p9), 16  }
  0x7d   : > { %s1283_s2 = scalar_select %p1282_p10, %s5160_s0, 1  ;;  %vm1308_vm0 = vcmask 261120   ;;  %v4909_v2 = vmov 32.0   ;;  %v1352_v14 = vld [vmem:[%s5964_s25 + $0x18] sm:$0xff]  ;;  %v1351_v15 = vld [vmem:[%s5964_s25 + $0x10] sm:$0xff]  ;;  %v1350_v16 = vld [vmem:[%s5964_s25 + $0x8] sm:$0xff] }
  0x7e   : > { %4657 = vrcp.f32 %v4909_v2  ;;  %1372 = vmatpush.msra.mxu0 %v1352_v14  ;;  %v1349_v17 = vld [vmem:[%s5964_s25] sm:$0xff]  ;;  %s5979_s13 = sld [smem:[#allocation7_spill]]  ;;  %vm1383_vm4 = vcmask 64512   ;;  %vm1661_vm5 = vcmask 130048   ;;  %vm1663_vm6 = vcmask 195584   ;;  %s5993_s1 = smov 8  }
  0x7f   : > { %s5189_s16 = sshll.u32 %s1283_s2, 3  ;;  %v4611_v31 = vld [vmem:[%s5966_s6] ss:$0 sm:$0xff]  ;;  %s5879_s2 = smov 64   ;;  %vm1776_vm9 = vcmask 523264  }
  0x80   : > { %1373 = vmatpush.msra.mxu0 %v1351_v15  ;;  %v4612_v34 = vld [vmem:[%s5965_s12] ss:$0 sm:$0xff]  ;;  %s5994_s7 = smov 24   ;;  %s5995_s15 = smov 96  }
  0x81   : > { %s1285_s22 = scalar_lea.vmem %s5978_s5, %s5189_s16  ;;  %v4613_v37 = vld [vmem:[%s5963_s29] ss:$0 sm:$0xff]  ;;  %s5881_s5 = smov 80  }
  0x82   : > { %v5193_v0 = vld [vmem:[%s1285_s22] sm:$0xff]  ;;  %1374 = vmatpush.msra.mxu0 %v1350_v16  ;;  %s5885_s22 = smov 96   ;;  %s5996_s28 = sld [smem:[#allocation9_spill]] }
  0x83   : > { %v1309_v1 = vsel %vm1308_vm0, %v5193_v0, 0.0  ;;  %s5998_s9 = smov 80   ;;  %s6004_s17 = sld [smem:[#allocation43_spill]] }
  0x84   : > { %1310 = vadd.xlane.f32.xlu0 %v1309_v1  ;;  %v4658_v3 = vpop.eup %4657  ;;  %1375 = vmatpush.msra.mxu0 %v1349_v17  ;;  %s6009_s4 = sld [smem:[#allocation27_spill]] }
  0x85   : > { %v1313_v4 = vmul.f32 32.0, %v4658_v3  ;;  %vm1317_vm1 = vweird.f32 %v4658_v3  ;;  %s6010_s21 = sld [smem:[#allocation8_spill]] }
  0x86   : > { %s6014_s10 = sld [smem:[#allocation34_spill]] }
  0x87   : > { %v1314_v5 = vsub.f32 1.0, %v1313_v4 }
  0x89   : > { %v1315_v6 = vmul.f32 %v4658_v3, %v1314_v5 }
  0x8b   : > { %v1316_v7 = vadd.f32 %v4658_v3, %v1315_v6  ;;  %s1297_s0 = scalar_lea.vmem %s6010_s21, %s5189_s16  ;;  %s6011_s21 = sld [smem:[#allocation30_spill]] }
  0x8d   : > { %v5197_v8 = vsel %vm1317_vm1, %v4658_v3, %v1316_v7 }
  0xf7   : > { %v1311_v9 = vpop.xlane.xlu0 %1310 }
  0xf8   : > { %v1319_v10 = vmul.f32 %v5197_v8, %v1311_v9 }
  0xfa   : > { %v1320_v11 = vsub.f32 %v5193_v0, %v1319_v10 }
  0xfc   : > { %v1321_v12 = vmul.f32 %v1320_v11, %v1320_v11 }
  0xfe   : > { %v1322_v13 = vsel %vm1308_vm0, %v1321_v12, 0.0 }
  0xff   : > { %1323 = vadd.xlane.f32.xlu0 %v1322_v13 }
 0x172   : > { %v1324_v18 = vpop.xlane.xlu0 %1323 }
 0x173   : > { %v1325_v19 = vmul.f32 0.032258064, %v1324_v18 }
 0x175   : > { %4659 = vrsqrt.f32 %v1325_v19  ;;  %vm1333_vm2 = vcmp.eq.f32.partialorder %v1325_v19, inf  ;;  %v1336_v27 = vand.u32 2147483648, %v1325_v19  ;;  %vm1335_vm3 = vcmp.eq.f32.partialorder %v1325_v19, 0.0 }
 0x17b   : > { %v4660_v20 = vpop.eup %4659 }
 0x17c   : > { %v1327_v21 = vmul.f32 %v4660_v20, %v1325_v19 }
 0x17e   : > { %v1328_v22 = vmul.f32 %v4660_v20, %v1327_v21 }
 0x180   : > { %v1329_v23 = vmul.f32 0.5, %v1328_v22 }
 0x182   : > { %v1330_v24 = vsub.f32 1.5, %v1329_v23 }
 0x184   : > { %v1331_v25 = vmul.f32 %v4660_v20, %v1330_v24 }
 0x186   : > { %v1332_v26 = vmul.f32 %v1331_v25, %v1325_v19 }
 0x188   : > { %v1334_v28 = vsel %vm1333_vm2, %v1325_v19, %v1332_v26 }
 0x189   : > { %v1337_v29 = vsel %vm1335_vm3, %v1336_v27, %v1334_v28 }
 0x18a   : > { %v1338_v30 = vadd.f32 1e-06, %v1337_v29 }
 0x18c   : > { %4661 = vrcp.f32 %v1338_v30 }
 0x192   : > { %v4662_v32 = vpop.eup %4661 }
 0x193   : > { %v1340_v33 = vmul.f32 %v4662_v32, %v1320_v11 }
 0x195   : > { %v1344_v35 = vmul.f32 %v4611_v31, %v1340_v33 }
 0x197   : > { %v1348_v36 = vadd.f32 %v4612_v34, %v1344_v35 }
 0x199   : > { %4345 = vmatmul.msk.f32.vlgmr.msra.gmra.mxu0 %vm1308_vm0, %v1348_v36 }
 0x216   : > { %v1377_v38 = vpop.f32.mrf.mxu0 }
 0x217   : > { %v5210_v39 = vadd.f32 %v4613_v37, %v1377_v38 }
 0x219   : > { %1449 = vrot.lane.b32.xlu0 %v5210_v39, %s5861_s23  ;;  %1421 = vrot.lane.b32.xlu2 %v5210_v39, %s5879_s2  ;;  %s5863_s23 = smov 72  }
 0x21a   : > { %1381 = vrot.lane.b32.xlu1 %v5210_v39, %s5885_s22 }
 0x221   : > { %1516 = vrot.lane.b32.xlu0 %v5210_v39, %s5881_s5  ;;  %1447 = vrot.lane.b32.xlu2 %v5210_v39, %s5883_s26 }
 0x229   : > { %1514 = vrot.lane.b32.xlu0 %v5210_v39, %s5865_s11  ;;  %1583 = vrot.lane.b32.xlu2 %v5210_v39, %s5863_s23  ;;  %s1293_s23 = scalar_lea.vmem %s5979_s13, %s5189_s16  ;;  %s5867_s11 = smov 48  }
 0x22a   : > { %v5235_v47 = vld [vmem:[%s1293_s23] sm:$0xff]  ;;  %s5871_s23 = smov 104   ;;  %s5989_s13 = sld [smem:[#allocation36_spill]] }
 0x273   : > { %v1422_v40 = vpop.permute.xlu2 %1421 }
 0x274   : > { %1442 = vmatpush.msra.mxu3 %v1422_v40 }
 0x27b   : > { %v1448_v41 = vpop.permute.xlu2 %1447 }
 0x283   : > { %v1584_v42 = vpop.permute.xlu2 %1583 }
 0x284   : > { %4355 = vmatpush.xpose.msk.msrb.mxu0 %vm1383_vm4, %v1584_v42  ;;  %v1668_v42 = vld [vmem:[%s5962_s3 + $0x18] sm:$0xff] }
 0x28b   : > { %v1450_v43 = vpop.permute.xlu0 %1449 }
 0x28c   : > { %v1382_v44 = vpop.permute.xlu1 %1381  ;;  %4349 = vmatpush.xpose.msk.msrb.mxu3 %vm1383_vm4, %v1450_v43  ;;  %v1667_v43 = vld [vmem:[%s5962_s3 + $0x10] sm:$0xff] }
 0x28d   : > { %4346 = vmatpush.xpose.msk.msra.mxu1 %vm1383_vm4, %v1382_v44  ;;  %v1666_v44 = vld [vmem:[%s5962_s3 + $0x8] sm:$0xff] }
 0x290   : > { %4347 = vmatmul.msk.f32.vlgmr.msra.gmra.mxu1 %vm1383_vm4, %v5210_v39 }
 0x293   : > { %v1517_v45 = vpop.permute.xlu0 %1516 }
 0x294   : > { %4352 = vmatpush.xpose.msk.msrb.mxu1 %vm1383_vm4, %v1517_v45  ;;  %v1665_v45 = vld [vmem:[%s5962_s3] sm:$0xff] }
 0x298   : > { %1688 = vmatpush.msra.mxu1 %v1668_v42 }
 0x29a   : > { %1689 = vmatpush.msra.mxu1 %v1667_v43 }
 0x29b   : > { %v1515_v46 = vpop.permute.xlu0 %1514 }
 0x29c   : > { %4353 = vmatmul.msk.f32.vlgmr.msrb.gmra.mxu1 %vm1383_vm4, %v1515_v46 }
 0x29d   : > { %1690 = vmatpush.msra.mxu1 %v1666_v44 }
 0x29f   : > { %1691 = vmatpush.msra.mxu1 %v1665_v45  ;;  %v4366_v45 = vld [vmem:[%s5964_s25 + $0x38] sm:$0xff] }
 0x30d   : > { %v1405_v48 = vpop.f32.mrf.mxu1 }
 0x30e   : > { %v1408_v49 = vmul.f32 0.35355338, %v1405_v48 }
 0x310   : > { %v1409_v50 = vadd.f32 %v1408_v49, %v5235_v47 }
 0x312   : > { %v1410_v51 = vsel %vm1383_vm4, %v1409_v50, -inf }
 0x313   : > { %1411 = vmax.xlane.f32.xlu1 %v1410_v51 }
 0x319   : > { %v1539_v52 = vpop.f32.mrf.mxu1 }
 0x31a   : > { %v1542_v53 = vmul.f32 0.35355338, %v1539_v52 }
 0x31c   : > { %v1543_v54 = vadd.f32 %v1542_v53, %v5235_v47  ;;  %v4614_v53 = vld [vmem:[%s5961_s8] ss:$0 sm:$0xff] }
 0x31e   : > { %v1544_v55 = vsel %vm1383_vm4, %v1543_v54, -inf }
 0x31f   : > { %1545 = vmax.xlane.f32.xlu0 %v1544_v55 }
 0x333   : > { %1555 = vrot.lane.b32.xlu0 %v5210_v39, %s5867_s11  ;;  %s5869_s11 = smov 40  }
 0x386   : > { %v1412_v56 = vpop.xlane.xlu1 %1411 }
 0x387   : > { %v1413_v57 = vsub.f32 %v1409_v50, %v1412_v56 }
 0x389   : > { %v1414_v58 = vmul.f32 1.442695, %v1413_v57 }
 0x38b   : > { %4663 = vpow2.f32 %v1414_v58 }
 0x391   : > { %v4664_v59 = vpop.eup %4663 }
 0x392   : > { %v1416_v60 = vsel %vm1383_vm4, %v4664_v59, 0.0  ;;  %v1546_v62 = vpop.xlane.xlu0 %1545 }
 0x393   : > { %1417 = vadd.xlane.f32.xlu2 %v1416_v60  ;;  %v1547_v10 = vsub.f32 %v1543_v54, %v1546_v62 }
 0x395   : > { %v1548_v11 = vmul.f32 1.442695, %v1547_v10 }
 0x3a5   : > { %v1556_v3 = vpop.permute.xlu0 %1555 }
 0x3ab   : > { %1581 = vrot.lane.b32.xlu2 %v5210_v39, %s5871_s23  ;;  %s5875_s23 = smov 16  }
 0x406   : > { %v1418_v61 = vpop.xlane.xlu2 %1417 }
 0x407   : > { %4665 = vrcp.f32 %v1418_v61 }
 0x408   : > { %4667 = vpow2.f32 %v1548_v11  ;;  %v1741_v11 = vld [vmem:[%s5957_s24 + $0x20] sm:$0xff] }
 0x40d   : > { %v4666_v63 = vpop.eup %4665 }
 0x40e   : > { %v1582_v1 = vpop.permute.xlu2 %1581  ;;  %v1420_v2 = vmul.f32 %v4666_v63, %v4664_v59  ;;  %v4668_v16 = vpop.eup %4667  ;;  %v1735_v63 = vld [vmem:[%s5960_s14 + $0x18] sm:$0xff] }
 0x40f   : > { %4356 = vmatmul.msk.f32.vlgmr.msrb.gmra.mxu0 %vm1383_vm4, %v1582_v1  ;;  %v1550_v17 = vsel %vm1383_vm4, %v4668_v16, 0.0  ;;  %v1734_v1 = vld [vmem:[%s5960_s14 + $0x10] sm:$0xff] }
 0x410   : > { %4348 = vmatmul.msk.f32.vlgmr.msra.gmra.mxu3 %vm1383_vm4, %v1420_v2  ;;  %v1732_v2 = vld [vmem:[%s5960_s14] sm:$0xff] }
 0x411   : > { %1576 = vmatpush.msra.mxu3 %v1556_v3 }
 0x418   : > { %4350 = vmatmul.msk.f32.vlgmr.msrb.gmra.mxu3 %vm1383_vm4, %v1448_v41 }
 0x419   : > { %1764 = vmatpush.msrb.mxu3 %v1735_v63  ;;  %v4619_v63 = vld [vmem:[%s5966_s6 + $0x1] ss:$0 sm:$0xff]  ;;  %s5987_s6 = smov 56  }
 0x41b   : > { %1765 = vmatpush.msrb.mxu3 %v1734_v1 }
 0x48c   : > { %v1606_v4 = vpop.f32.mrf.mxu0 }
 0x48d   : > { %v1609_v5 = vmul.f32 0.35355338, %v1606_v4 }
 0x48f   : > { %v1610_v6 = vadd.f32 %v1609_v5, %v5235_v47  ;;  %v1744_v5 = vld [vmem:[%s5957_s24 + $0x38] sm:$0xff] }
 0x490   : > { %1788 = vmatpush.msra.mxu0 %v1744_v5  ;;  %v4621_v5 = vld [vmem:[%s5963_s29 + $0x1] ss:$0 sm:$0xff]  ;;  %s5991_s29 = sld [smem:[#allocation23_spill]] }
 0x491   : > { %v1611_v7 = vsel %vm1383_vm4, %v1610_v6, -inf }
 0x492   : > { %1612 = vmax.xlane.f32.xlu2 %v1611_v7 }
 0x493   : > { %v5251_v9 = vpop.f32.mrf.mxu3 }
 0x49b   : > { %v1472_v12 = vpop.f32.mrf.mxu3 }
 0x49c   : > { %v1475_v13 = vmul.f32 0.35355338, %v1472_v12 }
 0x49e   : > { %v1476_v14 = vadd.f32 %v1475_v13, %v5235_v47  ;;  %v1740_v13 = vld [vmem:[%s5957_s24 + $0x18] sm:$0xff] }
 0x4a0   : > { %v1477_v15 = vsel %vm1383_vm4, %v1476_v14, -inf }
 0x4a1   : > { %1478 = vmax.xlane.f32.xlu1 %v1477_v15 }
 0x4a9   : > { %1551 = vadd.xlane.f32.xlu1 %v1550_v17 }
 0x4aa   : > { %1622 = vrot.lane.b32.xlu2 %v5210_v39, %s5869_s11  ;;  %s5873_s11 = smov 56  }
 0x505   : > { %v1613_v18 = vpop.xlane.xlu2 %1612 }
 0x506   : > { %v1614_v19 = vsub.f32 %v1610_v6, %v1613_v18  ;;  %v1743_v6 = vld [vmem:[%s5957_s24 + $0x30] sm:$0xff] }
 0x507   : > { %1789 = vmatpush.msra.mxu0 %v1743_v6 }
 0x508   : > { %v1615_v20 = vmul.f32 1.442695, %v1614_v19 }
 0x50a   : > { %4669 = vpow2.f32 %v1615_v20 }
 0x50d   : > { %v1623_v37 = vpop.permute.xlu2 %1622 }
 0x510   : > { %v4670_v21 = vpop.eup %4669 }
 0x511   : > { %v1617_v22 = vsel %vm1383_vm4, %v4670_v21, 0.0 }
 0x512   : > { %1618 = vadd.xlane.f32.xlu1 %v1617_v22  ;;  %v4615_v22 = vld [vmem:[%s5958_s20] ss:$0 sm:$0xff] }
 0x514   : > { %v1479_v23 = vpop.xlane.xlu1 %1478 }
 0x515   : > { %v1480_v24 = vsub.f32 %v1476_v14, %v1479_v23 }
 0x517   : > { %v1481_v25 = vmul.f32 1.442695, %v1480_v24 }
 0x519   : > { %4671 = vpow2.f32 %v1481_v25  ;;  %v4616_v25 = vld [vmem:[%s5956_s27] ss:$0 sm:$0xff] }
 0x51c   : > { %v1552_v26 = vpop.xlane.xlu1 %1551 }
 0x51d   : > { %4673 = vrcp.f32 %v1552_v26 }
 0x51f   : > { %v4672_v27 = vpop.eup %4671 }
 0x520   : > { %v1483_v28 = vsel %vm1383_vm4, %v4672_v27, 0.0 }
 0x521   : > { %1484 = vadd.xlane.f32.xlu1 %v1483_v28  ;;  %v1739_v28 = vld [vmem:[%s5957_s24 + $0x10] sm:$0xff] }
 0x523   : > { %v4674_v29 = vpop.eup %4673 }
 0x524   : > { %v1554_v30 = vmul.f32 %v4674_v29, %v4668_v16  ;;  %v1738_v29 = vld [vmem:[%s5957_s24 + $0x8] sm:$0xff] }
 0x526   : > { %4354 = vmatmul.msk.f32.vlgmr.msra.gmra.mxu3 %vm1383_vm4, %v1554_v30  ;;  %v1737_v30 = vld [vmem:[%s5957_s24] sm:$0xff] }
 0x53a   : > { %1488 = vrot.lane.b32.xlu1 %v5210_v39, %s5873_s11  ;;  %s5887_s11 = smov 8  }
 0x585   : > { %v1619_v31 = vpop.xlane.xlu1 %1618 }
 0x594   : > { %v1485_v32 = vpop.xlane.xlu1 %1484 }
 0x595   : > { %4675 = vrcp.f32 %v1485_v32 }
 0x596   : > { %4677 = vrcp.f32 %v1619_v31  ;;  %v4617_v31 = vld [vmem:[%s5959_s19] ss:$0 sm:$0xff] }
 0x59b   : > { %v4676_v33 = vpop.eup %4675 }
 0x59c   : > { %v1487_v36 = vmul.f32 %v4676_v33, %v4672_v27  ;;  %v4678_v38 = vpop.eup %4677 }
 0x59d   : > { %v1621_v39 = vmul.f32 %v4678_v38, %v4670_v21 }
 0x5a9   : > { %v1578_v34 = vpop.f32.mrf.mxu3 }
 0x5aa   : > { %1653 = vrot.lane.b32.xlu0 %v1578_v34, %s5875_s23  ;;  %s5877_s23 = smov 24  }
 0x5ac   : > { %v1489_v35 = vpop.permute.xlu1 %1488 }
 0x5ad   : > { %1509 = vmatpush.msra.mxu2 %v1489_v35  ;;  %v4618_v35 = vld [vmem:[%s5955_s30] ss:$0 sm:$0xff] }
 0x5ae   : > { %4351 = vmatmul.msk.f32.vlgmr.msra.gmra.mxu2 %vm1383_vm4, %v1487_v36 }
 0x5af   : > { %1643 = vmatpush.msrb.mxu2 %v1623_v37 }
 0x5b1   : > { %1863 = vmatpush.msra.mxu2 %v4366_v45 }
 0x5b6   : > { %4357 = vmatmul.msk.f32.vlgmr.msrb.gmra.mxu2 %vm1383_vm4, %v1621_v39 }
 0x61c   : > { %v1654_v49 = vpop.permute.xlu0 %1653 }
 0x631   : > { %v1511_v40 = vpop.f32.mrf.mxu2 }
 0x632   : > { %1649 = vrot.lane.b32.xlu1 %v1511_v40, %s5887_s11 }
 0x639   : > { %v1645_v41 = vpop.f32.mrf.mxu2 }
 0x63a   : > { %1657 = vrot.lane.b32.xlu1 %v1645_v41, %s5877_s23  ;;  %s5980_s23 = smov 112  }
 0x6a4   : > { %v1650_v46 = vpop.permute.xlu1 %1649 }
 0x6a5   : > { %v1660_v48 = vsel %vm1383_vm4, %v5251_v9, %v1650_v46  ;;  %v1742_v9 = vld [vmem:[%s5957_s24 + $0x28] sm:$0xff]  ;;  %v4365_v46 = vld [vmem:[%s5964_s25 + $0x30] sm:$0xff] }
 0x6a6   : > { %v1662_v50 = vsel %vm1661_vm5, %v1660_v48, %v1654_v49  ;;  %1790 = vmatpush.msra.mxu0 %v1742_v9  ;;  %v4364_v48 = vld [vmem:[%s5964_s25 + $0x28] sm:$0xff]  ;;  %1864 = vmatpush.msra.mxu2 %v4365_v46  ;;  %v4363_v49 = vld [vmem:[%s5964_s25 + $0x20] sm:$0xff]  ;;  %s5990_s25 = sld [smem:[#allocation37_spill]] }
 0x6a8   : > { %1791 = vmatpush.msra.mxu0 %v1741_v11  ;;  %1865 = vmatpush.msra.mxu2 %v4364_v48 }
 0x6aa   : > { %1792 = vmatpush.msra.mxu0 %v1740_v13  ;;  %1866 = vmatpush.msra.mxu2 %v4363_v49 }
 0x6ac   : > { %v1658_v51 = vpop.permute.xlu1 %1657  ;;  %1793 = vmatpush.msra.mxu0 %v1739_v28 }
 0x6ad   : > { %v1664_v52 = vsel %vm1663_vm6, %v1662_v50, %v1658_v51 }
 0x6ae   : > { %4358 = vmatmul.msk.f32.vlgmr.msra.gmra.mxu1 %vm1308_vm0, %v1664_v52  ;;  %1794 = vmatpush.msra.mxu0 %v1738_v29 }
 0x6b0   : > { %1795 = vmatpush.msra.mxu0 %v1737_v30 }
 0x72b   : > { %v1693_v54 = vpop.f32.mrf.mxu1 }
 0x72c   : > { %v1694_v55 = vadd.f32 %v4614_v53, %v1693_v54 }
 0x72e   : > { %v5279_v56 = vadd.f32 %v1694_v55, %v5193_v0  ;;  %v1733_v0 = vld [vmem:[%s5960_s14 + $0x8] sm:$0xff] }
 0x72f   : > { %1766 = vmatpush.msrb.mxu3 %v1733_v0 }
 0x730   : > { %v1699_v57 = vsel %vm1308_vm0, %v5279_v56, 0.0 }
 0x731   : > { %1700 = vadd.xlane.f32.xlu2 %v1699_v57  ;;  %1767 = vmatpush.msrb.mxu3 %v1732_v2  ;;  %v4620_v2 = vld [vmem:[%s5965_s12 + $0x1] ss:$0 sm:$0xff]  ;;  %s5988_s12 = sld [smem:[#allocation22_spill]] }
 0x7a4   : > { %v1701_v58 = vpop.xlane.xlu2 %1700 }
 0x7a5   : > { %v1702_v59 = vmul.f32 %v1701_v58, %v5197_v8 }
 0x7a7   : > { %v1703_v60 = vsub.f32 %v5279_v56, %v1702_v59 }
 0x7a9   : > { %v1704_v61 = vmul.f32 %v1703_v60, %v1703_v60 }
 0x7ab   : > { %v1705_v62 = vsel %vm1308_vm0, %v1704_v61, 0.0 }
 0x7ac   : > { %1706 = vadd.xlane.f32.xlu0 %v1705_v62 }
 0x81f   : > { %v1707_v3 = vpop.xlane.xlu0 %1706 }
 0x820   : > { %v1708_v4 = vmul.f32 0.032258064, %v1707_v3 }
 0x822   : > { %4679 = vrsqrt.f32 %v1708_v4  ;;  %vm1716_vm7 = vcmp.eq.f32.partialorder %v1708_v4, inf  ;;  %v1719_v18 = vand.u32 2147483648, %v1708_v4  ;;  %vm1718_vm8 = vcmp.eq.f32.partialorder %v1708_v4, 0.0 }
 0x828   : > { %v4680_v7 = vpop.eup %4679 }
 0x829   : > { %v1710_v10 = vmul.f32 %v4680_v7, %v1708_v4 }
 0x82b   : > { %v1711_v12 = vmul.f32 %v4680_v7, %v1710_v10 }
 0x82d   : > { %v1712_v14 = vmul.f32 0.5, %v1711_v12 }
 0x82f   : > { %v1713_v15 = vsub.f32 1.5, %v1712_v14 }
 0x831   : > { %v1714_v16 = vmul.f32 %v4680_v7, %v1713_v15 }
 0x833   : > { %v1715_v17 = vmul.f32 %v1714_v16, %v1708_v4 }
 0x835   : > { %v1717_v19 = vsel %vm1716_vm7, %v1708_v4, %v1715_v17 }
 0x836   : > { %v1720_v20 = vsel %vm1718_vm8, %v1719_v18, %v1717_v19 }
 0x837   : > { %v1721_v21 = vadd.f32 1e-06, %v1720_v20 }
 0x839   : > { %4681 = vrcp.f32 %v1721_v21 }
 0x83f   : > { %v4682_v23 = vpop.eup %4681 }
 0x840   : > { %v1723_v24 = vmul.f32 %v4682_v23, %v1703_v60 }
 0x842   : > { %v1727_v26 = vmul.f32 %v4615_v22, %v1723_v24 }
 0x844   : > { %v1731_v27 = vadd.f32 %v4616_v25, %v1727_v26 }
 0x846   : > { %4359 = vmatmul.msk.f32.vlgmr.msrb.gmra.mxu3 %vm1308_vm0, %v1731_v27 }
 0x8c9   : > { %v1769_v32 = vpop.f32.mrf.mxu3 }
 0x8ca   : > { %v1770_v33 = vadd.f32 %v4617_v31, %v1769_v32 }
 0x8cc   : > { %v1772_v34 = vmax.f32 %v1770_v33, 0.0 }
 0x8ce   : > { %4360 = vmatmul.msk.f32.vlgmr.msra.gmra.mxu0 %vm1776_vm9, %v1772_v34 }
 0x94b   : > { %v1797_v36 = vpop.f32.mrf.mxu0 }
 0x94c   : > { %v1798_v37 = vadd.f32 %v4618_v35, %v1797_v36 }
 0x94e   : > { %v5305_v38 = vadd.f32 %v1798_v37, %v5279_v56 }
 0x950   : > { %v1805_v39 = vsel %vm1308_vm0, %v5305_v38, 0.0 }
 0x951   : > { %1806 = vadd.xlane.f32.xlu1 %v1805_v39 }
 0x9c4   : > { %v1807_v40 = vpop.xlane.xlu1 %1806 }
 0x9c5   : > { %v1808_v41 = vmul.f32 %v1807_v40, %v5197_v8 }
 0x9c7   : > { %v1809_v42 = vsub.f32 %v5305_v38, %v1808_v41 }
 0x9c9   : > { %v1810_v43 = vmul.f32 %v1809_v42, %v1809_v42 }
 0x9cb   : > { %v1811_v44 = vsel %vm1308_vm0, %v1810_v43, 0.0 }
 0x9cc   : > { %1812 = vadd.xlane.f32.xlu2 %v1811_v44 }
 0xa3f   : > { %v1813_v50 = vpop.xlane.xlu2 %1812 }
 0xa40   : > { %v1814_v51 = vmul.f32 0.032258064, %v1813_v50 }
 0xa42   : > { %4683 = vrsqrt.f32 %v1814_v51  ;;  %vm1822_vm10 = vcmp.eq.f32.partialorder %v1814_v51, inf  ;;  %v1825_v59 = vand.u32 2147483648, %v1814_v51  ;;  %vm1824_vm11 = vcmp.eq.f32.partialorder %v1814_v51, 0.0 }
 0xa48   : > { %v4684_v52 = vpop.eup %4683 }
 0xa49   : > { %v1816_v53 = vmul.f32 %v4684_v52, %v1814_v51 }
 0xa4b   : > { %v1817_v54 = vmul.f32 %v4684_v52, %v1816_v53 }
 0xa4d   : > { %v1818_v55 = vmul.f32 0.5, %v1817_v54 }
 0xa4f   : > { %v1819_v56 = vsub.f32 1.5, %v1818_v55 }
 0xa51   : > { %v1820_v57 = vmul.f32 %v4684_v52, %v1819_v56 }
 0xa53   : > { %v1821_v58 = vmul.f32 %v1820_v57, %v1814_v51 }
 0xa55   : > { %v1823_v60 = vsel %vm1822_vm10, %v1814_v51, %v1821_v58 }
 0xa56   : > { %v1826_v61 = vsel %vm1824_vm11, %v1825_v59, %v1823_v60 }
 0xa57   : > { %v1827_v62 = vadd.f32 1e-06, %v1826_v61 }
 0xa59   : > { %4685 = vrcp.f32 %v1827_v62 }
 0xa5f   : > { %v4686_v1 = vpop.eup %4685 }
 0xa60   : > { %v1829_v0 = vmul.f32 %v4686_v1, %v1809_v42 }
 0xa62   : > { %v1833_v3 = vmul.f32 %v4619_v63, %v1829_v0 }
 0xa64   : > { %v1837_v4 = vadd.f32 %v4620_v2, %v1833_v3 }
 0xa66   : > { %4368 = vmatmul.msk.f32.vlgmr.msra.gmra.mxu2 %vm1308_vm0, %v1837_v4 }
 0xae9   : > { %v1868_v6 = vpop.f32.mrf.mxu2 }
 0xaea   : > { %v5320_v7 = vadd.f32 %v4621_v5, %v1868_v6 }
 0xaec   : > { %1911 = vrot.lane.b32.xlu2 %v5320_v7, %s5879_s2  ;;  %1872 = vrot.lane.b32.xlu0 %v5320_v7, %s5885_s22  ;;  %s5981_s2 = smov 88   ;;  %s5984_s22 = smov 104  }
 0xaf4   : > { %1937 = vrot.lane.b32.xlu0 %v5320_v7, %s5883_s26  ;;  %s5983_s26 = sld [smem:[#allocation6_spill]] }
 0xafa   : > { %s1289_s11 = scalar_lea.vmem %s5983_s26, %s5189_s16  ;;  %s5986_s26 = smov 40  }
 0xafb   : > { %v5355_v33 = vld [vmem:[%s1289_s11] sm:$0xff]  ;;  %s5985_s11 = smov 48  }
 0xafc   : > { %2006 = vrot.lane.b32.xlu0 %v5320_v7, %s5881_s5  ;;  %s5982_s5 = smov 72   ;;  %v2334_v34 = vsel %vm1308_vm0, %v5355_v33, 0.0 }
 0xb04   : > { %2004 = vrot.lane.b32.xlu0 %v5320_v7, %s5980_s23 }
 0xb46   : > { %v1912_v9 = vpop.permute.xlu2 %1911 }
 0xb47   : > { %1932 = vmatpush.msra.mxu3 %v1912_v9 }
 0xb5e   : > { %v1873_v10 = vpop.permute.xlu0 %1872 }
 0xb5f   : > { %4369 = vmatpush.xpose.msk.msrb.mxu1 %vm1383_vm4, %v1873_v10 }
 0xb62   : > { %4370 = vmatmul.msk.f32.vlgmr.msrb.gmra.mxu1 %vm1383_vm4, %v5320_v7 }
 0xb66   : > { %v1938_v11 = vpop.permute.xlu0 %1937 }
 0xb6e   : > { %v2007_v12 = vpop.permute.xlu0 %2006 }
 0xb6f   : > { %4375 = vmatpush.xpose.msk.msrb.mxu3 %vm1383_vm4, %v2007_v12 }
 0xb76   : > { %v2005_v28 = vpop.permute.xlu0 %2004 }
 0xbdf   : > { %v1895_v13 = vpop.f32.mrf.mxu1 }
 0xbe0   : > { %v1898_v14 = vmul.f32 0.35355338, %v1895_v13 }
 0xbe2   : > { %v1899_v15 = vadd.f32 %v1898_v14, %v5235_v47 }
 0xbe4   : > { %v1900_v16 = vsel %vm1383_vm4, %v1899_v15, -inf }
 0xbe5   : > { %1901 = vmax.xlane.f32.xlu1 %v1900_v16 }
 0xbfe   : > { %1939 = vrot.lane.b32.xlu1 %v5320_v7, %s5981_s2 }
 0xc06   : > { %2073 = vrot.lane.b32.xlu1 %v5320_v7, %s5982_s5 }
 0xc58   : > { %v1902_v17 = vpop.xlane.xlu1 %1901 }
 0xc59   : > { %v1903_v18 = vsub.f32 %v1899_v15, %v1902_v17 }
 0xc5b   : > { %v1904_v19 = vmul.f32 1.442695, %v1903_v18 }
 0xc5d   : > { %4687 = vpow2.f32 %v1904_v19 }
 0xc63   : > { %v4688_v20 = vpop.eup %4687 }
 0xc64   : > { %v1906_v21 = vsel %vm1383_vm4, %v4688_v20, 0.0 }
 0xc65   : > { %1907 = vadd.xlane.f32.xlu2 %v1906_v21 }
 0xc70   : > { %v1940_v22 = vpop.permute.xlu1 %1939 }
 0xc71   : > { %4372 = vmatpush.xpose.msk.msrb.mxu2 %vm1383_vm4, %v1940_v22 }
 0xc74   : > { %4373 = vmatmul.msk.f32.vlgmr.msrb.gmra.mxu2 %vm1383_vm4, %v1938_v11 }
 0xc78   : > { %v2074_v23 = vpop.permute.xlu1 %2073 }
 0xc79   : > { %4378 = vmatpush.xpose.msk.msra.mxu2 %vm1383_vm4, %v2074_v23 }
 0xc7d   : > { %2071 = vrot.lane.b32.xlu2 %v5320_v7, %s5984_s22 }
 0xcd8   : > { %v1908_v24 = vpop.xlane.xlu2 %1907 }
 0xcd9   : > { %4689 = vrcp.f32 %v1908_v24  ;;  %v2370_v24 = vld [vmem:[%s5988_s12 + $0x18] sm:$0xff] }
 0xcdf   : > { %v4690_v25 = vpop.eup %4689 }
 0xce0   : > { %v1910_v26 = vmul.f32 %v4690_v25, %v4688_v20  ;;  %v2072_v27 = vpop.permute.xlu2 %2071 }
 0xce1   : > { %4379 = vmatmul.msk.f32.vlgmr.msra.gmra.mxu2 %vm1383_vm4, %v2072_v27 }
 0xce2   : > { %4371 = vmatmul.msk.f32.vlgmr.msra.gmra.mxu3 %vm1383_vm4, %v1910_v26  ;;  %v2369_v26 = vld [vmem:[%s5988_s12 + $0x10] sm:$0xff] }
 0xcea   : > { %4376 = vmatmul.msk.f32.vlgmr.msrb.gmra.mxu3 %vm1383_vm4, %v2005_v28 }
 0xcf7   : > { %v1962_v29 = vpop.f32.mrf.mxu2 }
 0xcf8   : > { %v1965_v30 = vmul.f32 0.35355338, %v1962_v29  ;;  %v2368_v29 = vld [vmem:[%s5988_s12 + $0x8] sm:$0xff] }
 0xcfa   : > { %v1966_v31 = vadd.f32 %v1965_v30, %v5235_v47 }
 0xcfc   : > { %v1967_v32 = vsel %vm1383_vm4, %v1966_v31, -inf }
 0xcfd   : > { %1968 = vmax.xlane.f32.xlu1 %v1967_v32 }
 0xd05   : > { %2335 = vadd.xlane.f32.xlu1 %v2334_v34  ;;  %v4622_v34 = vld [vmem:[%s5989_s13] ss:$0 sm:$0xff] }
 0xd64   : > { %v2096_v35 = vpop.f32.mrf.mxu2 }
 0xd65   : > { %v2099_v36 = vmul.f32 0.35355338, %v2096_v35  ;;  %v5359_v37 = vpop.f32.mrf.mxu3 }
 0xd67   : > { %v2100_v39 = vadd.f32 %v2099_v36, %v5235_v47  ;;  %v4623_v36 = vld [vmem:[%s5990_s25] ss:$0 sm:$0xff] }
 0xd69   : > { %v2101_v40 = vsel %vm1383_vm4, %v2100_v39, -inf }
 0xd6a   : > { %2102 = vmax.xlane.f32.xlu2 %v2101_v40 }
 0xd6d   : > { %v2029_v41 = vpop.f32.mrf.mxu3 }
 0xd6e   : > { %v2032_v42 = vmul.f32 0.35355338, %v2029_v41 }
 0xd70   : > { %v1969_v43 = vpop.xlane.xlu1 %1968  ;;  %v2033_v44 = vadd.f32 %v2032_v42, %v5235_v47 }
 0xd71   : > { %v1970_v45 = vsub.f32 %v1966_v31, %v1969_v43  ;;  %v2367_v31 = vld [vmem:[%s5988_s12] sm:$0xff] }
 0xd72   : > { %v2034_v46 = vsel %vm1383_vm4, %v2033_v44, -inf  ;;  %v4624_v43 = vld [vmem:[%s5991_s29] ss:$0 sm:$0xff] }
 0xd73   : > { %v1971_v48 = vmul.f32 1.442695, %v1970_v45  ;;  %2035 = vmax.xlane.f32.xlu0 %v2034_v46  ;;  %v4384_v46 = vld [vmem:[%s5962_s3 + $0x38] sm:$0xff] }
 0xd74   : > { %2178 = vmatpush.msra.mxu3 %v4384_v46  ;;  %v4627_v46 = vld [vmem:[%s5956_s27 + $0x1] ss:$0 sm:$0xff]  ;;  %s6005_s27 = sld [smem:[#allocation26_spill]] }
 0xd75   : > { %4691 = vpow2.f32 %v1971_v48  ;;  %v4383_v48 = vld [vmem:[%s5962_s3 + $0x30] sm:$0xff] }
 0xd76   : > { %2179 = vmatpush.msra.mxu3 %v4383_v48 }
 0xd78   : > { %v2336_v49 = vpop.xlane.xlu1 %2335 }
 0xd79   : > { %v2337_v50 = vmul.f32 %v2336_v49, %v5197_v8  ;;  %v4382_v49 = vld [vmem:[%s5962_s3 + $0x28] sm:$0xff] }
 0xd7a   : > { %2180 = vmatpush.msra.mxu3 %v4382_v49 }
 0xd7b   : > { %v4692_v51 = vpop.eup %4691  ;;  %v5367_v52 = vsub.f32 %v5355_v33, %v2337_v50  ;;  %v4381_v50 = vld [vmem:[%s5962_s3 + $0x20] sm:$0xff]  ;;  %s5418_s3 = scalar_lea.vmem %s5996_s28, %s5189_s16  ;;  %s5999_s28 = smov 64  }
 0xd7c   : > { %v1973_v53 = vsel %vm1383_vm4, %v4692_v51, 0.0  ;;  %2181 = vmatpush.msra.mxu3 %v4381_v50  ;;  %s6013_s16 = sld [smem:[#allocation32_spill]] }
 0xd7d   : > { %1974 = vadd.xlane.f32.xlu0 %v1973_v53  ;;  %v2339_v54 = vmul.f32 %v5367_v52, %v5367_v52 }
 0xd7f   : > { %v2340_v47 = vsel %vm1308_vm0, %v2339_v54, 0.0 }
 0xd80   : > { %2341 = vadd.xlane.f32.xlu1 %v2340_v47 }
 0xd99   : > { %2045 = vrot.lane.b32.xlu1 %v5320_v7, %s5985_s11 }
 0xddd   : > { %v2103_v55 = vpop.xlane.xlu2 %2102 }
 0xdde   : > { %v2104_v56 = vsub.f32 %v2100_v39, %v2103_v55 }
 0xde0   : > { %v2105_v57 = vmul.f32 1.442695, %v2104_v56 }
 0xde2   : > { %4693 = vpow2.f32 %v2105_v57  ;;  %v4625_v57 = vld [vmem:[%s5961_s8 + $0x1] ss:$0 sm:$0xff]  ;;  %s5997_s8 = smov 120  }
 0xde6   : > { %v2036_v58 = vpop.xlane.xlu0 %2035 }
 0xde7   : > { %v2037_v59 = vsub.f32 %v2033_v44, %v2036_v58 }
 0xde8   : > { %v4694_v60 = vpop.eup %4693 }
 0xde9   : > { %v2038_v61 = vmul.f32 1.442695, %v2037_v59  ;;  %v2107_v62 = vsel %vm1383_vm4, %v4694_v60, 0.0 }
 0xdea   : > { %2108 = vadd.xlane.f32.xlu0 %v2107_v62 }
 0xdeb   : > { %4695 = vpow2.f32 %v2038_v61  ;;  %v5423_v61 = vld [vmem:[%s5418_s3] sm:$0xff] }
 0xdf0   : > { %v1975_v13 = vpop.xlane.xlu0 %1974 }
 0xdf1   : > { %v4696_v63 = vpop.eup %4695 }
 0xdf2   : > { %v2040_v1 = vsel %vm1383_vm4, %v4696_v63, 0.0 }
 0xdf3   : > { %2041 = vadd.xlane.f32.xlu2 %v2040_v1  ;;  %v2342_v0 = vpop.xlane.xlu1 %2341 }
 0xdf4   : > { %v2343_v3 = vmul.f32 0.032258064, %v2342_v0 }
 0xdf6   : > { %4697 = vrsqrt.f32 %v2343_v3  ;;  %vm2351_vm12 = vcmp.eq.f32.partialorder %v2343_v3, inf  ;;  %v2354_v14 = vand.u32 2147483648, %v2343_v3  ;;  %vm2353_vm13 = vcmp.eq.f32.partialorder %v2343_v3, 0.0 }
 0xdf7   : > { %4699 = vrcp.f32 %v1975_v13 }
 0xdfc   : > { %v4698_v4 = vpop.eup %4697 }
 0xdfd   : > { %v2345_v5 = vmul.f32 %v4698_v4, %v2343_v3  ;;  %v4700_v19 = vpop.eup %4699 }
 0xdfe   : > { %2112 = vrot.lane.b32.xlu0 %v5320_v7, %s5986_s26  ;;  %v1977_v21 = vmul.f32 %v4700_v19, %v4692_v51 }
 0xdff   : > { %v2346_v6 = vmul.f32 %v4698_v4, %v2345_v5 }
 0xe01   : > { %v2347_v9 = vmul.f32 0.5, %v2346_v6 }
 0xe03   : > { %v2348_v10 = vsub.f32 1.5, %v2347_v9 }
 0xe05   : > { %v2349_v11 = vmul.f32 %v4698_v4, %v2348_v10 }
 0xe07   : > { %v2350_v12 = vmul.f32 %v2349_v11, %v2343_v3 }
 0xe09   : > { %v2352_v15 = vsel %vm2351_vm12, %v2343_v3, %v2350_v12 }
 0xe0a   : > { %v2355_v16 = vsel %vm2353_vm13, %v2354_v14, %v2352_v15 }
 0xe0b   : > { %v2046_v2 = vpop.permute.xlu1 %2045  ;;  %1978 = vrot.lane.b32.xlu2 %v5320_v7, %s5987_s6  ;;  %v2356_v18 = vadd.f32 1e-06, %v2355_v16  ;;  %v4392_v16 = vld [vmem:[%s5960_s14 + $0x38] sm:$0xff] }
 0xe0c   : > { %2066 = vmatpush.msrb.mxu0 %v2046_v2 }
 0xe0e   : > { %2260 = vmatpush.msra.mxu0 %v4392_v16 }
 0xe5d   : > { %v2109_v7 = vpop.xlane.xlu0 %2108 }
 0xe66   : > { %v2042_v17 = vpop.xlane.xlu2 %2041 }
 0xe67   : > { %4701 = vrcp.f32 %v2042_v17  ;;  %v4391_v17 = vld [vmem:[%s5960_s14 + $0x30] sm:$0xff] }
 0xe68   : > { %4703 = vrcp.f32 %v2356_v18  ;;  %2261 = vmatpush.msra.mxu0 %v4391_v17  ;;  %v4389_v18 = vld [vmem:[%s5960_s14 + $0x20] sm:$0xff] }
 0xe69   : > { %4705 = vrcp.f32 %v2109_v7  ;;  %v4390_v7 = vld [vmem:[%s5960_s14 + $0x28] sm:$0xff]  ;;  %s6000_s14 = sld [smem:[#allocation24_spill]] }
 0xe6a   : > { %2262 = vmatpush.msra.mxu0 %v4390_v7 }
 0xe6c   : > { %2263 = vmatpush.msra.mxu0 %v4389_v18 }
 0xe6d   : > { %v4702_v20 = vpop.eup %4701 }
 0xe6e   : > { %v2044_v22 = vmul.f32 %v4702_v20, %v4696_v63  ;;  %v1979_v23 = vpop.permute.xlu2 %1978  ;;  %v4704_v27 = vpop.eup %4703 }
 0xe6f   : > { %1999 = vmatpush.msra.mxu1 %v1979_v23  ;;  %v4706_v28 = vpop.eup %4705  ;;  %v2358_v32 = vmul.f32 %v4704_v27, %v5367_v52 }
 0xe70   : > { %4374 = vmatmul.msk.f32.vlgmr.msra.gmra.mxu1 %vm1383_vm4, %v1977_v21  ;;  %4377 = vmatmul.msk.f32.vlgmr.msrb.gmra.mxu0 %vm1383_vm4, %v2044_v22  ;;  %v2113_v25 = vpop.permute.xlu0 %2112  ;;  %v2111_v30 = vmul.f32 %v4706_v28, %v4694_v60 }
 0xe71   : > { %2133 = vmatpush.msrb.mxu1 %v2113_v25  ;;  %v2362_v35 = vmul.f32 %v4622_v34, %v2358_v32  ;;  %v4401_v34 = vld [vmem:[%s5957_s24 + $0x78] sm:$0xff] }
 0xe72   : > { %2283 = vmatpush.msrb.mxu2 %v4401_v34 }
 0xe73   : > { %2390 = vmatpush.msra.mxu1 %v2370_v24  ;;  %v2366_v39 = vadd.f32 %v4623_v36, %v2362_v35  ;;  %v4400_v35 = vld [vmem:[%s5957_s24 + $0x70] sm:$0xff] }
 0xe74   : > { %2284 = vmatpush.msrb.mxu2 %v4400_v35 }
 0xe75   : > { %2391 = vmatpush.msra.mxu1 %v2369_v26 }
 0xe77   : > { %2392 = vmatpush.msra.mxu1 %v2368_v29 }
 0xe78   : > { %4380 = vmatmul.msk.f32.vlgmr.msrb.gmra.mxu1 %vm1383_vm4, %v2111_v30 }
 0xe79   : > { %2393 = vmatpush.msra.mxu1 %v2367_v31 }
 0xe80   : > { %4405 = vmatmul.msk.f32.vlgmr.msra.gmra.mxu1 %vm1308_vm0, %v2366_v39 }
 0xeed   : > { %v2001_v40 = vpop.f32.mrf.mxu1  ;;  %v2068_v41 = vpop.f32.mrf.mxu0 }
 0xeee   : > { %2143 = vrot.lane.b32.xlu0 %v2068_v41, %s5992_s18  ;;  %2139 = vrot.lane.b32.xlu2 %v2001_v40, %s5993_s1  ;;  %v4399_v40 = vld [vmem:[%s5957_s24 + $0x68] sm:$0xff]  ;;  %v4626_v41 = vld [vmem:[%s5958_s20 + $0x1] ss:$0 sm:$0xff]  ;;  %s6002_s20 = sld [smem:[#allocation28_spill]] }
 0xeef   : > { %2285 = vmatpush.msrb.mxu2 %v4399_v40 }
 0xef5   : > { %v2135_v42 = vpop.f32.mrf.mxu1 }
 0xef6   : > { %2147 = vrot.lane.b32.xlu1 %v2135_v42, %s5994_s7 }
 0xefd   : > { %v2395_v44 = vpop.f32.mrf.mxu1 }
 0xefe   : > { %v5396_v45 = vadd.f32 %v4624_v43, %v2395_v44 }
 0xf00   : > { %2399 = vrot.lane.b32.xlu2 %v5396_v45, %s5995_s15 }
 0xf48   : > { %v2140_v51 = vpop.permute.xlu2 %2139 }
 0xf49   : > { %v2150_v54 = vsel %vm1383_vm4, %v5359_v37, %v2140_v51 }
 0xf5a   : > { %v2400_v52 = vpop.permute.xlu2 %2399 }
 0xf5b   : > { %4406 = vmatpush.xpose.msk.msrb.mxu3 %vm1383_vm4, %v2400_v52 }
 0xf60   : > { %v2144_v53 = vpop.permute.xlu0 %2143 }
 0xf61   : > { %v2151_v47 = vsel %vm1661_vm5, %v2150_v54, %v2144_v53 }
 0xf68   : > { %v2148_v55 = vpop.permute.xlu1 %2147 }
 0xf69   : > { %v2152_v56 = vsel %vm1663_vm6, %v2151_v47, %v2148_v55 }
 0xf6a   : > { %4386 = vmatmul.msk.f32.vlgmr.msra.gmra.mxu3 %vm1308_vm0, %v2152_v56  ;;  %v4398_v56 = vld [vmem:[%s5957_s24 + $0x60] sm:$0xff] }
 0xf6b   : > { %2286 = vmatpush.msrb.mxu2 %v4398_v56 }
 0xf72   : > { %4407 = vmatmul.msk.f32.vlgmr.msrb.gmra.mxu3 %vm1383_vm4, %v5396_v45 }
 0xfed   : > { %v2183_v58 = vpop.f32.mrf.mxu3 }
 0xfee   : > { %v2184_v59 = vadd.f32 %v4625_v57, %v2183_v58  ;;  %v4397_v57 = vld [vmem:[%s5957_s24 + $0x58] sm:$0xff]  ;;  %v4396_v58 = vld [vmem:[%s5957_s24 + $0x50] sm:$0xff] }
 0xfef   : > { %2287 = vmatpush.msrb.mxu2 %v4397_v57 }
 0xff0   : > { %v5414_v60 = vadd.f32 %v2184_v59, %v5305_v38  ;;  %v4395_v59 = vld [vmem:[%s5957_s24 + $0x48] sm:$0xff] }
 0xff1   : > { %2288 = vmatpush.msrb.mxu2 %v4396_v58 }
 0xff2   : > { %v2191_v37 = vsel %vm1308_vm0, %v5414_v60, 0.0 }
 0xff3   : > { %2192 = vadd.xlane.f32.xlu0 %v2191_v37  ;;  %2289 = vmatpush.msrb.mxu2 %v4395_v59  ;;  %v4394_v37 = vld [vmem:[%s5957_s24 + $0x40] sm:$0xff]  ;;  %s6003_s24 = sld [smem:[#allocation42_spill]] }
 0xff5   : > { %v2422_v62 = vpop.f32.mrf.mxu3  ;;  %2290 = vmatpush.msrb.mxu2 %v4394_v37 }
 0xff6   : > { %v2425_v63 = vmul.f32 0.35355338, %v2422_v62 }
 0xff8   : > { %v2426_v1 = vadd.f32 %v2425_v63, %v5423_v61 }
 0xffa   : > { %v2427_v0 = vsel %vm1383_vm4, %v2426_v1, -inf }
 0xffb   : > { %2428 = vmax.xlane.f32.xlu1 %v2427_v0 }
0x1007   : > { %2464 = vrot.lane.b32.xlu0 %v5396_v45, %s5997_s8 }
0x100f   : > { %2533 = vrot.lane.b32.xlu0 %v5396_v45, %s5998_s9 }
0x1014   : > { %2466 = vrot.lane.b32.xlu1 %v5396_v45, %s5981_s2 }
0x101c   : > { %2600 = vrot.lane.b32.xlu1 %v5396_v45, %s5982_s5 }
0x1066   : > { %v2193_v38 = vpop.xlane.xlu0 %2192 }
0x1067   : > { %v2194_v2 = vmul.f32 %v2193_v38, %v5197_v8 }
0x1069   : > { %v2195_v3 = vsub.f32 %v5414_v60, %v2194_v2 }
0x106b   : > { %v2196_v4 = vmul.f32 %v2195_v3, %v2195_v3 }
0x106d   : > { %v2197_v5 = vsel %vm1308_vm0, %v2196_v4, 0.0 }
0x106e   : > { %v2429_v6 = vpop.xlane.xlu1 %2428  ;;  %2198 = vadd.xlane.f32.xlu2 %v2197_v5 }
0x106f   : > { %v2430_v9 = vsub.f32 %v2426_v1, %v2429_v6  ;;  %v4628_v1 = vld [vmem:[%s5959_s19 + $0x1] ss:$0 sm:$0xff]  ;;  %s6001_s19 = sld [smem:[#allocation25_spill]] }
0x1071   : > { %v2431_v10 = vmul.f32 1.442695, %v2430_v9 }
0x1073   : > { %4707 = vpow2.f32 %v2431_v10 }
0x1075   : > { %v4630_v57 = vld [vmem:[%s6001_s19] ss:$0 sm:$0xff] }
0x1079   : > { %v5438_v11 = vpop.eup %4707  ;;  %v2465_v14 = vpop.permute.xlu0 %2464 }
0x107a   : > { %v2433_v12 = vsel %vm1383_vm4, %v5438_v11, 0.0 }
0x107b   : > { %2434 = vadd.xlane.f32.xlu0 %v2433_v12 }
0x1081   : > { %v2534_v26 = vpop.permute.xlu0 %2533 }
0x1086   : > { %v2467_v13 = vpop.permute.xlu1 %2466  ;;  %2438 = vrot.lane.b32.xlu2 %v5396_v45, %s5999_s28 }
0x1087   : > { %4409 = vmatpush.xpose.msk.msrb.mxu1 %vm1383_vm4, %v2467_v13 }
0x108a   : > { %4410 = vmatmul.msk.f32.vlgmr.msrb.gmra.mxu1 %vm1383_vm4, %v2465_v14 }
0x108e   : > { %v2601_v15 = vpop.permute.xlu1 %2600  ;;  %2531 = vrot.lane.b32.xlu2 %v5396_v45, %s5980_s23 }
0x108f   : > { %4415 = vmatpush.xpose.msk.msra.mxu1 %vm1383_vm4, %v2601_v15  ;;  %2598 = vrot.lane.b32.xlu0 %v5396_v45, %s5984_s22 }
0x10e1   : > { %v2199_v19 = vpop.xlane.xlu2 %2198 }
0x10e2   : > { %v2200_v20 = vmul.f32 0.032258064, %v2199_v19 }
0x10e4   : > { %4709 = vrsqrt.f32 %v2200_v20  ;;  %vm2208_vm14 = vcmp.eq.f32.partialorder %v2200_v20, inf  ;;  %v2211_v30 = vand.u32 2147483648, %v2200_v20  ;;  %vm2210_vm15 = vcmp.eq.f32.partialorder %v2200_v20, 0.0 }
0x10e9   : > { %v2439_v21 = vpop.permute.xlu2 %2438 }
0x10ea   : > { %v4710_v22 = vpop.eup %4709  ;;  %2459 = vmatpush.msrb.mxu0 %v2439_v21 }
0x10eb   : > { %v2202_v23 = vmul.f32 %v4710_v22, %v2200_v20 }
0x10ed   : > { %v2203_v24 = vmul.f32 %v4710_v22, %v2202_v23 }
0x10ee   : > { %v2435_v36 = vpop.xlane.xlu0 %2434 }
0x10ef   : > { %v2204_v25 = vmul.f32 0.5, %v2203_v24 }
0x10f1   : > { %v2205_v27 = vsub.f32 1.5, %v2204_v25  ;;  %v2532_v55 = vpop.permute.xlu2 %2531 }
0x10f3   : > { %v2206_v28 = vmul.f32 %v4710_v22, %v2205_v27 }
0x10f5   : > { %v2207_v29 = vmul.f32 %v2206_v28, %v2200_v20 }
0x10f7   : > { %v2209_v31 = vsel %vm2208_vm14, %v2200_v20, %v2207_v29 }
0x10f8   : > { %v2212_v32 = vsel %vm2210_vm15, %v2211_v30, %v2209_v31 }
0x10f9   : > { %v2213_v39 = vadd.f32 1e-06, %v2212_v32 }
0x10fb   : > { %4711 = vrcp.f32 %v2213_v39 }
0x10fc   : > { %4713 = vrcp.f32 %v2435_v36 }
0x1101   : > { %v4712_v42 = vpop.eup %4711  ;;  %v2599_v43 = vpop.permute.xlu0 %2598 }
0x1102   : > { %4416 = vmatmul.msk.f32.vlgmr.msra.gmra.mxu1 %vm1383_vm4, %v2599_v43  ;;  %v2215_v44 = vmul.f32 %v4712_v42, %v2195_v3  ;;  %v4714_v53 = vpop.eup %4713  ;;  %v4629_v43 = vld [vmem:[%s5955_s30 + $0x1] ss:$0 sm:$0xff]  ;;  %s6008_s30 = sld [smem:[#allocation29_spill]] }
0x1103   : > { %v2437_v47 = vmul.f32 %v4714_v53, %v5438_v11 }
0x1104   : > { %v2219_v48 = vmul.f32 %v4626_v41, %v2215_v44 }
0x1106   : > { %v2223_v49 = vadd.f32 %v4627_v46, %v2219_v48 }
0x1107   : > { %v2489_v50 = vpop.f32.mrf.mxu1 }
0x1108   : > { %v2492_v51 = vmul.f32 0.35355338, %v2489_v50  ;;  %4403 = vmatmul.msk.f32.vlgmr.msra.gmra.mxu0 %vm1308_vm0, %v2223_v49  ;;  %v2683_v49 = vld [vmem:[%s6000_s14 + $0x18] sm:$0xff]  ;;  %v2682_v50 = vld [vmem:[%s6000_s14 + $0x10] sm:$0xff] }
0x1109   : > { %4412 = vmatpush.xpose.msk.msra.mxu0 %vm1383_vm4, %v2534_v26 }
0x110a   : > { %v2493_v52 = vadd.f32 %v2492_v51, %v5423_v61  ;;  %v2681_v51 = vld [vmem:[%s6000_s14 + $0x8] sm:$0xff] }
0x110c   : > { %v2494_v54 = vsel %vm1383_vm4, %v2493_v52, -inf }
0x110d   : > { %2495 = vmax.xlane.f32.xlu1 %v2494_v54 }
0x1110   : > { %4408 = vmatmul.msk.f32.vlgmr.msrb.gmra.mxu0 %vm1383_vm4, %v2437_v47 }
0x1111   : > { %2703 = vmatpush.msrb.mxu0 %v2683_v49 }
0x1113   : > { %2704 = vmatpush.msrb.mxu0 %v2682_v50 }
0x1115   : > { %2705 = vmatpush.msrb.mxu0 %v2681_v51 }
0x1118   : > { %4413 = vmatmul.msk.f32.vlgmr.msra.gmra.mxu0 %vm1383_vm4, %v2532_v55 }
0x117f   : > { %v2623_v62 = vpop.f32.mrf.mxu1 }
0x1180   : > { %v2626_v63 = vmul.f32 0.35355338, %v2623_v62  ;;  %v2496_v6 = vpop.xlane.xlu1 %2495 }
0x1181   : > { %v2497_v9 = vsub.f32 %v2493_v52, %v2496_v6  ;;  %v2680_v52 = vld [vmem:[%s6000_s14] sm:$0xff]  ;;  %v2779_v6 = vld [vmem:[%s6002_s20 + $0x8] sm:$0xff] }
0x1182   : > { %v2627_v0 = vadd.f32 %v2626_v63, %v5423_v61  ;;  %2706 = vmatpush.msrb.mxu0 %v2680_v52 }
0x1183   : > { %v2498_v10 = vmul.f32 1.442695, %v2497_v9 }
0x1184   : > { %v2628_v38 = vsel %vm1383_vm4, %v2627_v0, -inf }
0x1185   : > { %v2265_v2 = vpop.f32.mrf.mxu0  ;;  %2629 = vmax.xlane.f32.xlu0 %v2628_v38  ;;  %4715 = vpow2.f32 %v2498_v10  ;;  %v2778_v10 = vld [vmem:[%s6002_s20] sm:$0xff] }
0x1186   : > { %v2266_v3 = vadd.f32 %v4628_v1, %v2265_v2 }
0x1188   : > { %v2268_v4 = vmax.f32 %v2266_v3, 0.0  ;;  %v2781_v3 = vld [vmem:[%s6002_s20 + $0x18] sm:$0xff] }
0x1189   : > { %2801 = vmatpush.msrb.mxu1 %v2781_v3 }
0x118a   : > { %4404 = vmatmul.msk.f32.vlgmr.msrb.gmra.mxu2 %vm1776_vm9, %v2268_v4  ;;  %v2780_v4 = vld [vmem:[%s6002_s20 + $0x10] sm:$0xff] }
0x118b   : > { %v4716_v15 = vpop.eup %4715  ;;  %2802 = vmatpush.msrb.mxu1 %v2780_v4  ;;  %v5560_v4 = vld [vmem:[%s1297_s0] sm:$0xff]  ;;  %s6012_s0 = sld [smem:[#allocation31_spill]] }
0x118c   : > { %v2500_v16 = vsel %vm1383_vm4, %v4716_v15, 0.0 }
0x118d   : > { %v5477_v5 = vpop.f32.mrf.mxu0  ;;  %2803 = vmatpush.msrb.mxu1 %v2779_v6 }
0x118f   : > { %2804 = vmatpush.msrb.mxu1 %v2778_v10 }
0x1195   : > { %v2556_v11 = vpop.f32.mrf.mxu0 }
0x1196   : > { %v2559_v12 = vmul.f32 0.35355338, %v2556_v11 }
0x1198   : > { %v2560_v13 = vadd.f32 %v2559_v12, %v5423_v61 }
0x1199   : > { %2505 = vrot.lane.b32.xlu0 %v5396_v45, %s5987_s6 }
0x119a   : > { %v2561_v14 = vsel %vm1383_vm4, %v2560_v13, -inf }
0x119b   : > { %2562 = vmax.xlane.f32.xlu2 %v2561_v14 }
0x11a3   : > { %2501 = vadd.xlane.f32.xlu2 %v2500_v16 }
0x11f8   : > { %v2630_v17 = vpop.xlane.xlu0 %2629 }
0x11f9   : > { %v2631_v7 = vsub.f32 %v2627_v0, %v2630_v17 }
0x11fb   : > { %v2632_v18 = vmul.f32 1.442695, %v2631_v7 }
0x11fd   : > { %4717 = vpow2.f32 %v2632_v18 }
0x1203   : > { %v4718_v19 = vpop.eup %4717 }
0x1204   : > { %v2634_v20 = vsel %vm1383_vm4, %v4718_v19, 0.0 }
0x1205   : > { %2635 = vadd.xlane.f32.xlu2 %v2634_v20 }
0x120b   : > { %v2506_v61 = vpop.permute.xlu0 %2505 }
0x120c   : > { %2526 = vmatpush.msra.mxu3 %v2506_v61 }
0x120d   : > { %v2292_v41 = vpop.f32.mrf.mxu2 }
0x120e   : > { %v2563_v21 = vpop.xlane.xlu2 %2562  ;;  %v2293_v44 = vadd.f32 %v4629_v43, %v2292_v41 }
0x120f   : > { %v2564_v22 = vsub.f32 %v2560_v13, %v2563_v21 }
0x1210   : > { %v2295_v46 = vadd.f32 %v2293_v44, %v5414_v60 }
0x1211   : > { %v2565_v23 = vmul.f32 1.442695, %v2564_v22 }
0x1212   : > { %v2298_v48 = vsel %vm1308_vm0, %v2295_v46, 0.0 }
0x1213   : > { %4719 = vpow2.f32 %v2565_v23 }
0x1216   : > { %v2502_v24 = vpop.xlane.xlu2 %2501 }
0x1217   : > { %4721 = vrcp.f32 %v2502_v24  ;;  %v4631_v24 = vld [vmem:[%s6003_s24] ss:$0 sm:$0xff]  ;;  %s6006_s24 = sld [smem:[#allocation38_spill]] }
0x1219   : > { %v4720_v25 = vpop.eup %4719 }
0x121a   : > { %v2567_v26 = vsel %vm1383_vm4, %v4720_v25, 0.0 }
0x121b   : > { %2568 = vadd.xlane.f32.xlu1 %v2567_v26 }
0x121d   : > { %v4722_v27 = vpop.eup %4721  ;;  %2639 = vrot.lane.b32.xlu2 %v5396_v45, %s5986_s26  ;;  %v4633_v51 = vld [vmem:[%s6006_s24] ss:$0 sm:$0xff] }
0x121e   : > { %v2504_v28 = vmul.f32 %v4722_v27, %v4716_v15  ;;  %v4632_v27 = vld [vmem:[%s6004_s17] ss:$0 sm:$0xff]  ;;  %s6007_s17 = sld [smem:[#allocation39_spill]] }
0x1220   : > { %4411 = vmatmul.msk.f32.vlgmr.msra.gmra.mxu3 %vm1383_vm4, %v2504_v28 }
0x1234   : > { %2572 = vrot.lane.b32.xlu1 %v5396_v45, %s5985_s11 }
0x1278   : > { %v2636_v29 = vpop.xlane.xlu2 %2635 }
0x1279   : > { %4723 = vrcp.f32 %v2636_v29 }
0x127f   : > { %v4724_v30 = vpop.eup %4723 }
0x1280   : > { %v2638_v31 = vmul.f32 %v4724_v30, %v4718_v19  ;;  %v2640_v32 = vpop.permute.xlu2 %2639  ;;  %v2750_v30 = vld [vmem:[%s6005_s27 + $0x18] sm:$0xff] }
0x1281   : > { %2660 = vmatpush.msrb.mxu3 %v2640_v32  ;;  %v2748_v32 = vld [vmem:[%s6005_s27 + $0x8] sm:$0xff] }
0x1282   : > { %4417 = vmatmul.msk.f32.vlgmr.msrb.gmra.mxu3 %vm1383_vm4, %v2638_v31  ;;  %v2749_v31 = vld [vmem:[%s6005_s27 + $0x10] sm:$0xff] }
0x128e   : > { %v2569_v34 = vpop.xlane.xlu1 %2568 }
0x128f   : > { %4725 = vrcp.f32 %v2569_v34  ;;  %v2747_v34 = vld [vmem:[%s6005_s27] sm:$0xff] }
0x1295   : > { %v4726_v35 = vpop.eup %4725 }
0x1296   : > { %v2571_v39 = vmul.f32 %v4726_v35, %v4720_v25 }
0x12a3   : > { %v2528_v36 = vpop.f32.mrf.mxu3 }
0x12a4   : > { %2666 = vrot.lane.b32.xlu0 %v2528_v36, %s5993_s1 }
0x12a6   : > { %v2573_v40 = vpop.permute.xlu1 %2572 }
0x12a7   : > { %2593 = vmatpush.msra.mxu2 %v2573_v40 }
0x12a8   : > { %4414 = vmatmul.msk.f32.vlgmr.msra.gmra.mxu2 %vm1383_vm4, %v2571_v39 }
0x12a9   : > { %2770 = vmatpush.msrb.mxu2 %v2750_v30 }
0x12ab   : > { %2771 = vmatpush.msrb.mxu2 %v2749_v31 }
0x12ad   : > { %2772 = vmatpush.msrb.mxu2 %v2748_v32 }
0x12af   : > { %2773 = vmatpush.msrb.mxu2 %v2747_v34 }
0x1305   : > { %v2662_v45 = vpop.f32.mrf.mxu3 }
0x1306   : > { %2674 = vrot.lane.b32.xlu0 %v2662_v45, %s5994_s7 }
0x1316   : > { %v2667_v53 = vpop.permute.xlu0 %2666 }
0x1317   : > { %v2677_v54 = vsel %vm1383_vm4, %v5477_v5, %v2667_v53 }
0x132b   : > { %v2595_v42 = vpop.f32.mrf.mxu2 }
0x132c   : > { %2670 = vrot.lane.b32.xlu1 %v2595_v42, %s5992_s18 }
0x1356   : > { %2299 = vadd.xlane.f32.xlu1 %v2298_v48 }
0x1378   : > { %v2675_v55 = vpop.permute.xlu0 %2674 }
0x139e   : > { %v2671_v47 = vpop.permute.xlu1 %2670 }
0x139f   : > { %v2678_v60 = vsel %vm1661_vm5, %v2677_v54, %v2671_v47  ;;  %v4634_v54 = vld [vmem:[%s6007_s17] ss:$0 sm:$0xff]  ;;  %s6020_s17 = sld [smem:[#allocation35_spill]] }
0x13a0   : > { %v2679_v56 = vsel %vm1663_vm6, %v2678_v60, %v2675_v55  ;;  %v4635_v60 = vld [vmem:[%s6008_s30] ss:$0 sm:$0xff] }
0x13a1   : > { %4418 = vmatmul.msk.f32.vlgmr.msrb.gmra.mxu0 %vm1308_vm0, %v2679_v56 }
0x13c9   : > { %v2300_v58 = vpop.xlane.xlu1 %2299 }
0x13ca   : > { %v2301_v37 = vmul.f32 %v2300_v58, %v5197_v8 }
0x13cc   : > { %v2302_v1 = vsub.f32 %v2295_v46, %v2301_v37  ;;  %v4636_v37 = vld [vmem:[%s6009_s4] ss:$0 sm:$0xff] }
0x13ce   : > { %v2303_v38 = vmul.f32 %v2302_v1, %v2302_v1 }
0x13d0   : > { %v2304_v2 = vsel %vm1308_vm0, %v2303_v38, 0.0 }
0x141e   : > { %v2708_v59 = vpop.f32.mrf.mxu0 }
0x141f   : > { %v2709_v62 = vadd.f32 %v4630_v57, %v2708_v59 }
0x1421   : > { %v5511_v63 = vadd.f32 %v2709_v62, %v5355_v33 }
0x1423   : > { %v2714_v0 = vsel %vm1308_vm0, %v5511_v63, 0.0 }
0x1424   : > { %2715 = vadd.xlane.f32.xlu2 %v2714_v0 }
0x142c   : > { %2305 = vadd.xlane.f32.xlu2 %v2304_v2 }
0x1497   : > { %v2716_v5 = vpop.xlane.xlu2 %2715 }
0x1498   : > { %v2717_v9 = vmul.f32 %v2716_v5, %v5197_v8 }
0x149a   : > { %v2718_v33 = vsub.f32 %v5511_v63, %v2717_v9 }
0x149c   : > { %v2719_v11 = vmul.f32 %v2718_v33, %v2718_v33 }
0x149e   : > { %v2720_v12 = vsel %vm1308_vm0, %v2719_v11, 0.0 }
0x149f   : > { %2721 = vadd.xlane.f32.xlu0 %v2720_v12  ;;  %v2306_v13 = vpop.xlane.xlu2 %2305 }
0x14a0   : > { %v2307_v14 = vmul.f32 0.032258064, %v2306_v13 }
0x14a2   : > { %4727 = vrsqrt.f32 %v2307_v14  ;;  %vm2315_vm1 = vcmp.eq.f32.partialorder %v2307_v14, inf  ;;  %v2318_v61 = vand.u32 2147483648, %v2307_v14  ;;  %vm2317_vm2 = vcmp.eq.f32.partialorder %v2307_v14, 0.0 }
0x14a8   : > { %v4728_v15 = vpop.eup %4727 }
0x14a9   : > { %v2309_v16 = vmul.f32 %v4728_v15, %v2307_v14 }
0x14ab   : > { %v2310_v17 = vmul.f32 %v4728_v15, %v2309_v16 }
0x14ad   : > { %v2311_v7 = vmul.f32 0.5, %v2310_v17 }
0x14af   : > { %v2312_v18 = vsub.f32 1.5, %v2311_v7 }
0x14b1   : > { %v2313_v19 = vmul.f32 %v4728_v15, %v2312_v18 }
0x14b3   : > { %v2314_v20 = vmul.f32 %v2313_v19, %v2307_v14 }
0x14b5   : > { %v2316_v21 = vsel %vm2315_vm1, %v2307_v14, %v2314_v20 }
0x14b6   : > { %v2319_v22 = vsel %vm2317_vm2, %v2318_v61, %v2316_v21 }
0x14b7   : > { %v2320_v23 = vadd.f32 1e-06, %v2319_v22 }
0x14b9   : > { %4729 = vrcp.f32 %v2320_v23 }
0x14bf   : > { %v4730_v25 = vpop.eup %4729 }
0x14c0   : > { %v2322_v26 = vmul.f32 %v4730_v25, %v2302_v1 }
0x14c2   : > { %v2326_v28 = vmul.f32 %v4631_v24, %v2322_v26 }
0x14c4   : > { %v5525_v29 = vadd.f32 %v4632_v27, %v2326_v28 }
0x14c6   : > { %4420 = vmatmul.msk.f32.vlgmr.msrb.gmra.mxu1 %vm1308_vm0, %v5525_v29 }
0x1512   : > { %v2722_v35 = vpop.xlane.xlu0 %2721 }
0x1513   : > { %v2723_v36 = vmul.f32 0.032258064, %v2722_v35 }
0x1515   : > { %4731 = vrsqrt.f32 %v2723_v36  ;;  %vm2731_vm3 = vcmp.eq.f32.partialorder %v2723_v36, inf  ;;  %v2734_v46 = vand.u32 2147483648, %v2723_v36  ;;  %vm2733_vm7 = vcmp.eq.f32.partialorder %v2723_v36, 0.0 }
0x151b   : > { %v4732_v39 = vpop.eup %4731 }
0x151c   : > { %v2725_v40 = vmul.f32 %v4732_v39, %v2723_v36 }
0x151e   : > { %v2726_v45 = vmul.f32 %v4732_v39, %v2725_v40 }
0x1520   : > { %v2727_v41 = vmul.f32 0.5, %v2726_v45 }
0x1522   : > { %v2728_v42 = vsub.f32 1.5, %v2727_v41 }
0x1524   : > { %v2729_v43 = vmul.f32 %v4732_v39, %v2728_v42 }
0x1526   : > { %v2730_v44 = vmul.f32 %v2729_v43, %v2723_v36 }
0x1528   : > { %v2732_v48 = vsel %vm2731_vm3, %v2723_v36, %v2730_v44 }
0x1529   : > { %v2735_v49 = vsel %vm2733_vm7, %v2734_v46, %v2732_v48 }
0x152a   : > { %v2736_v50 = vadd.f32 1e-06, %v2735_v49 }
0x152c   : > { %4733 = vrcp.f32 %v2736_v50 }
0x1532   : > { %v4734_v52 = vpop.eup %4733 }
0x1533   : > { %v2738_v53 = vmul.f32 %v4734_v52, %v2718_v33 }
0x1535   : > { %v2742_v47 = vmul.f32 %v4633_v51, %v2738_v53 }
0x1537   : > { %v2746_v55 = vadd.f32 %v4634_v54, %v2742_v47 }
0x1539   : > { %4419 = vmatmul.msk.f32.vlgmr.msrb.gmra.mxu2 %vm1308_vm0, %v2746_v55 }
0x1543   : > { %v2806_v56 = vpop.f32.mrf.mxu1 }
0x1544   : > { %v5537_v57 = vadd.f32 %v4635_v60, %v2806_v56 }
0x1546   : > { %2943 = vrot.lane.b32.xlu2 %v5537_v57, %s5980_s23  ;;  %2876 = vrot.lane.b32.xlu1 %v5537_v57, %s5997_s8 }
0x1547   : > { %4421 = vmatpush.xpose.msk.msra.mxu3 %vm1383_vm4, %v5537_v57 }
0x15a0   : > { %v2944_v58 = vpop.permute.xlu2 %2943 }
0x15a1   : > { %4427 = vmatpush.xpose.msk.msrb.mxu3 %vm1383_vm4, %v2944_v58 }
0x15b8   : > { %v2877_v59 = vpop.permute.xlu1 %2876 }
0x15b9   : > { %4424 = vmatpush.xpose.msk.msra.mxu2 %vm1383_vm4, %v2877_v59 }
0x15bc   : > { %v2775_v62 = vpop.f32.mrf.mxu2 }
0x15bd   : > { %v2776_v1 = vadd.f32 %v4636_v37, %v2775_v62 }
0x15bf   : > { %2874 = vrot.lane.b32.xlu0 %v2776_v1, %s5997_s8  ;;  %3008 = vrot.lane.b32.xlu2 %v2776_v1, %s5984_s22 }
0x15c0   : > { %2941 = vrot.lane.b32.xlu1 %v2776_v1, %s5980_s23  ;;  %4422 = vmatmul.msk.f32.vlgmr.msra.gmra.mxu3 %vm1383_vm4, %v2776_v1 }
0x15c7   : > { %3010 = vrot.lane.b32.xlu0 %v5537_v57, %s5984_s22 }
0x1619   : > { %v3009_v3 = vpop.permute.xlu2 %3008 }
0x1631   : > { %v2875_v0 = vpop.permute.xlu0 %2874 }
0x1632   : > { %v2942_v38 = vpop.permute.xlu1 %2941  ;;  %4425 = vmatmul.msk.f32.vlgmr.msra.gmra.mxu2 %vm1383_vm4, %v2875_v0  ;;  %v3093_v0 = vld [vmem:[%s6011_s21 + $0x18] sm:$0xff] }
0x1633   : > { %4428 = vmatmul.msk.f32.vlgmr.msrb.gmra.mxu3 %vm1383_vm4, %v2942_v38  ;;  %v3092_v38 = vld [vmem:[%s6011_s21 + $0x10] sm:$0xff] }
0x1634   : > { %3113 = vmatpush.msra.mxu3 %v3093_v0 }
0x1636   : > { %3114 = vmatpush.msra.mxu3 %v3092_v38 }
0x1639   : > { %v3011_v2 = vpop.permute.xlu0 %3010 }
0x163a   : > { %4430 = vmatpush.xpose.msk.msrb.mxu2 %vm1383_vm4, %v3011_v2  ;;  %v3091_v2 = vld [vmem:[%s6011_s21 + $0x8] sm:$0xff] }
0x163b   : > { %3115 = vmatpush.msra.mxu3 %v3091_v2 }
0x163d   : > { %4431 = vmatmul.msk.f32.vlgmr.msrb.gmra.mxu2 %vm1383_vm4, %v3009_v3  ;;  %v3090_v3 = vld [vmem:[%s6011_s21] sm:$0xff]  ;;  %s6015_s21 = smov %s6014_s10 }
0x163e   : > { %3116 = vmatpush.msra.mxu3 %v3090_v3 }
0x1643   : > { %v2832_v5 = vpop.f32.mrf.mxu3 }
0x1644   : > { %v2835_v6 = vmul.f32 0.35355338, %v2832_v5 }
0x1646   : > { %v2836_v9 = vadd.f32 %v2835_v6, %v5560_v4 }
0x1648   : > { %v2837_v10 = vsel %vm1383_vm4, %v2836_v9, -inf }
0x1649   : > { %2838 = vmax.xlane.f32.xlu0 %v2837_v10 }
0x16b5   : > { %v2899_v33 = vpop.f32.mrf.mxu2 }
0x16b6   : > { %v2902_v11 = vmul.f32 0.35355338, %v2899_v33  ;;  %v2966_v12 = vpop.f32.mrf.mxu3 }
0x16b7   : > { %v2969_v13 = vmul.f32 0.35355338, %v2966_v12  ;;  %v4637_v12 = vld [vmem:[%s6012_s0] ss:$0 sm:$0xff]  ;;  %s6016_s0 = sld [smem:[#allocation40_spill]] }
0x16b8   : > { %v2903_v14 = vadd.f32 %v2902_v11, %v5560_v4 }
0x16b9   : > { %v2970_v15 = vadd.f32 %v2969_v13, %v5560_v4 }
0x16ba   : > { %v2904_v16 = vsel %vm1383_vm4, %v2903_v14, -inf }
0x16bb   : > { %2905 = vmax.xlane.f32.xlu1 %v2904_v16  ;;  %v2971_v17 = vsel %vm1383_vm4, %v2970_v15, -inf }
0x16bc   : > { %2972 = vmax.xlane.f32.xlu2 %v2971_v17  ;;  %v2839_v61 = vpop.xlane.xlu0 %2838 }
0x16bd   : > { %v2840_v21 = vsub.f32 %v2836_v9, %v2839_v61  ;;  %v3160_v61 = vld [vmem:[%s6013_s16 + $0x18] sm:$0xff] }
0x16bf   : > { %v2841_v22 = vmul.f32 1.442695, %v2840_v21  ;;  %v3159_v21 = vld [vmem:[%s6013_s16 + $0x10] sm:$0xff] }
0x16c0   : > { %v3033_v7 = vpop.f32.mrf.mxu2 }
0x16c1   : > { %v3036_v18 = vmul.f32 0.35355338, %v3033_v7  ;;  %4735 = vpow2.f32 %v2841_v22  ;;  %v3157_v22 = vld [vmem:[%s6013_s16] sm:$0xff] }
0x16c3   : > { %v3037_v19 = vadd.f32 %v3036_v18, %v5560_v4 }
0x16c5   : > { %v3038_v20 = vsel %vm1383_vm4, %v3037_v19, -inf }
0x16c6   : > { %3039 = vmax.xlane.f32.xlu0 %v3038_v20 }
0x16c7   : > { %v4736_v23 = vpop.eup %4735 }
0x16c8   : > { %v2843_v24 = vsel %vm1383_vm4, %v4736_v23, 0.0 }
0x16d4   : > { %2848 = vrot.lane.b32.xlu1 %v5537_v57, %s5995_s15 }
0x16fe   : > { %2844 = vadd.xlane.f32.xlu1 %v2843_v24 }
0x1717   : > { %3049 = vrot.lane.b32.xlu1 %v5537_v57, %s5982_s5 }
0x172e   : > { %v2906_v25 = vpop.xlane.xlu1 %2905 }
0x172f   : > { %v2907_v26 = vsub.f32 %v2903_v14, %v2906_v25  ;;  %v2973_v27 = vpop.xlane.xlu2 %2972  ;;  %v3169_v25 = vld [vmem:[%s6014_s10 + $0x38] sm:$0xff]  ;;  %s6018_s10 = sld [smem:[#allocation33_spill]] }
0x1730   : > { %v2974_v28 = vsub.f32 %v2970_v15, %v2973_v27  ;;  %3212 = vmatpush.msra.mxu2 %v3169_v25 }
0x1731   : > { %v2908_v30 = vmul.f32 1.442695, %v2907_v26  ;;  %v3168_v26 = vld [vmem:[%s6015_s21 + $0x30] sm:$0xff] }
0x1732   : > { %v2975_v31 = vmul.f32 1.442695, %v2974_v28  ;;  %v3167_v28 = vld [vmem:[%s6015_s21 + $0x28] sm:$0xff]  ;;  %3213 = vmatpush.msra.mxu2 %v3168_v26  ;;  %v4644_v26 = vld [vmem:[%s5991_s29 + $0x1] ss:$0 sm:$0xff] }
0x1733   : > { %4737 = vpow2.f32 %v2908_v30 }
0x1734   : > { %4739 = vpow2.f32 %v2975_v31  ;;  %v3166_v31 = vld [vmem:[%s6015_s21 + $0x20] sm:$0xff]  ;;  %3214 = vmatpush.msra.mxu2 %v3167_v28 }
0x1735   : > { %s6019_s4 = smov %s6018_s10 }
0x1736   : > { %3215 = vmatpush.msra.mxu2 %v3166_v31 }
0x1739   : > { %v4738_v32 = vpop.eup %4737  ;;  %v3040_v34 = vpop.xlane.xlu0 %3039 }
0x173a   : > { %v4740_v35 = vpop.eup %4739  ;;  %v3041_v36 = vsub.f32 %v3037_v19, %v3040_v34  ;;  %v2910_v39 = vsel %vm1383_vm4, %v4738_v32, 0.0  ;;  %v3165_v34 = vld [vmem:[%s6015_s21 + $0x18] sm:$0xff] }
0x173b   : > { %2911 = vadd.xlane.f32.xlu2 %v2910_v39  ;;  %v2977_v40 = vsel %vm1383_vm4, %v4740_v35, 0.0  ;;  %3216 = vmatpush.msra.mxu2 %v3165_v34 }
0x173c   : > { %v3042_v45 = vmul.f32 1.442695, %v3041_v36  ;;  %2978 = vadd.xlane.f32.xlu0 %v2977_v40 }
0x173e   : > { %4741 = vpow2.f32 %v3042_v45 }
0x1744   : > { %v4742_v41 = vpop.eup %4741 }
0x1745   : > { %v3044_v42 = vsel %vm1383_vm4, %v4742_v41, 0.0 }
0x1746   : > { %v2849_v43 = vpop.permute.xlu1 %2848  ;;  %3045 = vadd.xlane.f32.xlu2 %v3044_v42 }
0x1747   : > { %2869 = vmatpush.msra.mxu0 %v2849_v43 }
0x1750   : > { %2915 = vrot.lane.b32.xlu0 %v5537_v57, %s5981_s2 }
0x175e   : > { %2982 = vrot.lane.b32.xlu2 %v5537_v57, %s5998_s9 }
0x1771   : > { %v2845_v44 = vpop.xlane.xlu1 %2844 }
0x1772   : > { %4743 = vrcp.f32 %v2845_v44  ;;  %v4638_v44 = vld [vmem:[%s6016_s0] ss:$0 sm:$0xff] }
0x1778   : > { %v4744_v46 = vpop.eup %4743 }
0x1779   : > { %v2847_v48 = vmul.f32 %v4744_v46, %v4736_v23 }
0x177b   : > { %4423 = vmatmul.msk.f32.vlgmr.msra.gmra.mxu0 %vm1383_vm4, %v2847_v48 }
0x1789   : > { %v3050_v56 = vpop.permute.xlu1 %3049 }
0x17ae   : > { %v2912_v49 = vpop.xlane.xlu2 %2911 }
0x17af   : > { %v2979_v50 = vpop.xlane.xlu0 %2978 }
0x17b0   : > { %4745 = vrcp.f32 %v2979_v50 }
0x17b1   : > { %4747 = vrcp.f32 %v2912_v49 }
0x17b6   : > { %v4746_v52 = vpop.eup %4745 }
0x17b7   : > { %v4748_v53 = vpop.eup %4747  ;;  %v2981_v54 = vmul.f32 %v4746_v52, %v4740_v35  ;;  %v3164_v52 = vld [vmem:[%s6015_s21 + $0x10] sm:$0xff] }
0x17b8   : > { %v2914_v55 = vmul.f32 %v4748_v53, %v4738_v32  ;;  %3217 = vmatpush.msra.mxu2 %v3164_v52  ;;  %v3163_v53 = vld [vmem:[%s6015_s21 + $0x8] sm:$0xff] }
0x17b9   : > { %v3046_v51 = vpop.xlane.xlu2 %3045 }
0x17ba   : > { %4749 = vrcp.f32 %v3046_v51  ;;  %3218 = vmatpush.msra.mxu2 %v3163_v53  ;;  %v4470_v53 = vld [vmem:[%s6002_s20 + $0x20] sm:$0xff] }
0x17c0   : > { %v4750_v57 = vpop.eup %4749 }
0x17c1   : > { %v2983_v47 = vpop.permute.xlu2 %2982  ;;  %v3048_v58 = vmul.f32 %v4750_v57, %v4742_v41  ;;  %v4641_v57 = vld [vmem:[%s6020_s17] ss:$0 sm:$0xff] }
0x17c2   : > { %v2916_v60 = vpop.permute.xlu0 %2915  ;;  %3003 = vmatpush.msrb.mxu0 %v2983_v47  ;;  %v4640_v47 = vld [vmem:[%s6018_s10] ss:$0 sm:$0xff] }
0x17c3   : > { %2936 = vmatpush.msra.mxu1 %v2916_v60  ;;  %4429 = vmatmul.msk.f32.vlgmr.msrb.gmra.mxu0 %vm1383_vm4, %v2981_v54  ;;  %v3162_v54 = vld [vmem:[%s6015_s21] sm:$0xff] }
0x17c4   : > { %4426 = vmatmul.msk.f32.vlgmr.msra.gmra.mxu1 %vm1383_vm4, %v2914_v55  ;;  %3189 = vmatpush.msra.mxu0 %v3160_v61 }
0x17c5   : > { %3070 = vmatpush.msrb.mxu1 %v3050_v56  ;;  %3219 = vmatpush.msra.mxu2 %v3162_v54 }
0x17c6   : > { %3190 = vmatpush.msra.mxu0 %v3159_v21  ;;  %v4642_v21 = vld [vmem:[%s5989_s13 + $0x1] ss:$0 sm:$0xff] }
0x17cc   : > { %4432 = vmatmul.msk.f32.vlgmr.msrb.gmra.mxu1 %vm1383_vm4, %v3048_v58 }
0x17f8   : > { %v2871_v59 = vpop.f32.mrf.mxu0 }
0x1840   : > { %v3005_v37 = vpop.f32.mrf.mxu0 }
0x1841   : > { %v2938_v62 = vpop.f32.mrf.mxu1  ;;  %3080 = vrot.lane.b32.xlu1 %v3005_v37, %s5992_s18 }
0x1842   : > { %3076 = vrot.lane.b32.xlu0 %v2938_v62, %s5993_s1 }
0x1849   : > { %v3072_v1 = vpop.f32.mrf.mxu1 }
0x184a   : > { %3084 = vrot.lane.b32.xlu0 %v3072_v1, %s5994_s7 }
0x18b3   : > { %v3081_v6 = vpop.permute.xlu1 %3080 }
0x18b4   : > { %v3077_v5 = vpop.permute.xlu0 %3076 }
0x18b5   : > { %v3087_v9 = vsel %vm1383_vm4, %v2871_v59, %v3077_v5  ;;  %v4441_v5 = vld [vmem:[%s5988_s12 + $0x38] sm:$0xff] }
0x18b6   : > { %v3088_v10 = vsel %vm1661_vm5, %v3087_v9, %v3081_v6  ;;  %v4440_v6 = vld [vmem:[%s5988_s12 + $0x30] sm:$0xff]  ;;  %3287 = vmatpush.msra.mxu1 %v4441_v5  ;;  %v4439_v9 = vld [vmem:[%s5988_s12 + $0x28] sm:$0xff] }
0x18b8   : > { %3288 = vmatpush.msra.mxu1 %v4440_v6 }
0x18ba   : > { %3289 = vmatpush.msra.mxu1 %v4439_v9 }
0x18bc   : > { %v3085_v33 = vpop.permute.xlu0 %3084 }
0x18bd   : > { %v3089_v11 = vsel %vm1663_vm6, %v3088_v10, %v3085_v33  ;;  %v4438_v10 = vld [vmem:[%s5988_s12 + $0x20] sm:$0xff] }
0x18be   : > { %4433 = vmatmul.msk.f32.vlgmr.msra.gmra.mxu3 %vm1308_vm0, %v3089_v11  ;;  %3290 = vmatpush.msra.mxu1 %v4438_v10 }
0x1941   : > { %v3118_v13 = vpop.f32.mrf.mxu3 }
0x1942   : > { %v3119_v14 = vadd.f32 %v4637_v12, %v3118_v13 }
0x1944   : > { %v5599_v15 = vadd.f32 %v3119_v14, %v5511_v63  ;;  %v3158_v63 = vld [vmem:[%s6013_s16 + $0x8] sm:$0xff]  ;;  %s6017_s16 = sld [smem:[#allocation41_spill]] }
0x1945   : > { %3191 = vmatpush.msra.mxu0 %v3158_v63 }
0x1946   : > { %v3124_v16 = vsel %vm1308_vm0, %v5599_v15, 0.0 }
0x1947   : > { %3125 = vadd.xlane.f32.xlu2 %v3124_v16  ;;  %3192 = vmatpush.msra.mxu0 %v3157_v22 }
0x194a   : > { %v4639_v49 = vld [vmem:[%s6017_s16] ss:$0 sm:$0xff] }
0x19ba   : > { %v3126_v17 = vpop.xlane.xlu2 %3125 }
0x19bb   : > { %v3127_v7 = vmul.f32 %v3126_v17, %v5197_v8 }
0x19bd   : > { %v3128_v18 = vsub.f32 %v5599_v15, %v3127_v7 }
0x19bf   : > { %v3129_v19 = vmul.f32 %v3128_v18, %v3128_v18 }
0x19c1   : > { %v3130_v20 = vsel %vm1308_vm0, %v3129_v19, 0.0 }
0x19c2   : > { %3131 = vadd.xlane.f32.xlu1 %v3130_v20 }
0x1a35   : > { %v3132_v23 = vpop.xlane.xlu1 %3131 }
0x1a36   : > { %v3133_v24 = vmul.f32 0.032258064, %v3132_v23  ;;  %v4643_v23 = vld [vmem:[%s5990_s25 + $0x1] ss:$0 sm:$0xff] }
0x1a38   : > { %4751 = vrsqrt.f32 %v3133_v24  ;;  %vm3141_vm8 = vcmp.eq.f32.partialorder %v3133_v24, inf  ;;  %v3144_v45 = vand.u32 2147483648, %v3133_v24  ;;  %vm3143_vm10 = vcmp.eq.f32.partialorder %v3133_v24, 0.0 }
0x1a3e   : > { %v4752_v27 = vpop.eup %4751 }
0x1a3f   : > { %v3135_v30 = vmul.f32 %v4752_v27, %v3133_v24 }
0x1a41   : > { %v3136_v32 = vmul.f32 %v4752_v27, %v3135_v30 }
0x1a43   : > { %v3137_v35 = vmul.f32 0.5, %v3136_v32 }
0x1a45   : > { %v3138_v36 = vsub.f32 1.5, %v3137_v35  ;;  %v4803_v35 = vld [vmem:[%s5418_s3] sm:$0xff]  ;;  %s6021_s3 = sld [smem:[#allocation39_spill]] }
0x1a47   : > { %v3139_v39 = vmul.f32 %v4752_v27, %v3138_v36 }
0x1a49   : > { %v3140_v40 = vmul.f32 %v3139_v39, %v3133_v24 }
0x1a4b   : > { %v3142_v41 = vsel %vm3141_vm8, %v3133_v24, %v3140_v40 }
0x1a4c   : > { %v3145_v42 = vsel %vm3143_vm10, %v3144_v45, %v3142_v41 }
0x1a4d   : > { %v3146_v43 = vadd.f32 1e-06, %v3145_v42 }
0x1a4f   : > { %4753 = vrcp.f32 %v3146_v43 }
0x1a55   : > { %v4754_v46 = vpop.eup %4753 }
0x1a56   : > { %v3148_v48 = vmul.f32 %v4754_v46, %v3128_v18 }
0x1a58   : > { %v3152_v50 = vmul.f32 %v4638_v44, %v3148_v48 }
0x1a5a   : > { %v3156_v51 = vadd.f32 %v4639_v49, %v3152_v50  ;;  %v4473_v49 = vld [vmem:[%s6002_s20 + $0x38] sm:$0xff]  ;;  %v4472_v50 = vld [vmem:[%s6002_s20 + $0x30] sm:$0xff] }
0x1a5c   : > { %4434 = vmatmul.msk.f32.vlgmr.msra.gmra.mxu0 %vm1308_vm0, %v3156_v51  ;;  %v4471_v51 = vld [vmem:[%s6002_s20 + $0x28] sm:$0xff] }
0x1ad9   : > { %v3194_v55 = vpop.f32.mrf.mxu0 }
0x1ada   : > { %v3195_v60 = vadd.f32 %v4640_v47, %v3194_v55 }
0x1adc   : > { %v3197_v56 = vmax.f32 %v3195_v60, 0.0 }
0x1ade   : > { %4435 = vmatmul.msk.f32.vlgmr.msra.gmra.mxu2 %vm1776_vm9, %v3197_v56 }
0x1b61   : > { %v3221_v58 = vpop.f32.mrf.mxu2 }
0x1b62   : > { %v3222_v59 = vadd.f32 %v4641_v57, %v3221_v58 }
0x1b64   : > { %v5625_v37 = vadd.f32 %v3222_v59, %v5599_v15 }
0x1b66   : > { %v3229_v62 = vsel %vm1308_vm0, %v5625_v37, 0.0 }
0x1b67   : > { %3230 = vadd.xlane.f32.xlu0 %v3229_v62 }
0x1bda   : > { %v3231_v1 = vpop.xlane.xlu0 %3230 }
0x1bdb   : > { %v3232_v0 = vmul.f32 %v3231_v1, %v5197_v8 }
0x1bdd   : > { %v3233_v38 = vsub.f32 %v5625_v37, %v3232_v0 }
0x1bdf   : > { %v3234_v2 = vmul.f32 %v3233_v38, %v3233_v38 }
0x1be1   : > { %v3235_v3 = vsel %vm1308_vm0, %v3234_v2, 0.0 }
0x1be2   : > { %3236 = vadd.xlane.f32.xlu2 %v3235_v3 }
0x1c55   : > { %v3237_v33 = vpop.xlane.xlu2 %3236 }
0x1c56   : > { %v3238_v11 = vmul.f32 0.032258064, %v3237_v33 }
0x1c58   : > { %4755 = vrsqrt.f32 %v3238_v11  ;;  %vm3246_vm11 = vcmp.eq.f32.partialorder %v3238_v11, inf  ;;  %v3249_v18 = vand.u32 2147483648, %v3238_v11  ;;  %vm3248_vm12 = vcmp.eq.f32.partialorder %v3238_v11, 0.0 }
0x1c5e   : > { %v4756_v12 = vpop.eup %4755 }
0x1c5f   : > { %v3240_v13 = vmul.f32 %v4756_v12, %v3238_v11 }
0x1c61   : > { %v3241_v14 = vmul.f32 %v4756_v12, %v3240_v13 }
0x1c63   : > { %v3242_v15 = vmul.f32 0.5, %v3241_v14 }
0x1c65   : > { %v3243_v16 = vsub.f32 1.5, %v3242_v15 }
0x1c67   : > { %v3244_v17 = vmul.f32 %v4756_v12, %v3243_v16 }
0x1c69   : > { %v3245_v7 = vmul.f32 %v3244_v17, %v3238_v11 }
0x1c6b   : > { %v3247_v19 = vsel %vm3246_vm11, %v3238_v11, %v3245_v7 }
0x1c6c   : > { %v3250_v20 = vsel %vm3248_vm12, %v3249_v18, %v3247_v19 }
0x1c6d   : > { %v3251_v61 = vadd.f32 1e-06, %v3250_v20 }
0x1c6f   : > { %4757 = vrcp.f32 %v3251_v61 }
0x1c75   : > { %v4758_v63 = vpop.eup %4757 }
0x1c76   : > { %v3253_v22 = vmul.f32 %v4758_v63, %v3233_v38 }
0x1c78   : > { %v3257_v24 = vmul.f32 %v4642_v21, %v3253_v22 }
0x1c7a   : > { %v3261_v25 = vadd.f32 %v4643_v23, %v3257_v24 }
0x1c7c   : > { %4443 = vmatmul.msk.f32.vlgmr.msra.gmra.mxu1 %vm1308_vm0, %v3261_v25 }
0x1cf9   : > { %v3292_v27 = vpop.f32.mrf.mxu1 }
0x1cfa   : > { %v5640_v28 = vadd.f32 %v4644_v26, %v3292_v27  ;;  %v4645_v27 = vld [vmem:[%s6008_s30 + $0x1] ss:$0 sm:$0xff] }
0x1cfc   : > { %3335 = vrot.lane.b32.xlu2 %v5640_v28, %s5999_s28  ;;  %3296 = vrot.lane.b32.xlu1 %v5640_v28, %s5995_s15 }
0x1d04   : > { %3361 = vrot.lane.b32.xlu1 %v5640_v28, %s5997_s8 }
0x1d0c   : > { %3497 = vrot.lane.b32.xlu1 %v5640_v28, %s5982_s5 }
0x1d56   : > { %v3336_v30 = vpop.permute.xlu2 %3335 }
0x1d57   : > { %3356 = vmatpush.msrb.mxu0 %v3336_v30 }
0x1d6e   : > { %v3297_v31 = vpop.permute.xlu1 %3296 }
0x1d6f   : > { %4444 = vmatpush.xpose.msk.msrb.mxu3 %vm1383_vm4, %v3297_v31 }
0x1d72   : > { %4445 = vmatmul.msk.f32.vlgmr.msrb.gmra.mxu3 %vm1383_vm4, %v5640_v28 }
0x1d76   : > { %v3362_v42 = vpop.permute.xlu1 %3361 }
0x1d7e   : > { %v3498_v48 = vpop.permute.xlu1 %3497 }
0x1df5   : > { %v3319_v32 = vpop.f32.mrf.mxu3 }
0x1df6   : > { %v3322_v34 = vmul.f32 0.35355338, %v3319_v32 }
0x1df8   : > { %v3323_v36 = vadd.f32 %v4803_v35, %v3322_v34 }
0x1dfa   : > { %v3324_v39 = vsel %vm1383_vm4, %v3323_v36, -inf }
0x1dfb   : > { %3325 = vmax.xlane.f32.xlu0 %v3324_v39 }
0x1e0f   : > { %3363 = vrot.lane.b32.xlu0 %v5640_v28, %s5981_s2 }
0x1e17   : > { %3430 = vrot.lane.b32.xlu0 %v5640_v28, %s5998_s9 }
0x1e1f   : > { %3495 = vrot.lane.b32.xlu0 %v5640_v28, %s5984_s22 }
0x1e6e   : > { %v3326_v40 = vpop.xlane.xlu0 %3325 }
0x1e6f   : > { %v3327_v45 = vsub.f32 %v3323_v36, %v3326_v40 }
0x1e71   : > { %v3328_v41 = vmul.f32 1.442695, %v3327_v45 }
0x1e73   : > { %4759 = vpow2.f32 %v3328_v41  ;;  %v4467_v41 = vld [vmem:[%s6005_s27 + $0x38] sm:$0xff] }
0x1e79   : > { %v4760_v43 = vpop.eup %4759 }
0x1e7a   : > { %v3330_v44 = vsel %vm1383_vm4, %v4760_v43, 0.0 }
0x1e7b   : > { %3331 = vadd.xlane.f32.xlu2 %v3330_v44  ;;  %v4464_v44 = vld [vmem:[%s6005_s27 + $0x20] sm:$0xff] }
0x1e81   : > { %v3364_v46 = vpop.permute.xlu0 %3363 }
0x1e82   : > { %4447 = vmatpush.xpose.msk.msrb.mxu1 %vm1383_vm4, %v3364_v46  ;;  %v4459_v46 = vld [vmem:[%s6000_s14 + $0x38] sm:$0xff] }
0x1e85   : > { %4448 = vmatmul.msk.f32.vlgmr.msrb.gmra.mxu1 %vm1383_vm4, %v3362_v42  ;;  %v4466_v42 = vld [vmem:[%s6005_s27 + $0x30] sm:$0xff] }
0x1e86   : > { %4453 = vmatpush.xpose.msk.msra.mxu1 %vm1383_vm4, %v3498_v48  ;;  %v4458_v48 = vld [vmem:[%s6000_s14 + $0x30] sm:$0xff] }
0x1e89   : > { %v3431_v52 = vpop.permute.xlu0 %3430 }
0x1e8a   : > { %3703 = vmatpush.msrb.mxu1 %v4473_v49  ;;  %4450 = vmatpush.xpose.msk.msra.mxu0 %vm1383_vm4, %v3431_v52  ;;  %v4457_v49 = vld [vmem:[%s6000_s14 + $0x28] sm:$0xff] }
0x1e8c   : > { %3704 = vmatpush.msrb.mxu1 %v4472_v50 }
0x1e8e   : > { %3705 = vmatpush.msrb.mxu1 %v4471_v51 }
0x1e90   : > { %3706 = vmatpush.msrb.mxu1 %v4470_v53 }
0x1e91   : > { %v3496_v54 = vpop.permute.xlu0 %3495 }
0x1e92   : > { %4454 = vmatmul.msk.f32.vlgmr.msra.gmra.mxu1 %vm1383_vm4, %v3496_v54  ;;  %v4456_v54 = vld [vmem:[%s6000_s14 + $0x20] sm:$0xff] }
0x1e93   : > { %3428 = vrot.lane.b32.xlu2 %v5640_v28, %s5980_s23 }
0x1e9a   : > { %4475 = vmatmul.msk.f32.vlgmr.msrb.gmra.mxu1 %vm1308_vm0, %v5525_v29 }
0x1eee   : > { %v3332_v47 = vpop.xlane.xlu2 %3331 }
0x1eef   : > { %4761 = vrcp.f32 %v3332_v47 }
0x1ef5   : > { %v4762_v55 = vpop.eup %4761 }
0x1ef6   : > { %v3334_v60 = vmul.f32 %v4762_v55, %v4760_v43  ;;  %v3429_v56 = vpop.permute.xlu2 %3428  ;;  %v4465_v43 = vld [vmem:[%s6005_s27 + $0x28] sm:$0xff] }
0x1ef8   : > { %4446 = vmatmul.msk.f32.vlgmr.msrb.gmra.mxu0 %vm1383_vm4, %v3334_v60 }
0x1ef9   : > { %3602 = vmatpush.msrb.mxu0 %v4459_v46 }
0x1efb   : > { %3603 = vmatpush.msrb.mxu0 %v4458_v48 }
0x1efd   : > { %3604 = vmatpush.msrb.mxu0 %v4457_v49 }
0x1eff   : > { %3605 = vmatpush.msrb.mxu0 %v4456_v54 }
0x1f00   : > { %4451 = vmatmul.msk.f32.vlgmr.msra.gmra.mxu0 %vm1383_vm4, %v3429_v56 }
0x1f02   : > { %v3386_v57 = vpop.f32.mrf.mxu1 }
0x1f03   : > { %v3389_v58 = vmul.f32 0.35355338, %v3386_v57 }
0x1f05   : > { %v3390_v59 = vadd.f32 %v4803_v35, %v3389_v58  ;;  %v4646_v58 = vld [vmem:[%s6001_s19 + $0x1] ss:$0 sm:$0xff] }
0x1f07   : > { %v3391_v62 = vsel %vm1383_vm4, %v3390_v59, -inf }
0x1f08   : > { %3392 = vmax.xlane.f32.xlu1 %v3391_v62 }
0x1f0f   : > { %v3520_v1 = vpop.f32.mrf.mxu1 }
0x1f10   : > { %v3523_v0 = vmul.f32 0.35355338, %v3520_v1 }
0x1f12   : > { %v3524_v38 = vadd.f32 %v4803_v35, %v3523_v0 }
0x1f14   : > { %v3525_v29 = vsel %vm1383_vm4, %v3524_v38, -inf }
0x1f15   : > { %3526 = vmax.xlane.f32.xlu0 %v3525_v29 }
0x1f17   : > { %v3708_v30 = vpop.f32.mrf.mxu1 }
0x1f18   : > { %v5691_v34 = vadd.f32 %v4645_v27, %v3708_v30 }
0x1f75   : > { %v5679_v2 = vpop.f32.mrf.mxu0 }
0x1f7b   : > { %v3393_v3 = vpop.xlane.xlu1 %3392 }
0x1f7c   : > { %v3394_v5 = vsub.f32 %v3390_v59, %v3393_v3 }
0x1f7d   : > { %v3453_v6 = vpop.f32.mrf.mxu0 }
0x1f7e   : > { %v3395_v9 = vmul.f32 1.442695, %v3394_v5  ;;  %v3456_v10 = vmul.f32 0.35355338, %v3453_v6 }
0x1f80   : > { %v3457_v33 = vadd.f32 %v4803_v35, %v3456_v10  ;;  %4763 = vpow2.f32 %v3395_v9 }
0x1f82   : > { %v3458_v11 = vsel %vm1383_vm4, %v3457_v33, -inf }
0x1f83   : > { %3459 = vmax.xlane.f32.xlu2 %v3458_v11 }
0x1f86   : > { %v4764_v12 = vpop.eup %4763 }
0x1f87   : > { %v3397_v15 = vsel %vm1383_vm4, %v4764_v12, 0.0 }
0x1f88   : > { %v3527_v13 = vpop.xlane.xlu0 %3526 }
0x1f89   : > { %v3528_v14 = vsub.f32 %v3524_v38, %v3527_v13 }
0x1f8b   : > { %v3529_v16 = vmul.f32 1.442695, %v3528_v14  ;;  %3398 = vadd.xlane.f32.xlu2 %v3397_v15 }
0x1f8d   : > { %4765 = vpow2.f32 %v3529_v16 }
0x1f93   : > { %v4766_v17 = vpop.eup %4765 }
0x1f94   : > { %v3531_v7 = vsel %vm1383_vm4, %v4766_v17, 0.0 }
0x1f95   : > { %3532 = vadd.xlane.f32.xlu0 %v3531_v7 }
0x1fa3   : > { %3402 = vrot.lane.b32.xlu2 %v5640_v28, %s5987_s6  ;;  %s6022_s6 = sld [smem:[#allocation27_spill]] }
0x1fa9   : > { %3536 = vrot.lane.b32.xlu0 %v5640_v28, %s5986_s26 }
0x1ff6   : > { %v3460_v18 = vpop.xlane.xlu2 %3459 }
0x1ff7   : > { %v3461_v19 = vsub.f32 %v3457_v33, %v3460_v18  ;;  %v4647_v18 = vld [vmem:[%s6006_s24 + $0x1] ss:$0 sm:$0xff] }
0x1ff9   : > { %v3462_v20 = vmul.f32 1.442695, %v3461_v19 }
0x1ffb   : > { %4767 = vpow2.f32 %v3462_v20 }
0x1ffe   : > { %v3399_v61 = vpop.xlane.xlu2 %3398 }
0x1fff   : > { %4769 = vrcp.f32 %v3399_v61  ;;  %v4648_v61 = vld [vmem:[%s6021_s3 + $0x1] ss:$0 sm:$0xff] }
0x2001   : > { %v4768_v21 = vpop.eup %4767 }
0x2002   : > { %v3464_v63 = vsel %vm1383_vm4, %v4768_v21, 0.0 }
0x2003   : > { %3465 = vadd.xlane.f32.xlu1 %v3464_v63 }
0x2005   : > { %v4770_v22 = vpop.eup %4769 }
0x2006   : > { %v3401_v23 = vmul.f32 %v4770_v22, %v4764_v12  ;;  %v3403_v24 = vpop.permute.xlu2 %3402 }
0x2007   : > { %3423 = vmatpush.msra.mxu3 %v3403_v24 }
0x2008   : > { %4449 = vmatmul.msk.f32.vlgmr.msra.gmra.mxu3 %vm1383_vm4, %v3401_v23  ;;  %v3533_v25 = vpop.xlane.xlu0 %3532  ;;  %v4649_v23 = vld [vmem:[%s6022_s6 + $0x1] ss:$0 sm:$0xff] }
0x2009   : > { %4771 = vrcp.f32 %v3533_v25 }
0x200f   : > { %v4772_v26 = vpop.eup %4771 }
0x2010   : > { %v3535_v31 = vmul.f32 %v4772_v26, %v4766_v17 }
0x201b   : > { %v3537_v32 = vpop.permute.xlu0 %3536 }
0x201c   : > { %3469 = vrot.lane.b32.xlu1 %v5640_v28, %s5985_s11  ;;  %3557 = vmatpush.msrb.mxu3 %v3537_v32 }
0x201d   : > { %4455 = vmatmul.msk.f32.vlgmr.msrb.gmra.mxu3 %vm1383_vm4, %v3535_v31 }
0x201e   : > { %4476 = vmatpush.xpose.msk.msra.mxu3 %vm1383_vm4, %v5691_v34 }
0x2076   : > { %v3466_v35 = vpop.xlane.xlu1 %3465 }
0x2077   : > { %4773 = vrcp.f32 %v3466_v35 }
0x207d   : > { %v4774_v36 = vpop.eup %4773 }
0x207e   : > { %v3468_v40 = vmul.f32 %v4774_v36, %v4768_v21 }
0x208b   : > { %v3425_v39 = vpop.f32.mrf.mxu3 }
0x208c   : > { %3563 = vrot.lane.b32.xlu2 %v3425_v39, %s5993_s1 }
0x208e   : > { %v3470_v45 = vpop.permute.xlu1 %3469 }
0x208f   : > { %3490 = vmatpush.msrb.mxu2 %v3470_v45 }
0x2090   : > { %4452 = vmatmul.msk.f32.vlgmr.msrb.gmra.mxu2 %vm1383_vm4, %v3468_v40 }
0x2091   : > { %3673 = vmatpush.msra.mxu2 %v4467_v41 }
0x2093   : > { %3674 = vmatpush.msra.mxu2 %v4466_v42 }
0x2095   : > { %3675 = vmatpush.msra.mxu2 %v4465_v43 }
0x2097   : > { %3676 = vmatpush.msra.mxu2 %v4464_v44 }
0x20a0   : > { %v3559_v28 = vpop.f32.mrf.mxu3 }
0x20a1   : > { %3571 = vrot.lane.b32.xlu1 %v3559_v28, %s5994_s7 }
0x20a9   : > { %3778 = vrot.lane.b32.xlu1 %v5691_v34, %s5997_s8 }
0x20b1   : > { %3845 = vrot.lane.b32.xlu1 %v5691_v34, %s5980_s23 }
0x20b9   : > { %3912 = vrot.lane.b32.xlu1 %v5691_v34, %s5984_s22 }
0x20e6   : > { %v3564_v47 = vpop.permute.xlu2 %3563 }
0x20e7   : > { %v3574_v55 = vsel %vm1383_vm4, %v5679_v2, %v3564_v47 }
0x2113   : > { %v3492_v50 = vpop.f32.mrf.mxu2  ;;  %v3572_v51 = vpop.permute.xlu1 %3571 }
0x2114   : > { %3567 = vrot.lane.b32.xlu0 %v3492_v50, %s5992_s18 }
0x211b   : > { %v3779_v52 = vpop.permute.xlu1 %3778 }
0x211c   : > { %4479 = vmatpush.xpose.msk.msrb.mxu2 %vm1383_vm4, %v3779_v52 }
0x2123   : > { %v3846_v53 = vpop.permute.xlu1 %3845 }
0x2124   : > { %4482 = vmatpush.xpose.msk.msrb.mxu3 %vm1383_vm4, %v3846_v53 }
0x212b   : > { %v3913_v22 = vpop.permute.xlu1 %3912 }
0x2186   : > { %v3568_v60 = vpop.permute.xlu0 %3567 }
0x2187   : > { %v3575_v56 = vsel %vm1661_vm5, %v3574_v55, %v3568_v60 }
0x2188   : > { %v3576_v57 = vsel %vm1663_vm6, %v3575_v56, %v3572_v51 }
0x2189   : > { %4461 = vmatmul.msk.f32.vlgmr.msrb.gmra.mxu0 %vm1308_vm0, %v3576_v57 }
0x2206   : > { %v3607_v59 = vpop.f32.mrf.mxu0 }
0x2207   : > { %v3608_v62 = vadd.f32 %v4646_v58, %v3607_v59 }
0x2209   : > { %v5725_v1 = vadd.f32 %v3608_v62, %v5625_v37 }
0x220b   : > { %v3615_v0 = vsel %vm1308_vm0, %v5725_v1, 0.0 }
0x220c   : > { %3616 = vadd.xlane.f32.xlu2 %v3615_v0 }
0x227f   : > { %v3617_v38 = vpop.xlane.xlu2 %3616 }
0x2280   : > { %v3618_v29 = vmul.f32 %v3617_v38, %v5197_v8 }
0x2282   : > { %v3619_v2 = vsub.f32 %v5725_v1, %v3618_v29 }
0x2284   : > { %v3620_v3 = vmul.f32 %v3619_v2, %v3619_v2 }
0x2286   : > { %v3621_v5 = vsel %vm1308_vm0, %v3620_v3, 0.0 }
0x2287   : > { %3622 = vadd.xlane.f32.xlu0 %v3621_v5 }
0x22fa   : > { %v3623_v6 = vpop.xlane.xlu0 %3622 }
0x22fb   : > { %v3624_v9 = vmul.f32 0.032258064, %v3623_v6 }
0x22fd   : > { %4775 = vrsqrt.f32 %v3624_v9  ;;  %vm3632_vm13 = vcmp.eq.f32.partialorder %v3624_v9, inf  ;;  %v3635_v15 = vand.u32 2147483648, %v3624_v9  ;;  %vm3634_vm14 = vcmp.eq.f32.partialorder %v3624_v9, 0.0 }
0x2303   : > { %v4776_v10 = vpop.eup %4775 }
0x2304   : > { %v3626_v37 = vmul.f32 %v4776_v10, %v3624_v9 }
0x2306   : > { %v3627_v33 = vmul.f32 %v4776_v10, %v3626_v37 }
0x2308   : > { %v3628_v11 = vmul.f32 0.5, %v3627_v33 }
0x230a   : > { %v3629_v12 = vsub.f32 1.5, %v3628_v11 }
0x230c   : > { %v3630_v13 = vmul.f32 %v4776_v10, %v3629_v12 }
0x230e   : > { %v3631_v14 = vmul.f32 %v3630_v13, %v3624_v9 }
0x2310   : > { %v3633_v16 = vsel %vm3632_vm13, %v3624_v9, %v3631_v14 }
0x2311   : > { %v3636_v17 = vsel %vm3634_vm14, %v3635_v15, %v3633_v16 }
0x2312   : > { %v3637_v7 = vadd.f32 1e-06, %v3636_v17 }
0x2314   : > { %4777 = vrcp.f32 %v3637_v7 }
0x231a   : > { %v4778_v19 = vpop.eup %4777 }
0x231b   : > { %v3639_v20 = vmul.f32 %v4778_v19, %v3619_v2 }
0x231d   : > { %v3643_v21 = vmul.f32 %v4647_v18, %v3639_v20 }
0x231f   : > { %v3647_v63 = vadd.f32 %v4648_v61, %v3643_v21 }
0x2321   : > { %4469 = vmatmul.msk.f32.vlgmr.msra.gmra.mxu2 %vm1308_vm0, %v3647_v63 }
0x2322   : > { %4485 = vmatpush.xpose.msk.msra.mxu2 %vm1383_vm4, %v3913_v22 }
0x23a4   : > { %v3678_v24 = vpop.f32.mrf.mxu2 }
0x23a5   : > { %v3679_v25 = vadd.f32 %v4649_v23, %v3678_v24 }
0x23a7   : > { %3910 = vrot.lane.b32.xlu2 %v3679_v25, %s5984_s22  ;;  %3776 = vrot.lane.b32.xlu1 %v3679_v25, %s5997_s8  ;;  %s6025_s8 = sld [smem:[#allocation32_spill]] }
0x23a8   : > { %4477 = vmatmul.msk.f32.vlgmr.msra.gmra.mxu3 %vm1383_vm4, %v3679_v25 }
0x23af   : > { %3843 = vrot.lane.b32.xlu1 %v3679_v25, %s5980_s23 }
0x2401   : > { %v3911_v27 = vpop.permute.xlu2 %3910 }
0x2419   : > { %v3777_v26 = vpop.permute.xlu1 %3776 }
0x241a   : > { %4480 = vmatmul.msk.f32.vlgmr.msrb.gmra.mxu2 %vm1383_vm4, %v3777_v26 }
0x2421   : > { %v3844_v30 = vpop.permute.xlu1 %3843 }
0x2422   : > { %4483 = vmatmul.msk.f32.vlgmr.msrb.gmra.mxu3 %vm1383_vm4, %v3844_v30  ;;  %4486 = vmatmul.msk.f32.vlgmr.msra.gmra.mxu2 %vm1383_vm4, %v3911_v27 }
0x242b   : > { %v3734_v31 = vpop.f32.mrf.mxu3 }
0x242c   : > { %v3737_v32 = vmul.f32 0.35355338, %v3734_v31 }
0x242e   : > { %v3738_v35 = vadd.f32 %v3737_v32, %v5560_v4 }
0x2430   : > { %v3739_v36 = vsel %vm1383_vm4, %v3738_v35, -inf }
0x2431   : > { %3740 = vmax.xlane.f32.xlu1 %v3739_v36 }
0x249d   : > { %v3801_v39 = vpop.f32.mrf.mxu2 }
0x249e   : > { %v3804_v40 = vmul.f32 0.35355338, %v3801_v39 }
0x24a0   : > { %v3805_v45 = vadd.f32 %v3804_v40, %v5560_v4 }
0x24a2   : > { %v3806_v28 = vsel %vm1383_vm4, %v3805_v45, -inf }
0x24a3   : > { %3807 = vmax.xlane.f32.xlu0 %v3806_v28 }
0x24a4   : > { %v3741_v41 = vpop.xlane.xlu1 %3740 }
0x24a5   : > { %v3742_v42 = vsub.f32 %v3738_v35, %v3741_v41  ;;  %v3868_v43 = vpop.f32.mrf.mxu3  ;;  %v3935_v48 = vpop.f32.mrf.mxu2 }
0x24a6   : > { %v3871_v44 = vmul.f32 0.35355338, %v3868_v43  ;;  %v3938_v50 = vmul.f32 0.35355338, %v3935_v48 }
0x24a7   : > { %v3743_v46 = vmul.f32 1.442695, %v3742_v42 }
0x24a8   : > { %v3872_v49 = vadd.f32 %v3871_v44, %v5560_v4  ;;  %v3939_v52 = vadd.f32 %v3938_v50, %v5560_v4  ;;  %v4498_v50 = vld [vmem:[%s6025_s8 + $0x30] sm:$0xff] }
0x24a9   : > { %4779 = vpow2.f32 %v3743_v46 }
0x24aa   : > { %v3873_v51 = vsel %vm1383_vm4, %v3872_v49, -inf  ;;  %v3940_v47 = vsel %vm1383_vm4, %v3939_v52, -inf }
0x24ab   : > { %3874 = vmax.xlane.f32.xlu0 %v3873_v51  ;;  %v4496_v51 = vld [vmem:[%s6025_s8 + $0x20] sm:$0xff] }
0x24af   : > { %v4780_v53 = vpop.eup %4779 }
0x24b0   : > { %v3745_v54 = vsel %vm1383_vm4, %v4780_v53, 0.0 }
0x24b1   : > { %3746 = vadd.xlane.f32.xlu2 %v3745_v54  ;;  %v4508_v54 = vld [vmem:[%s6015_s21 + $0x78] sm:$0xff] }
0x24b2   : > { %4122 = vmatpush.msrb.mxu2 %v4508_v54 }
0x24b3   : > { %3941 = vmax.xlane.f32.xlu0 %v3940_v47  ;;  %v4507_v47 = vld [vmem:[%s6015_s21 + $0x70] sm:$0xff] }
0x24b4   : > { %4123 = vmatpush.msrb.mxu2 %v4507_v47 }
0x24c7   : > { %3750 = vrot.lane.b32.xlu0 %v5691_v34, %s5995_s15  ;;  %s6027_s15 = sld [smem:[#allocation51_spill]] }
0x24c9   : > { %3951 = vrot.lane.b32.xlu2 %v5691_v34, %s5982_s5  ;;  %s6023_s5 = sld [smem:[#allocation30_spill]] }
0x24cd   : > { %s4513_s11 = sshll.u32 %s6027_s15, 3 }
0x24cf   : > { %v4491_v23 = vld [vmem:[%s6023_s5 + $0x38] sm:$0xff]  ;;  %v4490_v24 = vld [vmem:[%s6023_s5 + $0x30] sm:$0xff]  ;;  %v4489_v25 = vld [vmem:[%s6023_s5 + $0x28] sm:$0xff] }
0x24d0   : > { %4017 = vmatpush.msra.mxu3 %v4491_v23  ;;  %v4488_v26 = vld [vmem:[%s6023_s5 + $0x20] sm:$0xff] }
0x24d2   : > { %4018 = vmatpush.msra.mxu3 %v4490_v24 }
0x24d4   : > { %4019 = vmatpush.msra.mxu3 %v4489_v25 }
0x24d6   : > { %4020 = vmatpush.msra.mxu3 %v4488_v26 }
0x2516   : > { %v3808_v55 = vpop.xlane.xlu0 %3807 }
0x2517   : > { %v3809_v60 = vsub.f32 %v3805_v45, %v3808_v55 }
0x2519   : > { %v3810_v56 = vmul.f32 1.442695, %v3809_v60  ;;  %v4506_v60 = vld [vmem:[%s6015_s21 + $0x68] sm:$0xff] }
0x251a   : > { %4124 = vmatpush.msrb.mxu2 %v4506_v60 }
0x251b   : > { %4781 = vpow2.f32 %v3810_v56 }
0x251e   : > { %v3875_v57 = vpop.xlane.xlu0 %3874 }
0x251f   : > { %v3876_v58 = vsub.f32 %v3872_v49, %v3875_v57  ;;  %v4499_v49 = vld [vmem:[%s6025_s8 + $0x38] sm:$0xff]  ;;  %v4505_v57 = vld [vmem:[%s6015_s21 + $0x60] sm:$0xff] }
0x2520   : > { %4125 = vmatpush.msrb.mxu2 %v4505_v57 }
0x2521   : > { %v4782_v4 = vpop.eup %4781  ;;  %v3877_v59 = vmul.f32 1.442695, %v3876_v58 }
0x2522   : > { %v3812_v62 = vsel %vm1383_vm4, %v4782_v4, 0.0 }
0x2523   : > { %4783 = vpow2.f32 %v3877_v59  ;;  %3813 = vadd.xlane.f32.xlu0 %v3812_v62 }
0x2524   : > { %v3747_v5 = vpop.xlane.xlu2 %3746 }
0x2526   : > { %v3942_v0 = vpop.xlane.xlu0 %3941 }
0x2527   : > { %v3943_v38 = vsub.f32 %v3939_v52, %v3942_v0 }
0x2529   : > { %v4784_v29 = vpop.eup %4783  ;;  %v3944_v2 = vmul.f32 1.442695, %v3943_v38 }
0x252a   : > { %v3879_v3 = vsel %vm1383_vm4, %v4784_v29, 0.0 }
0x252b   : > { %4785 = vpow2.f32 %v3944_v2  ;;  %3880 = vadd.xlane.f32.xlu0 %v3879_v3 }
0x252c   : > { %4787 = vrcp.f32 %v3747_v5  ;;  %v3952_v19 = vpop.permute.xlu2 %3951 }
0x2531   : > { %v4786_v6 = vpop.eup %4785 }
0x2532   : > { %v3946_v9 = vsel %vm1383_vm4, %v4786_v6, 0.0  ;;  %v4788_v10 = vpop.eup %4787 }
0x2533   : > { %3947 = vadd.xlane.f32.xlu1 %v3946_v9  ;;  %v3749_v37 = vmul.f32 %v4788_v10, %v4780_v53 }
0x2539   : > { %v3751_v33 = vpop.permute.xlu0 %3750 }
0x253a   : > { %3771 = vmatpush.msra.mxu0 %v3751_v33 }
0x253b   : > { %4478 = vmatmul.msk.f32.vlgmr.msra.gmra.mxu0 %vm1383_vm4, %v3749_v37  ;;  %v4652_v37 = vld [vmem:[%s6017_s16 + $0x1] ss:$0 sm:$0xff] }
0x253f   : > { %3884 = vrot.lane.b32.xlu0 %v5691_v34, %s5998_s9  ;;  %s6024_s9 = sld [smem:[#allocation31_spill]] }
0x2545   : > { %v4650_v39 = vld [vmem:[%s6024_s9 + $0x1] ss:$0 sm:$0xff] }
0x254c   : > { %3817 = vrot.lane.b32.xlu1 %v5691_v34, %s5981_s2  ;;  %s6030_s2 = sld [smem:[#allocation45_spill]] }
0x2596   : > { %v3814_v11 = vpop.xlane.xlu0 %3813 }
0x259e   : > { %v3881_v12 = vpop.xlane.xlu0 %3880 }
0x259f   : > { %4789 = vrcp.f32 %v3881_v12  ;;  %v4503_v12 = vld [vmem:[%s6015_s21 + $0x50] sm:$0xff] }
0x25a0   : > { %4791 = vrcp.f32 %v3814_v11 }
0x25a5   : > { %v4790_v13 = vpop.eup %4789 }
0x25a6   : > { %v3883_v14 = vmul.f32 %v4790_v13, %v4784_v29  ;;  %v3948_v16 = vpop.xlane.xlu1 %3947  ;;  %v4792_v17 = vpop.eup %4791  ;;  %v4502_v13 = vld [vmem:[%s6015_s21 + $0x48] sm:$0xff] }
0x25a7   : > { %4793 = vrcp.f32 %v3948_v16  ;;  %v3816_v7 = vmul.f32 %v4792_v17, %v4782_v4  ;;  %v4504_v4 = vld [vmem:[%s6015_s21 + $0x58] sm:$0xff] }
0x25a8   : > { %4126 = vmatpush.msrb.mxu2 %v4504_v4 }
0x25aa   : > { %4127 = vmatpush.msrb.mxu2 %v4503_v12 }
0x25ac   : > { %4128 = vmatpush.msrb.mxu2 %v4502_v13 }
0x25ad   : > { %v4794_v34 = vpop.eup %4793 }
0x25ae   : > { %v3950_v20 = vmul.f32 %v4794_v34, %v4786_v6  ;;  %v4651_v6 = vld [vmem:[%s6016_s0 + $0x1] ss:$0 sm:$0xff] }
0x25b1   : > { %v3885_v15 = vpop.permute.xlu0 %3884 }
0x25b2   : > { %3905 = vmatpush.msrb.mxu0 %v3885_v15  ;;  %v4653_v15 = vld [vmem:[%s6019_s4 + $0x1] ss:$0 sm:$0xff] }
0x25b3   : > { %4484 = vmatmul.msk.f32.vlgmr.msrb.gmra.mxu0 %vm1383_vm4, %v3883_v14  ;;  %v4501_v14 = vld [vmem:[%s6015_s21 + $0x40] sm:$0xff] }
0x25b4   : > { %4099 = vmatpush.msra.mxu0 %v4499_v49  ;;  %4129 = vmatpush.msrb.mxu2 %v4501_v14 }
0x25b6   : > { %4100 = vmatpush.msra.mxu0 %v4498_v50 }
0x25b8   : > { %v3773_v61 = vpop.f32.mrf.mxu0 }
0x25be   : > { %v3818_v18 = vpop.permute.xlu1 %3817 }
0x25bf   : > { %3838 = vmatpush.msra.mxu1 %v3818_v18  ;;  %v4654_v18 = vld [vmem:[%s6020_s17 + $0x1] ss:$0 sm:$0xff] }
0x25c0   : > { %4481 = vmatmul.msk.f32.vlgmr.msra.gmra.mxu1 %vm1383_vm4, %v3816_v7 }
0x25c1   : > { %3972 = vmatpush.msrb.mxu1 %v3952_v19 }
0x25c8   : > { %4487 = vmatmul.msk.f32.vlgmr.msrb.gmra.mxu1 %vm1383_vm4, %v3950_v20 }
0x2630   : > { %v3907_v21 = vpop.f32.mrf.mxu0 }
0x2631   : > { %3982 = vrot.lane.b32.xlu1 %v3907_v21, %s5992_s18  ;;  %s6028_s18 = sld [smem:[#allocation44_spill]] }
0x263d   : > { %v3840_v63 = vpop.f32.mrf.mxu1 }
0x263e   : > { %3978 = vrot.lane.b32.xlu0 %v3840_v63, %s5993_s1  ;;  %s6029_s1 = sld [smem:[#allocation46_spill]] }
0x2644   : > { %s4182_s26 = scalar_lea.hbm %s6029_s1, %s4513_s11 }
0x2645   : > { %v3974_v22 = vpop.f32.mrf.mxu1  ;;  %s4186_s6 = sshll.u32 %s4182_s26, 4  ;;  %s4187_s6 = int_to_ptr.hbm [resolvable:$true] %s4186_s6 }
0x2646   : > { %3986 = vrot.lane.b32.xlu0 %v3974_v22, %s5994_s7  ;;  %s6026_s7 = sld [smem:[#allocation48_spill]] }
0x264c   : > { %s1279_s22 = sand.u32 1, %s6026_s7   ;;  %s4818_s7 = sshra.s32 %s4187_s6, 4  ;;  %s4819_s7 = int_to_ptr.hbm [resolvable:$true] %s4818_s7 }
0x264d   : > { %s4339_s23 = sshll.u32 %s1279_s22, 3  ;;  %s4172_s9 = scalar_lea.sflag [#allocation3], %s1279_s22 }
0x264e   : > { %s1281_s10 = scalar_lea.vmem [#allocation2], %s4339_s23  ;;  %s4820_s15 = scalar_lea.hbm %s4819_s7, 8 }
0x264f   : > { %s4184_s3 = sshll.u32 %s1281_s10, 4  ;;  %p4821_p11 = scmp.ne.s32.totalorder %s4819_s7, %s4820_s15  ;;  %s4185_s3 = int_to_ptr.vmem [resolvable:$true] %s4184_s3 }
0x2650   : > { %p4825_p0 = scmp.lt.s32.totalorder %s4819_s7, %s6029_s1 }
0x2651   : > { %p4822_p12 = pnand %p4821_p11, %p5177_p5 }
0x2653   : > { %p4823_p13 = pneg %p4822_p12 }
0x26a3   : > { %v3983_v31 = vpop.permute.xlu1 %3982 }
0x26b0   : > { %v3979_v27 = vpop.permute.xlu0 %3978 }
0x26b1   : > { %v3989_v30 = vsel %vm1383_vm4, %v3773_v61, %v3979_v27 }
0x26b2   : > { %v3990_v35 = vsel %vm1661_vm5, %v3989_v30, %v3983_v31 }
0x26b8   : > { %v3987_v32 = vpop.permute.xlu0 %3986 }
0x26b9   : > { %v3991_v36 = vsel %vm1663_vm6, %v3990_v35, %v3987_v32 }
0x26ba   : > { %4493 = vmatmul.msk.f32.vlgmr.msra.gmra.mxu3 %vm1308_vm0, %v3991_v36 }
0x273d   : > { %v4022_v40 = vpop.f32.mrf.mxu3 }
0x273e   : > { %v4023_v45 = vadd.f32 %v4650_v39, %v4022_v40 }
0x2740   : > { %v5781_v28 = vadd.f32 %v4023_v45, %v5725_v1  ;;  %v4497_v1 = vld [vmem:[%s6025_s8 + $0x28] sm:$0xff] }
0x2741   : > { %4101 = vmatpush.msra.mxu0 %v4497_v1 }
0x2742   : > { %v4030_v41 = vsel %vm1308_vm0, %v5781_v28, 0.0 }
0x2743   : > { %4031 = vadd.xlane.f32.xlu1 %v4030_v41  ;;  %4102 = vmatpush.msra.mxu0 %v4496_v51  ;;  %v4655_v41 = vld [vmem:[%s6028_s18] ss:$0 sm:$0xff]  ;;  %s4824_s18 = scalar_lea.hbm %s6029_s1, 16 }
0x2744   : > { %p4826_p1 = scmp.lt.s32.totalorder %s4824_s18, %s4820_s15 }
0x2746   : > { %p4827_p2 = por %p4826_p1, %p4825_p0 }
0x2748   : > { %p4828_p3 = pnand %p4827_p2, %p4823_p13 }
0x27b6   : > { %v4032_v42 = vpop.xlane.xlu1 %4031 }
0x27b7   : > { %v4033_v43 = vmul.f32 %v4032_v42, %v5197_v8 }
0x27b9   : > { %v4034_v44 = vsub.f32 %v5781_v28, %v4033_v43 }
0x27bb   : > { %v4035_v46 = vmul.f32 %v4034_v44, %v4034_v44 }
0x27bd   : > { %v4036_v48 = vsel %vm1308_vm0, %v4035_v46, 0.0 }
0x27be   : > { %4037 = vadd.xlane.f32.xlu0 %v4036_v48 }
0x2831   : > { %v4038_v52 = vpop.xlane.xlu0 %4037 }
0x2832   : > { %v4039_v53 = vmul.f32 0.032258064, %v4038_v52 }
0x2834   : > { %4795 = vrsqrt.f32 %v4039_v53  ;;  %vm4047_vm4 = vcmp.eq.f32.partialorder %v4039_v53, inf  ;;  %v4050_v29 = vand.u32 2147483648, %v4039_v53  ;;  %vm4049_vm5 = vcmp.eq.f32.partialorder %v4039_v53, 0.0 }
0x283a   : > { %v4796_v55 = vpop.eup %4795 }
0x283b   : > { %v4041_v56 = vmul.f32 %v4796_v55, %v4039_v53 }
0x283d   : > { %v4042_v58 = vmul.f32 %v4796_v55, %v4041_v56 }
0x283f   : > { %v4043_v59 = vmul.f32 0.5, %v4042_v58 }
0x2841   : > { %v4044_v62 = vsub.f32 1.5, %v4043_v59 }
0x2843   : > { %v4045_v0 = vmul.f32 %v4796_v55, %v4044_v62 }
0x2845   : > { %v4046_v38 = vmul.f32 %v4045_v0, %v4039_v53 }
0x2847   : > { %v4048_v2 = vsel %vm4047_vm4, %v4039_v53, %v4046_v38 }
0x2848   : > { %v4051_v3 = vsel %vm4049_vm5, %v4050_v29, %v4048_v2 }
0x2849   : > { %v4052_v5 = vadd.f32 1e-06, %v4051_v3 }
0x284b   : > { %4797 = vrcp.f32 %v4052_v5 }
0x2851   : > { %v4798_v9 = vpop.eup %4797 }
0x2852   : > { %v4054_v10 = vmul.f32 %v4798_v9, %v4034_v44  ;;  %v4656_v44 = vld [vmem:[%s6030_s2] ss:$0 sm:$0xff] }
0x2854   : > { %v4058_v33 = vmul.f32 %v4651_v6, %v4054_v10 }
0x2856   : > { %v4062_v11 = vadd.f32 %v4652_v37, %v4058_v33 }
0x2858   : > { %4510 = vmatmul.msk.f32.vlgmr.msra.gmra.mxu0 %vm1308_vm0, %v4062_v11 }
0x28d5   : > { %v4104_v16 = vpop.f32.mrf.mxu0 }
0x28d6   : > { %v4105_v17 = vadd.f32 %v4653_v15, %v4104_v16 }
0x28d8   : > { %v4107_v7 = vmax.f32 %v4105_v17, 0.0 }
0x28da   : > { %4511 = vmatmul.msk.f32.vlgmr.msrb.gmra.mxu2 %vm1776_vm9, %v4107_v7 }
0x295d   : > { %v4131_v19 = vpop.f32.mrf.mxu2 }
0x295e   : > { %v4132_v34 = vadd.f32 %v4654_v18, %v4131_v19 }
0x2960   : > { %v4134_v20 = vadd.f32 %v4132_v34, %v5781_v28 }
0x2962   : > { %v4137_v61 = vsel %vm1308_vm0, %v4134_v20, 0.0 }
0x2963   : > { %4138 = vadd.xlane.f32.xlu2 %v4137_v61 }
0x29d6   : > { %v4139_v21 = vpop.xlane.xlu2 %4138 }
0x29d7   : > { %v4140_v63 = vmul.f32 %v4139_v21, %v5197_v8 }
0x29d9   : > { %v4141_v22 = vsub.f32 %v4134_v20, %v4140_v63 }
0x29db   : > { %v4142_v23 = vmul.f32 %v4141_v22, %v4141_v22 }
0x29dd   : > { %v4143_v24 = vsel %vm1308_vm0, %v4142_v23, 0.0 }
0x29de   : > { %4144 = vadd.xlane.f32.xlu1 %v4143_v24 }
0x2a51   : > { %v4145_v25 = vpop.xlane.xlu1 %4144 }
0x2a52   : > { %v4146_v26 = vmul.f32 0.032258064, %v4145_v25 }
0x2a54   : > { %4799 = vrsqrt.f32 %v4146_v26  ;;  %vm4154_vm6 = vcmp.eq.f32.partialorder %v4146_v26, inf  ;;  %v4157_v39 = vand.u32 2147483648, %v4146_v26  ;;  %vm4156_vm9 = vcmp.eq.f32.partialorder %v4146_v26, 0.0 }
0x2a5a   : > { %v4800_v27 = vpop.eup %4799 }
0x2a5b   : > { %v4148_v30 = vmul.f32 %v4800_v27, %v4146_v26 }
0x2a5d   : > { %v4149_v31 = vmul.f32 %v4800_v27, %v4148_v30 }
0x2a5f   : > { %v4150_v32 = vmul.f32 0.5, %v4149_v31 }
0x2a61   : > { %v4151_v35 = vsub.f32 1.5, %v4150_v32 }
0x2a63   : > { %v4152_v36 = vmul.f32 %v4800_v27, %v4151_v35 }
0x2a65   : > { %v4153_v8 = vmul.f32 %v4152_v36, %v4146_v26 }
0x2a67   : > { %v4155_v40 = vsel %vm4154_vm6, %v4146_v26, %v4153_v8 }
0x2a68   : > { %v4158_v45 = vsel %vm4156_vm9, %v4157_v39, %v4155_v40 }
0x2a69   : > { %v4159_v28 = vadd.f32 1e-06, %v4158_v45 }
0x2a6b   : > { %4801 = vrcp.f32 %v4159_v28 }
0x2a71   : > { %v4802_v42 = vpop.eup %4801 }
0x2a72   : > { %v4161_v43 = vmul.f32 %v4802_v42, %v4141_v22 }
0x2a74   : > { %v4165_v46 = vmul.f32 %v4655_v41, %v4161_v43 }
0x2a76   : > { %v4169_v48 = vadd.f32 %v4656_v44, %v4165_v46 }
0x2a78   : > { %4170 = vst.msk [vmem:[%s1281_s10] sm:$0xff] %vm1308_vm0, %v4169_v48 }
0x2a79   : > { %4831 = shalt.err (!%p4828_p3)
}
0x2a7a   : > { %4516 = dma.vmem_to_hbm [thread:$0]  (%p5177_p5), %s4185_s3, 128, %s4187_s6, %s4172_s9  }
0x2a7b PF: > { %s6032_s2 = sld [smem:[#allocation50_spill]] }
0x2a7c   : > { %s6033_s23 = sld [smem:[#allocation47_spill]] }
0x2a81   : > { %p4522_p4 = scmp.ge.s32.totalorder %s6032_s2, 2 }
0x2a82   : > { %s4198_s11 = sand.u32 1, %s6033_s23  }
0x2a83   : > { %p4519_p7 = pnand %p4522_p4, %p5181_p6  ;;  %s4199_s26 = scalar_lea.sflag [#allocation3], %s4198_s11 }
0x2a85   : > { %p4520_p8 = pneg %p4519_p7 }
0x2a87   : > { %4849 = dma.done.wait (%p4520_p8), %s4199_s26, 128  }
0x2a88   : > { %4851 = vsyncadd (%p4520_p8), %s4199_s26, 4294967168  ;;  %s6035_s15 = sld [smem:[#allocation52_spill]] }
0x2a89   : > { %s6036_s7 = sld [smem:[#allocation48_spill]] }
0x2a8a   : > { %s6037_s10 = sld [smem:[#allocation49_spill]] }
0x2a8b   : > { %s6038_s11 = sld [smem:[#allocation53_spill]] }
0x2a8e   : > { %p93_p9 = scmp.ge.s32.totalorder %s6035_s15, 4  }
0x2a90   :  { %95 = sbr.rel (!%p93_p9) target bundleno = 100 (0x64), region = 304 }
0x2a95   :  { %4205 = vsyncpa [#allocation3], 1 }
0x2a96   :  { %4207 = vsyncpa [#allocation3 + $0x1], 1 }

</bundles_post_ra>
